<compile_context>
chip_gen: v6e
topology: v6e:2x2x1
jax: 0.10.0
libtpu: 0.0.40
codegen_flags: <defaults>
</compile_context>

<pallas_src>
import jax
import jax.numpy as jnp
import numpy as np
from jax.experimental import pallas as pl
from jax.experimental.pallas import tpu as pltpu
from jax.scipy.linalg import block_diag

NUM_EXPERTS = 16
EXPERTS_OUT = 64
EXPERTS_HIDDEN = 64
TOWERS_HIDDEN = 64
NUM_TASKS = 3
EMBED_DIM = 16
N_USER_FEATURES = 8                   # len(user_features) -> input_size = 8*16 = 128
N_ITEM_FEATURES = 11                  # linear1 = MLP(11*16, ...)
INPUT_SIZE = N_USER_FEATURES * EMBED_DIM      # 128
ITEM_FLAT = N_ITEM_FEATURES * EMBED_DIM       # 176
TOWER_OUT = 16
EXP_CAT = NUM_EXPERTS * EXPERTS_HIDDEN        # 1024 (fc1/fc2 concat width)
GATE_CAT = NUM_TASKS * NUM_EXPERTS            # 48


def mmoe_kernel(x_ref, slot_ref, pn_ref,
                w1g_ref, b1_ref, w2_ref, b2_ref, r_ref,
                tw1_ref, tb1_ref, tw2_ref, tb2_ref,
                lw_ref, lb_ref,
                out_ref):
    bt = x_ref.shape[0]
    x = x_ref[...]                                                     # (bt, 128) f32
    xb = x.astype(jnp.bfloat16)

    # ---- 16 expert fc1's + 3 gate logit matmuls fused into one MXU matmul ----
    h_all = jnp.dot(xb, w1g_ref[...], preferred_element_type=jnp.float32)   # (bt, 1072)
    h1 = jnp.maximum(h_all[:, :EXP_CAT] + b1_ref[...], 0.0)                 # (bt, 1024)
    logits = h_all[:, EXP_CAT:]                                             # (bt, 48)

    # ---- 16 expert fc2's as one block-diagonal matmul ------------------------
    e_cat = jnp.dot(h1.astype(jnp.bfloat16), w2_ref[...],
                    preferred_element_type=jnp.float32) + b2_ref[...]       # (bt, 1024)

    # ---- 3 tasks: softmax gate -> gated mixture (as matmuls) -> tower --------
    tower_outs = []
    for t in range(NUM_TASKS):
        lg = logits[:, t * NUM_EXPERTS:(t + 1) * NUM_EXPERTS]               # (bt, 16)
        m = jnp.max(lg, axis=1, keepdims=True)
        ex = jnp.exp(lg - m)
        gate = ex / jnp.sum(ex, axis=1, keepdims=True)                      # f32 softmax
        # exact rewrite: sum_e g_e*(E_e @ tw1) == (repeat(gate,64)*E_cat) @ tile(tw1,16)
        ge = jnp.dot(gate.astype(jnp.bfloat16), r_ref[...],
                     preferred_element_type=jnp.float32)                    # (bt, 1024)
        mix = (ge * e_cat).astype(jnp.bfloat16)
        th = jnp.maximum(
            jnp.dot(mix, tw1_ref[t], preferred_element_type=jnp.float32) + tb1_ref[t],
            0.0)                                                            # (bt, 64)
        to = jnp.dot(th.astype(jnp.bfloat16), tw2_ref[t],
                     preferred_element_type=jnp.float32) + tb2_ref[t]       # (bt, 16)
        tower_outs.append(to)

    # ---- slot-mask selection + L2 normalize (F.normalize, eps=1e-12) ---------
    slot = slot_ref[...]                                                    # (bt, 1) int32
    ue = jnp.where(slot == 1, tower_outs[0],
         jnp.where(slot == 2, tower_outs[1],
         jnp.where(slot == 3, tower_outs[2],
                   jnp.zeros_like(tower_outs[0]))))
    un = jnp.sqrt(jnp.sum(ue * ue, axis=1, keepdims=True))
    ue = ue / jnp.maximum(un, 1e-12)

    # ---- item tower: pos & neg stacked -> one matmul, ReLU, L2 normalize -----
    # TODO(synk): MLP(11*16, False, [16]) assumed = Linear(176,16) -> eval BatchNorm1d
    # (folded into the weights host-side) -> ReLU -> Dropout(0).
    pn = pn_ref[...].reshape(2 * bt, ITEM_FLAT).astype(jnp.bfloat16)        # (2bt, 176)
    h = jnp.dot(pn, lw_ref[...], preferred_element_type=jnp.float32) + lb_ref[...]
    h = jnp.maximum(h, 0.0)
    hn = jnp.sqrt(jnp.sum(h * h, axis=1, keepdims=True))
    h = h / jnp.maximum(hn, 1e-12)                                          # (2bt, 16)
    pos = h[:bt]
    neg = h[bt:]

    # ---- similarity scores, packed into one output slab ----------------------
    ps = jnp.sum(ue * pos, axis=1, keepdims=True)
    ns = jnp.sum(ue * neg, axis=1, keepdims=True)
    out_ref[...] = jnp.concatenate([ps, ns], axis=1)                        # (bt, 2)


def _round_up(n, m):
    return ((n + m - 1) // m) * m


def prepare_kernel_params(p):
    """Repack the f32 master params into MXU-shaped bf16 weights (biases stay f32)."""
    f32, bf16 = jnp.float32, jnp.bfloat16
    # fused expert-fc1 (128, 1024) + gate (128, 48) weights -> (128, 1072)
    w1cat = jnp.transpose(p["ew1"], (1, 0, 2)).reshape(INPUT_SIZE, EXP_CAT)
    gwcat = jnp.transpose(p["gw"], (1, 0, 2)).reshape(INPUT_SIZE, GATE_CAT)
    w1g = jnp.concatenate([w1cat, gwcat], axis=1).astype(bf16)
    b1 = p["eb1"].reshape(1, EXP_CAT).astype(f32)
    # block-diagonal expert-fc2 (1024, 1024)
    w2 = block_diag(*[p["ew2"][e] for e in range(NUM_EXPERTS)]).astype(bf16)
    b2 = p["eb2"].reshape(1, EXP_CAT).astype(f32)
    # gate lane-expand matrix: R[e, e*64:(e+1)*64] = 1   (16, 1024)
    r = jnp.kron(jnp.eye(NUM_EXPERTS, dtype=f32),
                 jnp.ones((1, EXPERTS_OUT), dtype=f32)).astype(bf16)
    # tower fc1 tiled 16x vertically so it consumes the 1024-wide mixed slab
    tw1 = jnp.stack([jnp.tile(p["tw1"][t], (NUM_EXPERTS, 1))
                     for t in range(NUM_TASKS)]).astype(bf16)               # (3, 1024, 64)
    tb1 = p["tb1"].reshape(NUM_TASKS, 1, TOWERS_HIDDEN).astype(f32)
    tw2 = p["tw2"].astype(bf16)                                             # (3, 64, 16)
    tb2 = p["tb2"].reshape(NUM_TASKS, 1, TOWER_OUT).astype(f32)
    lw = p["lw"].astype(bf16)                                               # (176, 16)
    lb = p["lb"].reshape(1, TOWER_OUT).astype(f32)
    return w1g, b1, w2, b2, r, tw1, tb1, tw2, tb2, lw, lb


def mmoe_forward(x_user, slot_id, pos_flat, neg_flat, p, *, block_b=256):
    B = x_user.shape[0]
    bt = min(block_b, _round_up(B, 8))          # batch tile (multiple of 8)
    Bp = _round_up(B, bt)
    pad = Bp - B

    x = x_user.astype(jnp.float32)
    slot = slot_id.reshape(B, 1).astype(jnp.int32)
    pn = jnp.stack([pos_flat.astype(jnp.float32),
                    neg_flat.astype(jnp.float32)], axis=0)                  # (2, B, 176)
    if pad:
        x = jnp.pad(x, ((0, pad), (0, 0)))
        slot = jnp.pad(slot, ((0, pad), (0, 0)))
        pn = jnp.pad(pn, ((0, 0), (0, pad), (0, 0)))

    weights = prepare_kernel_params(p)

    def full_spec(a):
        nd = a.ndim
        return pl.BlockSpec(a.shape, lambda i: (0,) * nd)  # VMEM-resident weight

    in_specs = [
        pl.BlockSpec((bt, INPUT_SIZE), lambda i: (i, 0)),        # x batch tile
        pl.BlockSpec((bt, 1), lambda i: (i, 0)),                 # slot batch tile
        pl.BlockSpec((2, bt, ITEM_FLAT), lambda i: (0, i, 0)),   # pos/neg batch tile
    ] + [full_spec(w) for w in weights]

    out = pl.pallas_call(
        mmoe_kernel,
        out_shape=jax.ShapeDtypeStruct((Bp, 2), jnp.float32),
        grid=(Bp // bt,),
        in_specs=in_specs,
        out_specs=pl.BlockSpec((bt, 2), lambda i: (i, 0)),
        compiler_params=pltpu.CompilerParams(
            dimension_semantics=("parallel",),                   # megacore on v7x
            vmem_limit_bytes=32 * 1024 * 1024),                  # raise v5e's 16 MiB default
    )(x, slot, pn, *weights)
    return out[:B, 0], out[:B, 1]


def init_params(key):
    ks = jax.random.split(key, 11)

    def w(k, shape, scale):
        return jax.random.normal(k, shape, jnp.float32) * scale

    params = {
        "ew1": w(ks[0], (NUM_EXPERTS, INPUT_SIZE, EXPERTS_HIDDEN), 0.05),
        "eb1": w(ks[1], (NUM_EXPERTS, EXPERTS_HIDDEN), 0.05),
        "ew2": w(ks[2], (NUM_EXPERTS, EXPERTS_HIDDEN, EXPERTS_OUT), 0.05),
        "eb2": w(ks[3], (NUM_EXPERTS, EXPERTS_OUT), 0.05),
        "gw":  w(ks[4], (NUM_TASKS, INPUT_SIZE, NUM_EXPERTS), 1.0),   # torch.randn
        "tw1": w(ks[5], (NUM_TASKS, EXPERTS_OUT, TOWERS_HIDDEN), 0.05),
        "tb1": w(ks[6], (NUM_TASKS, TOWERS_HIDDEN), 0.05),
        "tw2": w(ks[7], (NUM_TASKS, TOWERS_HIDDEN, TOWER_OUT), 0.05),
        "tb2": w(ks[8], (NUM_TASKS, TOWER_OUT), 0.05),
    }
    lw = w(ks[9], (ITEM_FLAT, TOWER_OUT), 0.05)
    lb = w(ks[10], (1, TOWER_OUT), 0.05)
    # Fold eval-mode BatchNorm1d(16) (gamma=1, beta=0, mean=0, var=1) into linear1.
    bn_scale = 1.0 / np.sqrt(1.0 + 1e-5)
    params["lw"] = lw * bn_scale
    params["lb"] = lb * bn_scale
    return params


def mmoe_reference(x_user, slot_id, pos_flat, neg_flat, p):
    """Pure-JAX f32 mirror of the PyTorch forward for correctness checking."""
    experts = []
    for e in range(NUM_EXPERTS):
        h = jnp.maximum(x_user @ p["ew1"][e] + p["eb1"][e], 0.0)
        experts.append(h @ p["ew2"][e] + p["eb2"][e])
    experts = jnp.stack(experts, axis=1)                      # (B, 16, 64)
    touts = []
    for t in range(NUM_TASKS):
        g = jax.nn.softmax(x_user @ p["gw"][t], axis=1)       # (B, 16)
        ti = jnp.einsum("be,bed->bd", g, experts)
        th = jnp.maximum(ti @ p["tw1"][t] + p["tb1"][t], 0.0)
        touts.append(th @ p["tw2"][t] + p["tb2"][t])
    slot = slot_id.reshape(-1, 1)
    ue = jnp.zeros_like(touts[0])
    ue = jnp.where(slot == 1, touts[0], ue)
    ue = jnp.where(slot == 2, touts[1], ue)
    ue = jnp.where(slot == 3, touts[2], ue)
    ue = ue / jnp.maximum(jnp.linalg.norm(ue, axis=1, keepdims=True), 1e-12)

    def item(flat):
        h = jnp.maximum(flat @ p["lw"] + p["lb"], 0.0)
        return h / jnp.maximum(jnp.linalg.norm(h, axis=1, keepdims=True), 1e-12)

    pos = item(pos_flat)
    neg = item(neg_flat)
    return jnp.sum(ue * pos, axis=1), jnp.sum(ue * neg, axis=1)


if __name__ == "__main__":
    key = jax.random.PRNGKey(0)
    kp, kd = jax.random.split(key)
    params = init_params(kp)

    B = 8
    kd1, kd2, kd3, kd4 = jax.random.split(kd, 4)
    # Embedding-lookup glue (EmbeddingLayer equivalent): tables + gather in plain JAX.
    user_table = jax.random.normal(kd1, (100, N_USER_FEATURES, EMBED_DIM), jnp.float32) * 0.1
    item_table = jax.random.normal(kd2, (100, N_ITEM_FEATURES, EMBED_DIM), jnp.float32) * 0.1
    user_ids = jax.random.randint(kd3, (B,), 0, 100)
    pos_ids = jax.random.randint(kd4, (B,), 0, 100)
    neg_ids = (pos_ids + 7) % 100
    slot_id = jnp.array([1, 2, 3, 1, 2, 3, 0, 1], dtype=jnp.int32)   # x['tab']

    x_user = user_table[user_ids].reshape(B, INPUT_SIZE)             # (B, 128)
    pos_flat = item_table[pos_ids].reshape(B, ITEM_FLAT)             # (B, 176)
    neg_flat = item_table[neg_ids].reshape(B, ITEM_FLAT)             # (B, 176)

    pos_score, neg_score = mmoe_forward(x_user, slot_id, pos_flat, neg_flat, params)
    jax.block_until_ready((pos_score, neg_score))

    ref_pos, ref_neg = mmoe_reference(x_user, slot_id, pos_flat, neg_flat, params)
    # bf16 MXU path (f32 accumulation) -> loosened tolerance vs the f32 reference.
    np.testing.assert_allclose(np.asarray(pos_score), np.asarray(ref_pos), rtol=3e-2, atol=3e-2)
    np.testing.assert_allclose(np.asarray(neg_score), np.asarray(ref_neg), rtol=3e-2, atol=3e-2)

    print("KERNEL_OK")
</pallas_src>

<mosaic_0001>
module attributes {stable_mosaic.version = 11 : i64} {
  func.func @mmoe_kernel(%arg0: i32, %arg1: memref<8x128xf32, #tpu.memory_space<vmem>>, %arg2: memref<8x1xi32, #tpu.memory_space<vmem>>, %arg3: memref<2x8x176xf32, #tpu.memory_space<vmem>>, %arg4: memref<128x1072xbf16, #tpu.memory_space<vmem>>, %arg5: memref<1x1024xf32, #tpu.memory_space<vmem>>, %arg6: memref<1024x1024xbf16, #tpu.memory_space<vmem>>, %arg7: memref<1x1024xf32, #tpu.memory_space<vmem>>, %arg8: memref<16x1024xbf16, #tpu.memory_space<vmem>>, %arg9: memref<3x1024x64xbf16, #tpu.memory_space<vmem>>, %arg10: memref<3x1x64xf32, #tpu.memory_space<vmem>>, %arg11: memref<3x64x16xbf16, #tpu.memory_space<vmem>>, %arg12: memref<3x1x16xf32, #tpu.memory_space<vmem>>, %arg13: memref<176x16xbf16, #tpu.memory_space<vmem>>, %arg14: memref<1x16xf32, #tpu.memory_space<vmem>>, %arg15: memref<8x2xf32, #tpu.memory_space<vmem>>) attributes {dimension_semantics = [#tpu.dimension_semantics<parallel>], iteration_bounds = array<i64: 1>, scalar_prefetch = 0 : i64, scratch_operands = 0 : i64, tpu.core_type = #tpu.core_type<tc>, window_params = [{transform_indices = @transform_0, window_bounds = array<i64: 8, 128>}, {transform_indices = @transform_1, window_bounds = array<i64: 8, 1>}, {transform_indices = @transform_2, window_bounds = array<i64: 2, 8, 176>}, {pipeline_mode = #tpu.pipeline_mode<synchronous>, transform_indices = @transform_3, window_bounds = array<i64: 128, 1072>}, {pipeline_mode = #tpu.pipeline_mode<synchronous>, transform_indices = @transform_4, window_bounds = array<i64: 1, 1024>}, {pipeline_mode = #tpu.pipeline_mode<synchronous>, transform_indices = @transform_5, window_bounds = array<i64: 1024, 1024>}, {pipeline_mode = #tpu.pipeline_mode<synchronous>, transform_indices = @transform_6, window_bounds = array<i64: 1, 1024>}, {pipeline_mode = #tpu.pipeline_mode<synchronous>, transform_indices = @transform_7, window_bounds = array<i64: 16, 1024>}, {pipeline_mode = #tpu.pipeline_mode<synchronous>, transform_indices = @transform_8, window_bounds = array<i64: 3, 1024, 64>}, {pipeline_mode = #tpu.pipeline_mode<synchronous>, transform_indices = @transform_9, window_bounds = array<i64: 3, 1, 64>}, {pipeline_mode = #tpu.pipeline_mode<synchronous>, transform_indices = @transform_10, window_bounds = array<i64: 3, 64, 16>}, {pipeline_mode = #tpu.pipeline_mode<synchronous>, transform_indices = @transform_11, window_bounds = array<i64: 3, 1, 16>}, {pipeline_mode = #tpu.pipeline_mode<synchronous>, transform_indices = @transform_12, window_bounds = array<i64: 176, 16>}, {pipeline_mode = #tpu.pipeline_mode<synchronous>, transform_indices = @transform_13, window_bounds = array<i64: 1, 16>}, {transform_indices = @transform_14, window_bounds = array<i64: 8, 2>}]} {
    %c0 = arith.constant 0 : index
    %c0_0 = arith.constant 0 : index
    %0 = vector.load %arg1[%c0, %c0_0] : memref<8x128xf32, #tpu.memory_space<vmem>>, vector<8x128xf32>
    %1 = arith.truncf %0 : vector<8x128xf32> to vector<8x128xbf16>
    %c0_1 = arith.constant 0 : index
    %c0_2 = arith.constant 0 : index
    %2 = vector.load %arg4[%c0_1, %c0_2] : memref<128x1072xbf16, #tpu.memory_space<vmem>>, vector<128x1072xbf16>
    %cst = arith.constant dense<0.000000e+00> : vector<8x1072xf32>
    %3 = tpu.matmul %1, %2, %cst {dimension_numbers = #tpu.dot_dimension_numbers<[1], [0], [0], [1], [0, 0, 1, 1], [], []>} : vector<8x128xbf16>, vector<128x1072xbf16>, vector<8x1072xf32> -> vector<8x1072xf32>
    %4 = vector.extract_strided_slice %3 {offsets = [0, 0], sizes = [8, 1024], strides = [1, 1]} : vector<8x1072xf32> to vector<8x1024xf32>
    %c0_3 = arith.constant 0 : index
    %c0_4 = arith.constant 0 : index
    %5 = vector.load %arg5[%c0_3, %c0_4] : memref<1x1024xf32, #tpu.memory_space<vmem>>, vector<1x1024xf32>
    %6 = vector.broadcast %5 : vector<1x1024xf32> to vector<8x1024xf32>
    %7 = arith.addf %4, %6 : vector<8x1024xf32>
    %cst_5 = arith.constant 0.000000e+00 : f32
    %8 = vector.broadcast %cst_5 : f32 to vector<8x1024xf32>
    %9 = arith.maximumf %7, %8 : vector<8x1024xf32>
    %10 = vector.extract_strided_slice %3 {offsets = [0, 1024], sizes = [8, 48], strides = [1, 1]} : vector<8x1072xf32> to vector<8x48xf32>
    %11 = arith.truncf %9 : vector<8x1024xf32> to vector<8x1024xbf16>
    %c0_6 = arith.constant 0 : index
    %c0_7 = arith.constant 0 : index
    %12 = vector.load %arg6[%c0_6, %c0_7] : memref<1024x1024xbf16, #tpu.memory_space<vmem>>, vector<1024x1024xbf16>
    %cst_8 = arith.constant dense<0.000000e+00> : vector<8x1024xf32>
    %13 = tpu.matmul %11, %12, %cst_8 {dimension_numbers = #tpu.dot_dimension_numbers<[1], [0], [0], [1], [0, 0, 1, 1], [], []>} : vector<8x1024xbf16>, vector<1024x1024xbf16>, vector<8x1024xf32> -> vector<8x1024xf32>
    %c0_9 = arith.constant 0 : index
    %c0_10 = arith.constant 0 : index
    %14 = vector.load %arg7[%c0_9, %c0_10] : memref<1x1024xf32, #tpu.memory_space<vmem>>, vector<1x1024xf32>
    %15 = vector.broadcast %14 : vector<1x1024xf32> to vector<8x1024xf32>
    %16 = arith.addf %13, %15 : vector<8x1024xf32>
    %17 = vector.extract_strided_slice %10 {offsets = [0, 0], sizes = [8, 16], strides = [1, 1]} : vector<8x48xf32> to vector<8x16xf32>
    %cst_11 = arith.constant dense<0xFF800000> : vector<8xf32>
    %18 = vector.multi_reduction <maximumf>, %17, %cst_11 [1] : vector<8x16xf32> to vector<8xf32>
    %19 = vector.shape_cast %18 : vector<8xf32> to vector<8x1xf32>
    %20 = vector.broadcast %19 : vector<8x1xf32> to vector<8x16xf32>
    %21 = arith.subf %17, %20 : vector<8x16xf32>
    %22 = math.exp %21 : vector<8x16xf32>
    %cst_12 = arith.constant dense<0.000000e+00> : vector<8xf32>
    %23 = vector.multi_reduction <add>, %22, %cst_12 [1] : vector<8x16xf32> to vector<8xf32>
    %24 = vector.shape_cast %23 : vector<8xf32> to vector<8x1xf32>
    %25 = vector.broadcast %24 : vector<8x1xf32> to vector<8x16xf32>
    %26 = arith.divf %22, %25 : vector<8x16xf32>
    %27 = arith.truncf %26 : vector<8x16xf32> to vector<8x16xbf16>
    %c0_13 = arith.constant 0 : index
    %c0_14 = arith.constant 0 : index
    %28 = vector.load %arg8[%c0_13, %c0_14] : memref<16x1024xbf16, #tpu.memory_space<vmem>>, vector<16x1024xbf16>
    %cst_15 = arith.constant dense<0.000000e+00> : vector<8x1024xf32>
    %29 = tpu.matmul %27, %28, %cst_15 {dimension_numbers = #tpu.dot_dimension_numbers<[1], [0], [0], [1], [0, 0, 1, 1], [], []>} : vector<8x16xbf16>, vector<16x1024xbf16>, vector<8x1024xf32> -> vector<8x1024xf32>
    %30 = arith.mulf %29, %16 : vector<8x1024xf32>
    %31 = arith.truncf %30 : vector<8x1024xf32> to vector<8x1024xbf16>
    %c0_16 = arith.constant 0 : index
    %c0_17 = arith.constant 0 : index
    %c0_18 = arith.constant 0 : index
    %32 = vector.load %arg9[%c0_16, %c0_17, %c0_18] : memref<3x1024x64xbf16, #tpu.memory_space<vmem>>, vector<1x1024x64xbf16>
    %33 = vector.shape_cast %32 : vector<1x1024x64xbf16> to vector<1024x64xbf16>
    %cst_19 = arith.constant dense<0.000000e+00> : vector<8x64xf32>
    %34 = tpu.matmul %31, %33, %cst_19 {dimension_numbers = #tpu.dot_dimension_numbers<[1], [0], [0], [1], [0, 0, 1, 1], [], []>} : vector<8x1024xbf16>, vector<1024x64xbf16>, vector<8x64xf32> -> vector<8x64xf32>
    %c0_20 = arith.constant 0 : index
    %c0_21 = arith.constant 0 : index
    %c0_22 = arith.constant 0 : index
    %35 = vector.load %arg10[%c0_20, %c0_21, %c0_22] : memref<3x1x64xf32, #tpu.memory_space<vmem>>, vector<1x1x64xf32>
    %36 = vector.shape_cast %35 : vector<1x1x64xf32> to vector<1x64xf32>
    %37 = vector.broadcast %36 : vector<1x64xf32> to vector<8x64xf32>
    %38 = arith.addf %34, %37 : vector<8x64xf32>
    %cst_23 = arith.constant 0.000000e+00 : f32
    %39 = vector.broadcast %cst_23 : f32 to vector<8x64xf32>
    %40 = arith.maximumf %38, %39 : vector<8x64xf32>
    %41 = arith.truncf %40 : vector<8x64xf32> to vector<8x64xbf16>
    %c0_24 = arith.constant 0 : index
    %c0_25 = arith.constant 0 : index
    %c0_26 = arith.constant 0 : index
    %42 = vector.load %arg11[%c0_24, %c0_25, %c0_26] : memref<3x64x16xbf16, #tpu.memory_space<vmem>>, vector<1x64x16xbf16>
    %43 = vector.shape_cast %42 : vector<1x64x16xbf16> to vector<64x16xbf16>
    %cst_27 = arith.constant dense<0.000000e+00> : vector<8x16xf32>
    %44 = tpu.matmul %41, %43, %cst_27 {dimension_numbers = #tpu.dot_dimension_numbers<[1], [0], [0], [1], [0, 0, 1, 1], [], []>} : vector<8x64xbf16>, vector<64x16xbf16>, vector<8x16xf32> -> vector<8x16xf32>
    %c0_28 = arith.constant 0 : index
    %c0_29 = arith.constant 0 : index
    %c0_30 = arith.constant 0 : index
    %45 = vector.load %arg12[%c0_28, %c0_29, %c0_30] : memref<3x1x16xf32, #tpu.memory_space<vmem>>, vector<1x1x16xf32>
    %46 = vector.shape_cast %45 : vector<1x1x16xf32> to vector<1x16xf32>
    %47 = vector.broadcast %46 : vector<1x16xf32> to vector<8x16xf32>
    %48 = arith.addf %44, %47 : vector<8x16xf32>
    %49 = vector.extract_strided_slice %10 {offsets = [0, 16], sizes = [8, 16], strides = [1, 1]} : vector<8x48xf32> to vector<8x16xf32>
    %cst_31 = arith.constant dense<0xFF800000> : vector<8xf32>
    %50 = vector.multi_reduction <maximumf>, %49, %cst_31 [1] : vector<8x16xf32> to vector<8xf32>
    %51 = vector.shape_cast %50 : vector<8xf32> to vector<8x1xf32>
    %52 = vector.broadcast %51 : vector<8x1xf32> to vector<8x16xf32>
    %53 = arith.subf %49, %52 : vector<8x16xf32>
    %54 = math.exp %53 : vector<8x16xf32>
    %cst_32 = arith.constant dense<0.000000e+00> : vector<8xf32>
    %55 = vector.multi_reduction <add>, %54, %cst_32 [1] : vector<8x16xf32> to vector<8xf32>
    %56 = vector.shape_cast %55 : vector<8xf32> to vector<8x1xf32>
    %57 = vector.broadcast %56 : vector<8x1xf32> to vector<8x16xf32>
    %58 = arith.divf %54, %57 : vector<8x16xf32>
    %59 = arith.truncf %58 : vector<8x16xf32> to vector<8x16xbf16>
    %c0_33 = arith.constant 0 : index
    %c0_34 = arith.constant 0 : index
    %60 = vector.load %arg8[%c0_33, %c0_34] : memref<16x1024xbf16, #tpu.memory_space<vmem>>, vector<16x1024xbf16>
    %cst_35 = arith.constant dense<0.000000e+00> : vector<8x1024xf32>
    %61 = tpu.matmul %59, %60, %cst_35 {dimension_numbers = #tpu.dot_dimension_numbers<[1], [0], [0], [1], [0, 0, 1, 1], [], []>} : vector<8x16xbf16>, vector<16x1024xbf16>, vector<8x1024xf32> -> vector<8x1024xf32>
    %62 = arith.mulf %61, %16 : vector<8x1024xf32>
    %63 = arith.truncf %62 : vector<8x1024xf32> to vector<8x1024xbf16>
    %c1 = arith.constant 1 : index
    %c0_36 = arith.constant 0 : index
    %c0_37 = arith.constant 0 : index
    %64 = vector.load %arg9[%c1, %c0_36, %c0_37] : memref<3x1024x64xbf16, #tpu.memory_space<vmem>>, vector<1x1024x64xbf16>
    %65 = vector.shape_cast %64 : vector<1x1024x64xbf16> to vector<1024x64xbf16>
    %cst_38 = arith.constant dense<0.000000e+00> : vector<8x64xf32>
    %66 = tpu.matmul %63, %65, %cst_38 {dimension_numbers = #tpu.dot_dimension_numbers<[1], [0], [0], [1], [0, 0, 1, 1], [], []>} : vector<8x1024xbf16>, vector<1024x64xbf16>, vector<8x64xf32> -> vector<8x64xf32>
    %c1_39 = arith.constant 1 : index
    %c0_40 = arith.constant 0 : index
    %c0_41 = arith.constant 0 : index
    %67 = vector.load %arg10[%c1_39, %c0_40, %c0_41] : memref<3x1x64xf32, #tpu.memory_space<vmem>>, vector<1x1x64xf32>
    %68 = vector.shape_cast %67 : vector<1x1x64xf32> to vector<1x64xf32>
    %69 = vector.broadcast %68 : vector<1x64xf32> to vector<8x64xf32>
    %70 = arith.addf %66, %69 : vector<8x64xf32>
    %cst_42 = arith.constant 0.000000e+00 : f32
    %71 = vector.broadcast %cst_42 : f32 to vector<8x64xf32>
    %72 = arith.maximumf %70, %71 : vector<8x64xf32>
    %73 = arith.truncf %72 : vector<8x64xf32> to vector<8x64xbf16>
    %c1_43 = arith.constant 1 : index
    %c0_44 = arith.constant 0 : index
    %c0_45 = arith.constant 0 : index
    %74 = vector.load %arg11[%c1_43, %c0_44, %c0_45] : memref<3x64x16xbf16, #tpu.memory_space<vmem>>, vector<1x64x16xbf16>
    %75 = vector.shape_cast %74 : vector<1x64x16xbf16> to vector<64x16xbf16>
    %cst_46 = arith.constant dense<0.000000e+00> : vector<8x16xf32>
    %76 = tpu.matmul %73, %75, %cst_46 {dimension_numbers = #tpu.dot_dimension_numbers<[1], [0], [0], [1], [0, 0, 1, 1], [], []>} : vector<8x64xbf16>, vector<64x16xbf16>, vector<8x16xf32> -> vector<8x16xf32>
    %c1_47 = arith.constant 1 : index
    %c0_48 = arith.constant 0 : index
    %c0_49 = arith.constant 0 : index
    %77 = vector.load %arg12[%c1_47, %c0_48, %c0_49] : memref<3x1x16xf32, #tpu.memory_space<vmem>>, vector<1x1x16xf32>
    %78 = vector.shape_cast %77 : vector<1x1x16xf32> to vector<1x16xf32>
    %79 = vector.broadcast %78 : vector<1x16xf32> to vector<8x16xf32>
    %80 = arith.addf %76, %79 : vector<8x16xf32>
    %81 = vector.extract_strided_slice %10 {offsets = [0, 32], sizes = [8, 16], strides = [1, 1]} : vector<8x48xf32> to vector<8x16xf32>
    %cst_50 = arith.constant dense<0xFF800000> : vector<8xf32>
    %82 = vector.multi_reduction <maximumf>, %81, %cst_50 [1] : vector<8x16xf32> to vector<8xf32>
    %83 = vector.shape_cast %82 : vector<8xf32> to vector<8x1xf32>
    %84 = vector.broadcast %83 : vector<8x1xf32> to vector<8x16xf32>
    %85 = arith.subf %81, %84 : vector<8x16xf32>
    %86 = math.exp %85 : vector<8x16xf32>
    %cst_51 = arith.constant dense<0.000000e+00> : vector<8xf32>
    %87 = vector.multi_reduction <add>, %86, %cst_51 [1] : vector<8x16xf32> to vector<8xf32>
    %88 = vector.shape_cast %87 : vector<8xf32> to vector<8x1xf32>
    %89 = vector.broadcast %88 : vector<8x1xf32> to vector<8x16xf32>
    %90 = arith.divf %86, %89 : vector<8x16xf32>
    %91 = arith.truncf %90 : vector<8x16xf32> to vector<8x16xbf16>
    %c0_52 = arith.constant 0 : index
    %c0_53 = arith.constant 0 : index
    %92 = vector.load %arg8[%c0_52, %c0_53] : memref<16x1024xbf16, #tpu.memory_space<vmem>>, vector<16x1024xbf16>
    %cst_54 = arith.constant dense<0.000000e+00> : vector<8x1024xf32>
    %93 = tpu.matmul %91, %92, %cst_54 {dimension_numbers = #tpu.dot_dimension_numbers<[1], [0], [0], [1], [0, 0, 1, 1], [], []>} : vector<8x16xbf16>, vector<16x1024xbf16>, vector<8x1024xf32> -> vector<8x1024xf32>
    %94 = arith.mulf %93, %16 : vector<8x1024xf32>
    %95 = arith.truncf %94 : vector<8x1024xf32> to vector<8x1024xbf16>
    %c2 = arith.constant 2 : index
    %c0_55 = arith.constant 0 : index
    %c0_56 = arith.constant 0 : index
    %96 = vector.load %arg9[%c2, %c0_55, %c0_56] : memref<3x1024x64xbf16, #tpu.memory_space<vmem>>, vector<1x1024x64xbf16>
    %97 = vector.shape_cast %96 : vector<1x1024x64xbf16> to vector<1024x64xbf16>
    %cst_57 = arith.constant dense<0.000000e+00> : vector<8x64xf32>
    %98 = tpu.matmul %95, %97, %cst_57 {dimension_numbers = #tpu.dot_dimension_numbers<[1], [0], [0], [1], [0, 0, 1, 1], [], []>} : vector<8x1024xbf16>, vector<1024x64xbf16>, vector<8x64xf32> -> vector<8x64xf32>
    %c2_58 = arith.constant 2 : index
    %c0_59 = arith.constant 0 : index
    %c0_60 = arith.constant 0 : index
    %99 = vector.load %arg10[%c2_58, %c0_59, %c0_60] : memref<3x1x64xf32, #tpu.memory_space<vmem>>, vector<1x1x64xf32>
    %100 = vector.shape_cast %99 : vector<1x1x64xf32> to vector<1x64xf32>
    %101 = vector.broadcast %100 : vector<1x64xf32> to vector<8x64xf32>
    %102 = arith.addf %98, %101 : vector<8x64xf32>
    %cst_61 = arith.constant 0.000000e+00 : f32
    %103 = vector.broadcast %cst_61 : f32 to vector<8x64xf32>
    %104 = arith.maximumf %102, %103 : vector<8x64xf32>
    %105 = arith.truncf %104 : vector<8x64xf32> to vector<8x64xbf16>
    %c2_62 = arith.constant 2 : index
    %c0_63 = arith.constant 0 : index
    %c0_64 = arith.constant 0 : index
    %106 = vector.load %arg11[%c2_62, %c0_63, %c0_64] : memref<3x64x16xbf16, #tpu.memory_space<vmem>>, vector<1x64x16xbf16>
    %107 = vector.shape_cast %106 : vector<1x64x16xbf16> to vector<64x16xbf16>
    %cst_65 = arith.constant dense<0.000000e+00> : vector<8x16xf32>
    %108 = tpu.matmul %105, %107, %cst_65 {dimension_numbers = #tpu.dot_dimension_numbers<[1], [0], [0], [1], [0, 0, 1, 1], [], []>} : vector<8x64xbf16>, vector<64x16xbf16>, vector<8x16xf32> -> vector<8x16xf32>
    %c2_66 = arith.constant 2 : index
    %c0_67 = arith.constant 0 : index
    %c0_68 = arith.constant 0 : index
    %109 = vector.load %arg12[%c2_66, %c0_67, %c0_68] : memref<3x1x16xf32, #tpu.memory_space<vmem>>, vector<1x1x16xf32>
    %110 = vector.shape_cast %109 : vector<1x1x16xf32> to vector<1x16xf32>
    %111 = vector.broadcast %110 : vector<1x16xf32> to vector<8x16xf32>
    %112 = arith.addf %108, %111 : vector<8x16xf32>
    %c0_69 = arith.constant 0 : index
    %c0_70 = arith.constant 0 : index
    %113 = vector.load %arg2[%c0_69, %c0_70] : memref<8x1xi32, #tpu.memory_space<vmem>>, vector<8x1xi32>
    %c1_i32 = arith.constant 1 : i32
    %114 = vector.broadcast %c1_i32 : i32 to vector<8x1xi32>
    %115 = arith.cmpi eq, %113, %114 : vector<8x1xi32>
    %c2_i32 = arith.constant 2 : i32
    %116 = vector.broadcast %c2_i32 : i32 to vector<8x1xi32>
    %117 = arith.cmpi eq, %113, %116 : vector<8x1xi32>
    %c3_i32 = arith.constant 3 : i32
    %118 = vector.broadcast %c3_i32 : i32 to vector<8x1xi32>
    %119 = arith.cmpi eq, %113, %118 : vector<8x1xi32>
    %cst_71 = arith.constant 0.000000e+00 : f32
    %120 = vector.broadcast %cst_71 : f32 to vector<8x16xf32>
    %121 = vector.shape_cast %119 : vector<8x1xi1> to vector<8x1xi1>
    %122 = vector.broadcast %121 : vector<8x1xi1> to vector<8x16xi1>
    %123 = arith.select %122, %112, %120 : vector<8x16xi1>, vector<8x16xf32>
    %124 = vector.shape_cast %117 : vector<8x1xi1> to vector<8x1xi1>
    %125 = vector.broadcast %124 : vector<8x1xi1> to vector<8x16xi1>
    %126 = arith.select %125, %80, %123 : vector<8x16xi1>, vector<8x16xf32>
    %127 = vector.shape_cast %115 : vector<8x1xi1> to vector<8x1xi1>
    %128 = vector.broadcast %127 : vector<8x1xi1> to vector<8x16xi1>
    %129 = arith.select %128, %48, %126 : vector<8x16xi1>, vector<8x16xf32>
    %130 = arith.mulf %129, %129 : vector<8x16xf32>
    %cst_72 = arith.constant dense<0.000000e+00> : vector<8xf32>
    %131 = vector.multi_reduction <add>, %130, %cst_72 [1] : vector<8x16xf32> to vector<8xf32>
    %132 = vector.shape_cast %131 : vector<8xf32> to vector<8x1xf32>
    %133 = math.sqrt %132 : vector<8x1xf32>
    %cst_73 = arith.constant 9.99999996E-13 : f32
    %134 = vector.broadcast %cst_73 : f32 to vector<8x1xf32>
    %135 = arith.maximumf %133, %134 : vector<8x1xf32>
    %136 = vector.broadcast %135 : vector<8x1xf32> to vector<8x16xf32>
    %137 = arith.divf %129, %136 : vector<8x16xf32>
    %c0_74 = arith.constant 0 : index
    %c0_75 = arith.constant 0 : index
    %c0_76 = arith.constant 0 : index
    %138 = vector.load %arg3[%c0_74, %c0_75, %c0_76] : memref<2x8x176xf32, #tpu.memory_space<vmem>>, vector<2x8x176xf32>
    %139 = vector.shape_cast %138 : vector<2x8x176xf32> to vector<16x176xf32>
    %140 = arith.truncf %139 : vector<16x176xf32> to vector<16x176xbf16>
    %c0_77 = arith.constant 0 : index
    %c0_78 = arith.constant 0 : index
    %141 = vector.load %arg13[%c0_77, %c0_78] : memref<176x16xbf16, #tpu.memory_space<vmem>>, vector<176x16xbf16>
    %cst_79 = arith.constant dense<0.000000e+00> : vector<16x16xf32>
    %142 = tpu.matmul %140, %141, %cst_79 {dimension_numbers = #tpu.dot_dimension_numbers<[1], [0], [0], [1], [0, 0, 1, 1], [], []>} : vector<16x176xbf16>, vector<176x16xbf16>, vector<16x16xf32> -> vector<16x16xf32>
    %c0_80 = arith.constant 0 : index
    %c0_81 = arith.constant 0 : index
    %143 = vector.load %arg14[%c0_80, %c0_81] : memref<1x16xf32, #tpu.memory_space<vmem>>, vector<1x16xf32>
    %144 = vector.broadcast %143 : vector<1x16xf32> to vector<16x16xf32>
    %145 = arith.addf %142, %144 : vector<16x16xf32>
    %cst_82 = arith.constant 0.000000e+00 : f32
    %146 = vector.broadcast %cst_82 : f32 to vector<16x16xf32>
    %147 = arith.maximumf %145, %146 : vector<16x16xf32>
    %148 = arith.mulf %147, %147 : vector<16x16xf32>
    %cst_83 = arith.constant dense<0.000000e+00> : vector<16xf32>
    %149 = vector.multi_reduction <add>, %148, %cst_83 [1] : vector<16x16xf32> to vector<16xf32>
    %150 = vector.shape_cast %149 : vector<16xf32> to vector<16x1xf32>
    %151 = math.sqrt %150 : vector<16x1xf32>
    %cst_84 = arith.constant 9.99999996E-13 : f32
    %152 = vector.broadcast %cst_84 : f32 to vector<16x1xf32>
    %153 = arith.maximumf %151, %152 : vector<16x1xf32>
    %154 = vector.broadcast %153 : vector<16x1xf32> to vector<16x16xf32>
    %155 = arith.divf %147, %154 : vector<16x16xf32>
    %156 = vector.extract_strided_slice %155 {offsets = [0, 0], sizes = [8, 16], strides = [1, 1]} : vector<16x16xf32> to vector<8x16xf32>
    %157 = vector.extract_strided_slice %155 {offsets = [8, 0], sizes = [8, 16], strides = [1, 1]} : vector<16x16xf32> to vector<8x16xf32>
    %158 = arith.mulf %137, %156 : vector<8x16xf32>
    %cst_85 = arith.constant dense<0.000000e+00> : vector<8xf32>
    %159 = vector.multi_reduction <add>, %158, %cst_85 [1] : vector<8x16xf32> to vector<8xf32>
    %160 = vector.shape_cast %159 : vector<8xf32> to vector<8x1xf32>
    %161 = arith.mulf %137, %157 : vector<8x16xf32>
    %cst_86 = arith.constant dense<0.000000e+00> : vector<8xf32>
    %162 = vector.multi_reduction <add>, %161, %cst_86 [1] : vector<8x16xf32> to vector<8xf32>
    %163 = vector.shape_cast %162 : vector<8xf32> to vector<8x1xf32>
    %164 = tpu.concatenate %160, %163 in 1 : vector<8x1xf32>, vector<8x1xf32> -> vector<8x2xf32>
    %c0_87 = arith.constant 0 : index
    %c0_88 = arith.constant 0 : index
    %165 = vector.load %arg15[%c0_87, %c0_88] : memref<8x2xf32, #tpu.memory_space<vmem>>, vector<8x2xf32>
    tpu.vector_store %arg15[%c0_87, %c0_88], %164 {strides = array<i32>} : memref<8x2xf32, #tpu.memory_space<vmem>>, vector<8x2xf32>,
    return
  }
  func.func @transform_0(%arg0: i32) -> (i32, i32) {
    %c0_i32 = arith.constant 0 : i32
    %c0_i32_0 = arith.constant 0 : i32
    return %arg0, %c0_i32 : i32, i32
  }
  func.func @transform_1(%arg0: i32) -> (i32, i32) {
    %c0_i32 = arith.constant 0 : i32
    %c0_i32_0 = arith.constant 0 : i32
    return %arg0, %c0_i32 : i32, i32
  }
  func.func @transform_2(%arg0: i32) -> (i32, i32, i32) {
    %c0_i32 = arith.constant 0 : i32
    %c0_i32_0 = arith.constant 0 : i32
    %c0_i32_1 = arith.constant 0 : i32
    return %c0_i32, %arg0, %c0_i32_0 : i32, i32, i32
  }
  func.func @transform_3(%arg0: i32) -> (i32, i32) {
    %c0_i32 = arith.constant 0 : i32
    %c0_i32_0 = arith.constant 0 : i32
    %c0_i32_1 = arith.constant 0 : i32
    return %c0_i32, %c0_i32_0 : i32, i32
  }
  func.func @transform_4(%arg0: i32) -> (i32, i32) {
    %c0_i32 = arith.constant 0 : i32
    %c0_i32_0 = arith.constant 0 : i32
    %c0_i32_1 = arith.constant 0 : i32
    return %c0_i32, %c0_i32_0 : i32, i32
  }
  func.func @transform_5(%arg0: i32) -> (i32, i32) {
    %c0_i32 = arith.constant 0 : i32
    %c0_i32_0 = arith.constant 0 : i32
    %c0_i32_1 = arith.constant 0 : i32
    return %c0_i32, %c0_i32_0 : i32, i32
  }
  func.func @transform_6(%arg0: i32) -> (i32, i32) {
    %c0_i32 = arith.constant 0 : i32
    %c0_i32_0 = arith.constant 0 : i32
    %c0_i32_1 = arith.constant 0 : i32
    return %c0_i32, %c0_i32_0 : i32, i32
  }
  func.func @transform_7(%arg0: i32) -> (i32, i32) {
    %c0_i32 = arith.constant 0 : i32
    %c0_i32_0 = arith.constant 0 : i32
    %c0_i32_1 = arith.constant 0 : i32
    return %c0_i32, %c0_i32_0 : i32, i32
  }
  func.func @transform_8(%arg0: i32) -> (i32, i32, i32) {
    %c0_i32 = arith.constant 0 : i32
    %c0_i32_0 = arith.constant 0 : i32
    %c0_i32_1 = arith.constant 0 : i32
    %c0_i32_2 = arith.constant 0 : i32
    return %c0_i32, %c0_i32_0, %c0_i32_1 : i32, i32, i32
  }
  func.func @transform_9(%arg0: i32) -> (i32, i32, i32) {
    %c0_i32 = arith.constant 0 : i32
    %c0_i32_0 = arith.constant 0 : i32
    %c0_i32_1 = arith.constant 0 : i32
    %c0_i32_2 = arith.constant 0 : i32
    return %c0_i32, %c0_i32_0, %c0_i32_1 : i32, i32, i32
  }
  func.func @transform_10(%arg0: i32) -> (i32, i32, i32) {
    %c0_i32 = arith.constant 0 : i32
    %c0_i32_0 = arith.constant 0 : i32
    %c0_i32_1 = arith.constant 0 : i32
    %c0_i32_2 = arith.constant 0 : i32
    return %c0_i32, %c0_i32_0, %c0_i32_1 : i32, i32, i32
  }
  func.func @transform_11(%arg0: i32) -> (i32, i32, i32) {
    %c0_i32 = arith.constant 0 : i32
    %c0_i32_0 = arith.constant 0 : i32
    %c0_i32_1 = arith.constant 0 : i32
    %c0_i32_2 = arith.constant 0 : i32
    return %c0_i32, %c0_i32_0, %c0_i32_1 : i32, i32, i32
  }
  func.func @transform_12(%arg0: i32) -> (i32, i32) {
    %c0_i32 = arith.constant 0 : i32
    %c0_i32_0 = arith.constant 0 : i32
    %c0_i32_1 = arith.constant 0 : i32
    return %c0_i32, %c0_i32_0 : i32, i32
  }
  func.func @transform_13(%arg0: i32) -> (i32, i32) {
    %c0_i32 = arith.constant 0 : i32
    %c0_i32_0 = arith.constant 0 : i32
    %c0_i32_1 = arith.constant 0 : i32
    return %c0_i32, %c0_i32_0 : i32, i32
  }
  func.func @transform_14(%arg0: i32) -> (i32, i32) {
    %c0_i32 = arith.constant 0 : i32
    %c0_i32_0 = arith.constant 0 : i32
    return %arg0, %c0_i32 : i32, i32
  }
}

</mosaic_0001>

<bundles_post_ra>
// kernel: tpu_custom_call.1
= control target key start
LH: loop header
LB: loop body
LE: loop exit
PB: predicated region body
PF: predicated region fallthrough
CT: control target
= control target key end

     0   :  { %19 = vsyncpa [#allocation3], 0  ;;  %s11244_s0 = inlined_call_operand.hbm [shape: f32[8,128], index: 0, kind: input, shape index: {}]   ;;  %s11245_s1 = inlined_call_operand.vmem [shape: s32[8,1], index: 1, kind: input, shape index: {}]   ;;  %s11246_s2 = inlined_call_operand.hbm [shape: f32[2,8,176], index: 2, kind: input, shape index: {}]   ;;  %s11247_s3 = inlined_call_operand.vmem [shape: bf16[128,1072], index: 3, kind: input, shape index: {}]   ;;  %s11248_s4 = inlined_call_operand.hbm [shape: f32[1,1024], index: 4, kind: input, shape index: {}]   ;;  %s11249_s5 = inlined_call_operand.hbm [shape: bf16[1024,1024], index: 5, kind: input, shape index: {}]   ;;  %s11250_s6 = inlined_call_operand.hbm [shape: f32[1,1024], index: 6, kind: input, shape index: {}]   ;;  %s11251_s7 = inlined_call_operand.hbm [shape: bf16[16,1024], index: 7, kind: input, shape index: {}]   ;;  %s11252_s8 = inlined_call_operand.vmem [shape: bf16[3,1024,64], index: 8, kind: input, shape index: {}]   ;;  %s11253_s9 = inlined_call_operand.hbm [shape: f32[3,1,64], index: 9, kind: input, shape index: {}]   ;;  %s11254_s10 = inlined_call_operand.vmem [shape: bf16[3,64,16], index: 10, kind: input, shape index: {}]   ;;  %s11255_s11 = inlined_call_operand.hbm [shape: f32[3,1,16], index: 11, kind: input, shape index: {}]   ;;  %s11256_s12 = inlined_call_operand.vmem [shape: bf16[176,16], index: 12, kind: input, shape index: {}]   ;;  %s11257_s13 = inlined_call_operand.hbm [shape: f32[1,16], index: 13, kind: input, shape index: {}]   ;;  %s11258_s14 = inlined_call_operand.vmem [shape: f32[8,2], index: 14, kind: output, shape index: {}]  }
   0x1   :  { %20 = vsyncpa [#allocation5], 0 }
   0x2   :  { %21 = vsyncpa [#allocation8], 0 }
   0x3   :  { %22 = vsyncpa [#allocation11], 0 }
   0x4   :  { %23 = vsyncpa [#allocation14], 0  ;;  %s9834_s29 = smov [#allocation4]  }
   0x5   :  { %s41_s30 = sshll.u32 %s9834_s29, 4  ;;  %s42_s30 = int_to_ptr.vmem [resolvable:$true] %s41_s30 }
   0x6   :  { %s9652_s15 = scalar_lea.vmem %s42_s30, 512  ;;  %p9657_p1 = scmp.lt.s32.totalorder %s42_s30, %s42_s30 }
   0x7   :  { %p9653_p0 = scmp.ne.s32.totalorder %s42_s30, %s9652_s15  ;;  %p9658_p2 = scmp.lt.s32.totalorder %s9652_s15, %s9652_s15 }
   0x9   :  { %p9659_p3 = por %p9658_p2, %p9657_p1 }
   0xb   :  { %p9660_p4 = pnand %p9659_p3, %p9653_p0 }
   0xd   :  { %9663 = shalt.err (!%p9660_p4)
}
   0xe   :  { %s9835_s16 = smov 256   ;;  %s9836_s17 = smov 16  }
   0xf   :  { %47 = dma.hbm_to_vmem [thread:$0]  %s11246_s2, 512, %s42_s30, [#allocation5], %s9835_s16, %s9835_s16, %s9836_s17  }
  0x10   :  { %s9837_s20 = smov [#allocation7]  }
  0x11   :  { %s65_s21 = sshll.u32 %s9837_s20, 4  ;;  %s66_s21 = int_to_ptr.vmem [resolvable:$true] %s65_s21 }
  0x12   :  { %s9672_s22 = scalar_lea.vmem %s66_s21, 65536  ;;  %p9677_p6 = scmp.lt.s32.totalorder %s66_s21, %s66_s21 }
  0x13   :  { %p9673_p5 = scmp.ne.s32.totalorder %s66_s21, %s9672_s22  ;;  %p9678_p7 = scmp.lt.s32.totalorder %s9672_s22, %s9672_s22 }
  0x15   :  { %p9679_p8 = por %p9678_p7, %p9677_p6 }
  0x17   :  { %p9680_p9 = pnand %p9679_p8, %p9673_p5 }
  0x19   :  { %9683 = shalt.err (!%p9680_p9)
}
  0x1a   :  { %s9838_s23 = smov 512   ;;  %s9839_s24 = smov 32  }
  0x1b   :  { %71 = dma.hbm_to_vmem [thread:$0]  %s11249_s5, 65536, %s66_s21, [#allocation8], %s9838_s23, %s9838_s23, %s9839_s24  }
  0x1c   :  { %s9840_s27 = smov [#allocation10]   ;;  %s9841_s2 = smov [#allocation13]  }
  0x1d   :  { %s87_s28 = sshll.u32 %s9840_s27, 4  ;;  %s115_s29 = sshll.u32 %s9841_s2, 4  ;;  %s88_s28 = int_to_ptr.vmem [resolvable:$true] %s87_s28  ;;  %s116_s29 = int_to_ptr.vmem [resolvable:$true] %s115_s29 }
  0x1e   :  { %s9692_s30 = scalar_lea.vmem %s88_s28, 1024  ;;  %p9697_p11 = scmp.lt.s32.totalorder %s88_s28, %s88_s28 }
  0x1f   :  { %p9693_p10 = scmp.ne.s32.totalorder %s88_s28, %s9692_s30  ;;  %p9698_p12 = scmp.lt.s32.totalorder %s9692_s30, %s9692_s30 }
  0x21   :  { %p9699_p13 = por %p9698_p12, %p9697_p11 }
  0x23   :  { %p9700_p0 = pnand %p9699_p13, %p9693_p10 }
  0x25   :  { %9703 = shalt.err (!%p9700_p0)
}
  0x26   :  { %93 = dma.hbm_to_vmem [thread:$0]  %s11251_s7, 1024, %s88_s28, [#allocation11], %s9838_s23, %s9838_s23, %s9839_s24  }
  0x27   :  { %s9712_s18 = scalar_lea.vmem %s116_s29, 48  ;;  %s9716_s5 = scalar_lea.vmem %s116_s29, 64 }
  0x28   :  { %p9713_p1 = scmp.ne.s32.totalorder %s116_s29, %s9712_s18  ;;  %p9717_p2 = scmp.lt.s32.totalorder %s116_s29, %s116_s29 }
  0x29   :  { %p9718_p3 = scmp.lt.s32.totalorder %s9716_s5, %s9712_s18 }
  0x2b   :  { %p9719_p4 = por %p9718_p3, %p9717_p2 }
  0x2d   :  { %p9720_p5 = pnand %p9719_p4, %p9713_p1 }
  0x2f   :  { %9723 = shalt.err (!%p9720_p5)
}
  0x30   :  { %s9842_s19 = smov 1   ;;  %s9843_s22 = smov [#allocation2]  }
  0x31   :  { %121 = dma.hbm_to_vmem [thread:$0]  %s11255_s11, 48, %s116_s29, [#allocation14], %s9836_s17, %s9836_s17, %s9842_s19  }
  0x32   :  { %s30_s25 = sshll.u32 %s9843_s22, 4  ;;  %s9844_s7 = smov [#allocation6]   ;;  %s31_s25 = int_to_ptr.vmem [resolvable:$true] %s30_s25 }
  0x33   :  { %s56_s23 = sshll.u32 %s9844_s7, 4  ;;  %s9732_s24 = scalar_lea.vmem %s31_s25, 128  ;;  %s57_s23 = int_to_ptr.vmem [resolvable:$true] %s56_s23 }
  0x34   :  { %p9733_p6 = scmp.ne.s32.totalorder %s31_s25, %s9732_s24  ;;  %p9737_p7 = scmp.lt.s32.totalorder %s31_s25, %s31_s25 }
  0x35   :  { %p9738_p8 = scmp.lt.s32.totalorder %s9732_s24, %s9732_s24 }
  0x37   :  { %p9739_p9 = por %p9738_p8, %p9737_p7 }
  0x39   :  { %p9740_p10 = pnand %p9739_p9, %p9733_p6 }
  0x3b   :  { %9743 = shalt.err (!%p9740_p10)
}
  0x3c   :  { %33 = dma.hbm_to_vmem [thread:$0]  %s11244_s0, 128, %s31_s25, [#allocation3]  }
  0x3d   :  { %s9752_s28 = scalar_lea.vmem %s57_s23, 128  ;;  %p9757_p12 = scmp.lt.s32.totalorder %s57_s23, %s57_s23 }
  0x3e   :  { %p9753_p11 = scmp.ne.s32.totalorder %s57_s23, %s9752_s28  ;;  %p9758_p13 = scmp.lt.s32.totalorder %s9752_s28, %s9752_s28 }
  0x40   :  { %p9759_p0 = por %p9758_p13, %p9757_p12 }
  0x42   :  { %p9760_p1 = pnand %p9759_p0, %p9753_p11 }
  0x44   :  { %9763 = shalt.err (!%p9760_p1)
}
  0x45   :  { %59 = dma.hbm_to_vmem [thread:$0]  %s11248_s4, 128, %s57_s23, [#allocation5]  }
  0x46   :  { %s9845_s29 = smov [#allocation9]   ;;  %s9846_s15 = smov [#allocation12]  }
  0x47   :  { %s78_s30 = sshll.u32 %s9845_s29, 4  ;;  %s101_s16 = sshll.u32 %s9846_s15, 4  ;;  %s79_s30 = int_to_ptr.vmem [resolvable:$true] %s78_s30  ;;  %s102_s16 = int_to_ptr.vmem [resolvable:$true] %s101_s16 }
  0x48   :  { %s9772_s18 = scalar_lea.vmem %s79_s30, 128  ;;  %p9777_p3 = scmp.lt.s32.totalorder %s79_s30, %s79_s30 }
  0x49   :  { %p9773_p2 = scmp.ne.s32.totalorder %s79_s30, %s9772_s18  ;;  %p9778_p4 = scmp.lt.s32.totalorder %s9772_s18, %s9772_s18 }
  0x4b   :  { %p9779_p5 = por %p9778_p4, %p9777_p3 }
  0x4d   :  { %p9780_p6 = pnand %p9779_p5, %p9773_p2 }
  0x4f   :  { %9783 = shalt.err (!%p9780_p6)
}
  0x50   :  { %81 = dma.hbm_to_vmem [thread:$0]  %s11250_s6, 128, %s79_s30, [#allocation8]  }
  0x51   :  { %s9792_s20 = scalar_lea.vmem %s102_s16, 48  ;;  %s9796_s4 = scalar_lea.vmem %s102_s16, 64 }
  0x52   :  { %p9793_p7 = scmp.ne.s32.totalorder %s102_s16, %s9792_s20  ;;  %p9797_p8 = scmp.lt.s32.totalorder %s102_s16, %s102_s16 }
  0x53   :  { %p9798_p9 = scmp.lt.s32.totalorder %s9796_s4, %s9792_s20 }
  0x55   :  { %p9799_p10 = por %p9798_p9, %p9797_p8 }
  0x57   :  { %p9800_p11 = pnand %p9799_p10, %p9793_p7 }
  0x59   :  { %9803 = shalt.err (!%p9800_p11)
}
  0x5a   :  { %107 = dma.hbm_to_vmem [thread:$0]  %s11253_s9, 48, %s102_s16, [#allocation11], %s9836_s17, %s9836_s17, %s9842_s19  }
  0x5b   :  { %s9847_s25 = smov [#allocation15]  }
  0x5c   :  { %s130_s7 = sshll.u32 %s9847_s25, 4  ;;  %s131_s7 = int_to_ptr.vmem [resolvable:$true] %s130_s7 }
  0x5d   :  { %s9812_s6 = scalar_lea.vmem %s131_s7, 16  ;;  %s9816_s23 = scalar_lea.vmem %s131_s7, 32 }
  0x5e   :  { %p9813_p12 = scmp.ne.s32.totalorder %s131_s7, %s9812_s6  ;;  %p9817_p13 = scmp.lt.s32.totalorder %s131_s7, %s131_s7 }
  0x5f   :  { %p9818_p0 = scmp.lt.s32.totalorder %s9816_s23, %s9812_s6 }
  0x61   :  { %p9819_p1 = por %p9818_p0, %p9817_p13 }
  0x63   :  { %p9820_p2 = pnand %p9819_p1, %p9813_p12 }
  0x65   :  { %9823 = shalt.err (!%p9820_p2)
}
  0x66   :  { %133 = dma.hbm_to_vmem [thread:$0]  %s11257_s13, 16, %s131_s7, [#allocation14]  }
  0x67   :  { %9824 = dma.done.wait [#allocation3], 128  }
  0x68   :  { %9825 = vsyncadd [#allocation3], 4294967168 }
  0x69   :  { %9826 = dma.done.wait [#allocation5], 640  }
  0x6a   :  { %9827 = vsyncadd [#allocation5], 4294966656 }
  0x6b   :  { %9828 = dma.done.wait [#allocation8], 65664  }
  0x6c   :  { %9829 = vsyncadd [#allocation8], 4294901632 }
  0x6d   :  { %9830 = dma.done.wait [#allocation11], 1072  }
  0x6e   :  { %9831 = vsyncadd [#allocation11], 4294966224 }
  0x6f   :  { %9832 = dma.done.wait [#allocation14], 64  }
  0x70   :  { %9833 = vsyncadd [#allocation14], 4294967232  ;;  %v9848_v0 = vmov 0   ;;  %v9300_v1 = vld [vmem:[%s11247_s3 + $0x1fc] ss:$36 sps:$4 sm:$0xff]   ;;  %vm9850_vm0 = vmmov 0  }
  0x71   :  { %644 = vmatprep.mubr.bf16.mxu0 %v9848_v0  ;;  %685 = vmatprep.mubr.bf16.mxu1 %v9848_v0  ;;  %v9302_v2 = vld [vmem:[%s11247_s3 + $0x204] ss:$36 sps:$4 sm:$0xff]   ;;  %v9304_v3 = vld [vmem:[%s11247_s3 + $0x1f8] ss:$36 sps:$4 sm:$0xff]   ;;  %v9310_v7 = vld [vmem:[%s11247_s3 + $0x1b0] ss:$36 sps:$4 sm:$0xff]  }
  0x72   :  { %9298 = vset.pattern.permute.xlu0 %v9848_v0  ;;  %9299 = vset.pattern.permute.xlu1 %v9848_v0  ;;  %v9305_v4 = vld [vmem:[%s11247_s3 + $0x200] ss:$36 sps:$4 sm:$0xff]   ;;  %v9306_v5 = vld [vmem:[%s11247_s3 + $0x1b4] ss:$36 sps:$4 sm:$0xff]   ;;  %v9312_v9 = vld [vmem:[%s11247_s3 + $0x16c] ss:$36 sps:$4 sm:$0xff]  }
  0x73   :  { %612 = vmatprep.subr.bf16.mxu0 %v9300_v1  ;;  %653 = vmatprep.subr.bf16.mxu1 %v9302_v2  ;;  %v9308_v6 = vld [vmem:[%s11247_s3 + $0x1bc] ss:$36 sps:$4 sm:$0xff]   ;;  %v9314_v10 = vld [vmem:[%s11247_s3 + $0x174] ss:$36 sps:$4 sm:$0xff]   ;;  %v9316_v11 = vld [vmem:[%s11247_s3 + $0x168] ss:$36 sps:$4 sm:$0xff]  }
  0x74   :  { %613 = vmatpush1.bf16.msra.mxu0 %v9304_v3  ;;  %654 = vmatpush1.bf16.msra.mxu1 %v9305_v4  ;;  %v9311_v8 = vld [vmem:[%s11247_s3 + $0x1b8] ss:$36 sps:$4 sm:$0xff]   ;;  %v9317_v12 = vld [vmem:[%s11247_s3 + $0x170] ss:$36 sps:$4 sm:$0xff]   ;;  %v9318_v13 = vld [vmem:[%s11247_s3 + $0x124] ss:$36 sps:$4 sm:$0xff]  }
  0x75   :  { %614 = vmatprep.subr.bf16.mxu0 %v9306_v5  ;;  %655 = vmatprep.subr.bf16.mxu1 %v9308_v6  ;;  %v9320_v14 = vld [vmem:[%s11247_s3 + $0x12c] ss:$36 sps:$4 sm:$0xff]   ;;  %v9322_v15 = vld [vmem:[%s11247_s3 + $0x120] ss:$36 sps:$4 sm:$0xff]   ;;  %v9328_v19 = vld [vmem:[%s11247_s3 + $0xd8] ss:$36 sps:$4 sm:$0xff]  }
  0x76   :  { %v9323_v16 = vld [vmem:[%s11247_s3 + $0x128] ss:$36 sps:$4 sm:$0xff]   ;;  %v9324_v17 = vld [vmem:[%s11247_s3 + $0xdc] ss:$36 sps:$4 sm:$0xff]   ;;  %v9330_v21 = vld [vmem:[%s11247_s3 + $0x94] ss:$36 sps:$4 sm:$0xff]  }
  0x77   :  { %v9326_v18 = vld [vmem:[%s11247_s3 + $0xe4] ss:$36 sps:$4 sm:$0xff]   ;;  %v9332_v22 = vld [vmem:[%s11247_s3 + $0x9c] ss:$36 sps:$4 sm:$0xff]   ;;  %v9334_v23 = vld [vmem:[%s11247_s3 + $0x90] ss:$36 sps:$4 sm:$0xff]  }
  0x78   :  { %615 = vmatpush1.bf16.msra.mxu0 %v9310_v7  ;;  %656 = vmatpush1.bf16.msra.mxu1 %v9311_v8  ;;  %v9329_v20 = vld [vmem:[%s11247_s3 + $0xe0] ss:$36 sps:$4 sm:$0xff]   ;;  %v9335_v24 = vld [vmem:[%s11247_s3 + $0x98] ss:$36 sps:$4 sm:$0xff]   ;;  %v9336_v25 = vld [vmem:[%s11247_s3 + $0x4c] ss:$36 sps:$4 sm:$0xff]  }
  0x79   :  { %616 = vmatprep.subr.bf16.mxu0 %v9312_v9  ;;  %657 = vmatprep.subr.bf16.mxu1 %v9314_v10  ;;  %v9338_v26 = vld [vmem:[%s11247_s3 + $0x54] ss:$36 sps:$4 sm:$0xff]   ;;  %v9340_v27 = vld [vmem:[%s11247_s3 + $0x48] ss:$36 sps:$4 sm:$0xff]   ;;  %v9346_v31 = vld [vmem:[%s11247_s3] ss:$36 sps:$4 sm:$0xff]  }
  0x7a   :  { %v9341_v28 = vld [vmem:[%s11247_s3 + $0x50] ss:$36 sps:$4 sm:$0xff]   ;;  %v9342_v29 = vld [vmem:[%s11247_s3 + $0x4] ss:$36 sps:$4 sm:$0xff]   ;;  %v9356_v42 = vld [vmem:[%s11247_s3 + $0x17c] ss:$36 sps:$4 sm:$0xff]  }
  0x7b   :  { %v9344_v30 = vld [vmem:[%s11247_s3 + $0xc] ss:$36 sps:$4 sm:$0xff]   ;;  %v162_v33 = vld [vmem:[#allocation2] sm:$0xff]  ;;  %v9371_v38 = vld [vmem:[%s11247_s3 + $0x214] ss:$36 sps:$4 sm:$0xff]   ;;  %v9849_v10 = vmov 0.0  }
  0x7c   :  { %617 = vmatpush1.bf16.msra.mxu0 %v9316_v11  ;;  %658 = vmatpush1.bf16.msra.mxu1 %v9317_v12  ;;  %v9347_v32 = vld [vmem:[%s11247_s3 + $0x8] ss:$36 sps:$4 sm:$0xff]   ;;  %v10068_v36 = vpack.c.bf16 %v162_v33, %v162_v33  ;;  %v9369_v37 = vld [vmem:[%s11247_s3 + $0x210] ss:$36 sps:$4 sm:$0xff]   ;;  %v9351_v40 = vld [vmem:[%s11247_s3 + $0x1c0] ss:$36 sps:$4 sm:$0xff]  }
  0x7d   :  { %618 = vmatprep.subr.bf16.mxu0 %v9318_v13  ;;  %659 = vmatprep.subr.bf16.mxu1 %v9320_v14  ;;  %v9350_v34 = vld [vmem:[%s11247_s3 + $0x20c] ss:$36 sps:$4 sm:$0xff]   ;;  %v9353_v39 = vld [vmem:[%s11247_s3 + $0x1c4] ss:$36 sps:$4 sm:$0xff]   ;;  %v9354_v45 = vld [vmem:[%s11247_s3 + $0x178] ss:$36 sps:$4 sm:$0xff]  }
  0x7e   :  { %v9348_v35 = vld [vmem:[%s11247_s3 + $0x208] ss:$36 sps:$4 sm:$0xff]   ;;  %v9379_v46 = vld [vmem:[%s11247_s3 + $0x180] ss:$36 sps:$4 sm:$0xff]   ;;  %v9359_v47 = vld [vmem:[%s11247_s3 + $0x134] ss:$36 sps:$4 sm:$0xff]  }
  0x7f   :  { %v9377_v41 = vld [vmem:[%s11247_s3 + $0x1cc] ss:$36 sps:$4 sm:$0xff]   ;;  %v9381_v44 = vld [vmem:[%s11247_s3 + $0x184] ss:$36 sps:$4 sm:$0xff]   ;;  %v9385_v48 = vld [vmem:[%s11247_s3 + $0x13c] ss:$36 sps:$4 sm:$0xff]  }
  0x80   :  { %619 = vmatpush1.bf16.msra.mxu0 %v9322_v15  ;;  %660 = vmatpush1.bf16.msra.mxu1 %v9323_v16  ;;  %v9375_v43 = vld [vmem:[%s11247_s3 + $0x1c8] ss:$36 sps:$4 sm:$0xff]   ;;  %v9357_v49 = vld [vmem:[%s11247_s3 + $0x130] ss:$36 sps:$4 sm:$0xff]   ;;  %v9383_v51 = vld [vmem:[%s11247_s3 + $0x138] ss:$36 sps:$4 sm:$0xff]  }
  0x81   :  { %620 = vmatprep.subr.bf16.mxu0 %v9324_v17  ;;  %661 = vmatprep.subr.bf16.mxu1 %v9326_v18  ;;  %v9362_v50 = vld [vmem:[%s11247_s3 + $0xec] ss:$36 sps:$4 sm:$0xff]   ;;  %v9389_v52 = vld [vmem:[%s11247_s3 + $0xf4] ss:$36 sps:$4 sm:$0xff]   ;;  %v9365_v54 = vld [vmem:[%s11247_s3 + $0xa4] ss:$36 sps:$4 sm:$0xff]  }
  0x82   :  { %v9360_v53 = vld [vmem:[%s11247_s3 + $0xe8] ss:$36 sps:$4 sm:$0xff]   ;;  %v9387_v55 = vld [vmem:[%s11247_s3 + $0xf0] ss:$36 sps:$4 sm:$0xff]   ;;  %v9363_v57 = vld [vmem:[%s11247_s3 + $0xa0] ss:$36 sps:$4 sm:$0xff]  }
  0x83   :  { %v9393_v56 = vld [vmem:[%s11247_s3 + $0xac] ss:$36 sps:$4 sm:$0xff]   ;;  %v9368_v59 = vld [vmem:[%s11247_s3 + $0x5c] ss:$36 sps:$4 sm:$0xff]   ;;  %v9397_v60 = vld [vmem:[%s11247_s3 + $0x64] ss:$36 sps:$4 sm:$0xff]  }
  0x84   :  { %621 = vmatpush1.bf16.msra.mxu0 %v9328_v19  ;;  %662 = vmatpush1.bf16.msra.mxu1 %v9329_v20  ;;  %v9391_v58 = vld [vmem:[%s11247_s3 + $0xa8] ss:$36 sps:$4 sm:$0xff]   ;;  %v9366_v61 = vld [vmem:[%s11247_s3 + $0x58] ss:$36 sps:$4 sm:$0xff]   ;;  %v9395_v62 = vld [vmem:[%s11247_s3 + $0x60] ss:$36 sps:$4 sm:$0xff]  }
  0x85   :  { %622 = vmatprep.subr.bf16.mxu0 %v9330_v21  ;;  %663 = vmatprep.subr.bf16.mxu1 %v9332_v22  ;;  %v9374_v63 = vld [vmem:[%s11247_s3 + $0x14] ss:$36 sps:$4 sm:$0xff]   ;;  %v9401_v1 = vld [vmem:[%s11247_s3 + $0x1c] ss:$36 sps:$4 sm:$0xff]   ;;  %v9386_v19 = vld [vmem:[%s11247_s3 + $0x188] ss:$36 sps:$4 sm:$0xff]  }
  0x86   :  { %v938_v2 = vld [vmem:[#allocation7 + $0x1c0] sm:$0xff]  ;;  %v9399_v5 = vld [vmem:[%s11247_s3 + $0x18] ss:$36 sps:$4 sm:$0xff]   ;;  %vm5660_vm1 = vcmask 261248   ;;  %vm4652_vm2 = vcmask 130048   ;;  %vm6630_vm3 = vcmask 392448  }
  0x87   :  { %v942_v3 = vld [vmem:[#allocation7 + $0x1e0] sm:$0xff]  ;;  %v9378_v9 = vld [vmem:[%s11247_s3 + $0x218] ss:$36 sps:$4 sm:$0xff]   ;;  %s9852_s7 = smov 96   ;;  %vm5616_vm4 = vcmask 523264   ;;  %vm7737_vm5 = vcmask 392192  }
  0x88   :  { %623 = vmatpush1.bf16.msra.mxu0 %v9334_v23  ;;  %664 = vmatpush1.bf16.msra.mxu1 %v9335_v24  ;;  %v9372_v4 = vld [vmem:[%s11247_s3 + $0x10] ss:$36 sps:$4 sm:$0xff]   ;;  %v7962_v6 = vcombine.high %v938_v2, %v942_v3  ;;  %v7961_v11 = vcombine.low %v938_v2, %v942_v3  ;;  %v9390_v24 = vld [vmem:[%s11247_s3 + $0x140] ss:$36 sps:$4 sm:$0xff]  }
  0x89   :  { %624 = vmatprep.subr.bf16.mxu0 %v9336_v25  ;;  %665 = vmatprep.subr.bf16.mxu1 %v9338_v26  ;;  %v930_v7 = vld [vmem:[#allocation7 + $0x180] sm:$0xff] }
  0x8a   :  { %v934_v8 = vld [vmem:[#allocation7 + $0x1a0] sm:$0xff] }
  0x8b   :  { %v7954_v12 = vcombine.high %v930_v7, %v934_v8  ;;  %v922_v13 = vld [vmem:[#allocation7 + $0x140] sm:$0xff]  ;;  %v7953_v16 = vcombine.low %v930_v7, %v934_v8 }
  0x8c   :  { %625 = vmatpush1.bf16.msra.mxu0 %v9340_v27  ;;  %666 = vmatpush1.bf16.msra.mxu1 %v9341_v28  ;;  %v926_v14 = vld [vmem:[#allocation7 + $0x160] sm:$0xff] }
  0x8d   :  { %626 = vmatprep.subr.bf16.mxu0 %v9342_v29  ;;  %667 = vmatprep.subr.bf16.mxu1 %v9344_v30  ;;  %v9382_v15 = vld [vmem:[%s11247_s3 + $0x1d0] ss:$36 sps:$4 sm:$0xff]   ;;  %v7946_v20 = vcombine.high %v922_v13, %v926_v14  ;;  %v7945_v21 = vcombine.low %v922_v13, %v926_v14  ;;  %v9394_v29 = vld [vmem:[%s11247_s3 + $0xf8] ss:$36 sps:$4 sm:$0xff]  }
  0x8e   :  { %v914_v17 = vld [vmem:[#allocation7 + $0x100] sm:$0xff] }
  0x8f   :  { %v918_v18 = vld [vmem:[#allocation7 + $0x120] sm:$0xff] }
  0x90   :  { %627 = vmatpush1.bf16.msra.mxu0 %v9346_v31  ;;  %668 = vmatpush1.bf16.msra.mxu1 %v9347_v32  ;;  %v906_v22 = vld [vmem:[#allocation7 + $0xc0] sm:$0xff]  ;;  %v7938_v25 = vcombine.high %v914_v17, %v918_v18  ;;  %v7937_v26 = vcombine.low %v914_v17, %v918_v18 }
  0x91   :  { %694 = vmatprep.subr.bf16.mxu0 %v9350_v34  ;;  %735 = vmatprep.subr.bf16.mxu1 %v9371_v38  ;;  %v910_v23 = vld [vmem:[#allocation7 + $0xe0] sm:$0xff] }
  0x92   :  { %v898_v27 = vld [vmem:[#allocation7 + $0x80] sm:$0xff]  ;;  %v7930_v30 = vcombine.high %v906_v22, %v910_v23  ;;  %v7929_v31 = vcombine.low %v906_v22, %v910_v23 }
  0x93   :  { %645 = vmatmul.mubr.bf16.vlgmr.msra.gmra.mxu0 %v10068_v36  ;;  %686 = vmatmul.mubr.bf16.vlgmr.msra.gmra.mxu1 %v10068_v36  ;;  %v902_v28 = vld [vmem:[#allocation7 + $0xa0] sm:$0xff] }
  0x94   :  { %695 = vmatpush1.bf16.msra.mxu0 %v9348_v35  ;;  %736 = vmatpush1.bf16.msra.mxu1 %v9369_v37  ;;  %v890_v32 = vld [vmem:[#allocation7 + $0x40] sm:$0xff]  ;;  %v7922_v35 = vcombine.high %v898_v27, %v902_v28  ;;  %v7921_v37 = vcombine.low %v898_v27, %v902_v28 }
  0x95   :  { %696 = vmatprep.subr.bf16.mxu0 %v9353_v39  ;;  %737 = vmatprep.subr.bf16.mxu1 %v9377_v41  ;;  %v894_v33 = vld [vmem:[#allocation7 + $0x60] sm:$0xff] }
  0x96   :  { %726 = vmatprep.mubr.bf16.mxu0 %v9848_v0  ;;  %767 = vmatprep.mubr.bf16.mxu1 %v9848_v0  ;;  %v9398_v34 = vld [vmem:[%s11247_s3 + $0xb0] ss:$36 sps:$4 sm:$0xff]   ;;  %v7914_v41 = vcombine.high %v890_v32, %v894_v33 }
  0x97   :  { %v882_v38 = vld [vmem:[#allocation7] sm:$0xff] }
  0x98   :  { %697 = vmatpush1.bf16.msra.mxu0 %v9351_v40  ;;  %738 = vmatpush1.bf16.msra.mxu1 %v9375_v43  ;;  %v886_v39 = vld [vmem:[#allocation7 + $0x20] sm:$0xff]  ;;  %v9402_v40 = vld [vmem:[%s11247_s3 + $0x68] ss:$36 sps:$4 sm:$0xff]  }
  0x99   :  { %698 = vmatprep.subr.bf16.mxu0 %v9356_v42  ;;  %739 = vmatprep.subr.bf16.mxu1 %v9381_v44  ;;  %v1066_v42 = vld [vmem:[#allocation7 + $0x5c0] sm:$0xff]  ;;  %v7913_v44 = vcombine.low %v890_v32, %v894_v33 }
  0x9a   :  { %v1070_v43 = vld [vmem:[#allocation7 + $0x5e0] sm:$0xff] }
  0x9b   :  { %v1042_v3 = vld [vmem:[#allocation7 + $0x500] sm:$0xff] }
  0x9c   :  { %699 = vmatpush1.bf16.msra.mxu0 %v9354_v45  ;;  %740 = vmatpush1.bf16.msra.mxu1 %v9379_v46  ;;  %v1002_v45 = vld [vmem:[#allocation7 + $0x3c0] sm:$0xff] }
  0x9d   :  { %700 = vmatprep.subr.bf16.mxu0 %v9359_v47  ;;  %741 = vmatprep.subr.bf16.mxu1 %v9385_v48  ;;  %v1006_v46 = vld [vmem:[#allocation7 + $0x3e0] sm:$0xff]  ;;  %v9403_v47 = vld [vmem:[%s11247_s3 + $0x20] ss:$36 sps:$4 sm:$0xff]   ;;  %v7906_v48 = vcombine.high %v882_v38, %v886_v39  ;;  %s9851_s3 = smov 112  }
  0x9e   :  { %v982_v8 = vld [vmem:[#allocation7 + $0x320] sm:$0xff] }
  0x9f   :  { %v970_v14 = vld [vmem:[#allocation7 + $0x2c0] sm:$0xff] }
  0xa0   :  { %701 = vmatpush1.bf16.msra.mxu0 %v9357_v49  ;;  %742 = vmatpush1.bf16.msra.mxu1 %v9383_v51  ;;  %v1058_v49 = vld [vmem:[#allocation7 + $0x580] sm:$0xff]  ;;  %v8090_v51 = vcombine.high %v1066_v42, %v1070_v43 }
  0xa1   :  { %702 = vmatprep.subr.bf16.mxu0 %v9362_v50  ;;  %743 = vmatprep.subr.bf16.mxu1 %v9389_v52  ;;  %v1062_v50 = vld [vmem:[#allocation7 + $0x5a0] sm:$0xff]  ;;  %v7905_v52 = vcombine.low %v882_v38, %v886_v39 }
  0xa2   :  { %v10203_v17 = vld [vmem:[#allocation7 + $0x9e0] sm:$0xff] }
  0xa3   :  { %v10205_v18 = vld [vmem:[#allocation7 + $0xdc0] sm:$0xff] }
  0xa4   :  { %703 = vmatpush1.bf16.msra.mxu0 %v9360_v53  ;;  %744 = vmatpush1.bf16.msra.mxu1 %v9387_v55  ;;  %v994_v53 = vld [vmem:[#allocation7 + $0x380] sm:$0xff] }
  0xa5   :  { %704 = vmatprep.subr.bf16.mxu0 %v9365_v54  ;;  %745 = vmatprep.subr.bf16.mxu1 %v9393_v56  ;;  %v8026_v54 = vcombine.high %v1002_v45, %v1006_v46  ;;  %v998_v55 = vld [vmem:[#allocation7 + $0x3a0] sm:$0xff]  ;;  %v8089_v56 = vcombine.low %v1066_v42, %v1070_v43 }
  0xa6   :  { %v1030_v27 = vld [vmem:[#allocation7 + $0x4a0] sm:$0xff] }
  0xa7   :  { %v954_v38 = vld [vmem:[#allocation7 + $0x240] sm:$0xff] }
  0xa8   :  { %705 = vmatpush1.bf16.msra.mxu0 %v9363_v57  ;;  %746 = vmatpush1.bf16.msra.mxu1 %v9391_v58  ;;  %v8082_v57 = vcombine.high %v1058_v49, %v1062_v50  ;;  %v1050_v58 = vld [vmem:[#allocation7 + $0x540] sm:$0xff] }
  0xa9   :  { %706 = vmatprep.subr.bf16.mxu0 %v9368_v59  ;;  %747 = vmatprep.subr.bf16.mxu1 %v9397_v60  ;;  %v8025_v59 = vcombine.low %v1002_v45, %v1006_v46  ;;  %v1054_v60 = vld [vmem:[#allocation7 + $0x560] sm:$0xff] }
  0xaa   :  { %v8074_v2 = vcombine.high %v1050_v58, %v1054_v60  ;;  %v958_v39 = vld [vmem:[#allocation7 + $0x260] sm:$0xff] }
  0xab   :  { %v1010_v43 = vld [vmem:[#allocation7 + $0x400] sm:$0xff]  ;;  %v7978_v45 = vcombine.high %v954_v38, %v958_v39 }
  0xac   :  { %707 = vmatpush1.bf16.msra.mxu0 %v9366_v61  ;;  %748 = vmatpush1.bf16.msra.mxu1 %v9395_v62  ;;  %v8018_v61 = vcombine.high %v994_v53, %v998_v55  ;;  %v986_v62 = vld [vmem:[#allocation7 + $0x340] sm:$0xff] }
  0xad   :  { %708 = vmatprep.subr.bf16.mxu0 %v9374_v63  ;;  %749 = vmatprep.subr.bf16.mxu1 %v9401_v1  ;;  %v990_v63 = vld [vmem:[#allocation7 + $0x360] sm:$0xff]  ;;  %v8081_v1 = vcombine.low %v1058_v49, %v1062_v50  ;;  %v7977_v50 = vcombine.low %v954_v38, %v958_v39 }
  0xae   :  { %v8010_v7 = vcombine.high %v986_v62, %v990_v63  ;;  %v946_v46 = vld [vmem:[#allocation7 + $0x200] sm:$0xff] }
  0xb0   :  { %709 = vmatpush1.bf16.msra.mxu0 %v9372_v4  ;;  %750 = vmatpush1.bf16.msra.mxu1 %v9399_v5  ;;  %v1046_v4 = vld [vmem:[#allocation7 + $0x520] sm:$0xff]  ;;  %v8017_v5 = vcombine.low %v994_v53, %v998_v55 }
  0xb1   :  { %9223 = vmatprep.subr.bf16.mxu0 %v9849_v10  ;;  %3996 = vmatprep.subr.bf16.mxu1 %v7962_v6  ;;  %v978_v6 = vld [vmem:[#allocation7 + $0x300] sm:$0xff]  ;;  %v8066_v13 = vcombine.high %v1042_v3, %v1046_v4  ;;  %v8065_v23 = vcombine.low %v1042_v3, %v1046_v4 }
  0xb2   :  { %v1106_v3 = vld [vmem:[#allocation7 + $0x700] sm:$0xff] }
  0xb3   :  { %727 = vmatmul.mubr.bf16.vlgmr.msra.gmra.mxu0 %v10068_v36  ;;  %768 = vmatmul.mubr.bf16.vlgmr.msra.gmra.mxu1 %v10068_v36  ;;  %v1110_v4 = vld [vmem:[#allocation7 + $0x720] sm:$0xff] }
  0xb4   :  { %9224 = vmatpush3.bf16.msra.mxu0 %v9378_v9  ;;  %9239 = vmatprep.mubr.msk.bf16.mxu0 %vm9850_vm0, %v9849_v10  ;;  %v8073_v9 = vcombine.low %v1050_v58, %v1054_v60  ;;  %v1126_v58 = vld [vmem:[#allocation7 + $0x7a0] sm:$0xff] }
  0xb5   :  { %9225 = vmatprep.subr.bf16.mxu0 %v9849_v10  ;;  %3997 = vmatpush1.bf16.msra.mxu1 %v7961_v11  ;;  %v1034_v11 = vld [vmem:[#allocation7 + $0x4c0] sm:$0xff] }
  0xb6   :  { %3998 = vmatprep.subr.bf16.mxu1 %v7954_v12  ;;  %v1038_v12 = vld [vmem:[#allocation7 + $0x4e0] sm:$0xff] }
  0xb8   :  { %9226 = vmatpush3.bf16.msra.mxu0 %v9382_v15  ;;  %v974_v15 = vld [vmem:[#allocation7 + $0x2e0] sm:$0xff] }
  0xb9   :  { %9227 = vmatprep.subr.bf16.mxu0 %v9849_v10  ;;  %3999 = vmatpush1.bf16.msra.mxu1 %v7953_v16  ;;  %v10201_v16 = vld [vmem:[#allocation7 + $0x9c0] sm:$0xff]  ;;  %v7994_v28 = vcombine.high %v970_v14, %v974_v15  ;;  %v7993_v33 = vcombine.low %v970_v14, %v974_v15 }
  0xba   :  { %4000 = vmatprep.subr.bf16.mxu1 %v7946_v20  ;;  %v10207_v20 = vld [vmem:[#allocation7 + $0xde0] sm:$0xff] }
  0xbb   :  { %v8345_v22 = vcombine.low %v10205_v18, %v10207_v20  ;;  %v1082_v15 = vld [vmem:[#allocation7 + $0x640] sm:$0xff] }
  0xbc   :  { %9228 = vmatpush3.bf16.msra.mxu0 %v9386_v19  ;;  %v8002_v19 = vcombine.high %v978_v6, %v982_v8 }
  0xbd   :  { %9229 = vmatprep.subr.bf16.mxu0 %v9849_v10  ;;  %4001 = vmatpush1.bf16.msra.mxu1 %v7945_v21  ;;  %v8217_v21 = vcombine.low %v10201_v16, %v10203_v17 }
  0xbe   :  { %4002 = vmatprep.subr.bf16.mxu1 %v7938_v25  ;;  %v8001_v25 = vcombine.low %v978_v6, %v982_v8  ;;  %v8130_v6 = vcombine.high %v1106_v3, %v1110_v4  ;;  %v1102_v8 = vld [vmem:[#allocation7 + $0x6e0] sm:$0xff] }
  0xc0   :  { %9230 = vmatpush3.bf16.msra.mxu0 %v9390_v24  ;;  %v8058_v24 = vcombine.high %v1034_v11, %v1038_v12 }
  0xc1   :  { %9231 = vmatprep.subr.bf16.mxu0 %v9849_v10  ;;  %4003 = vmatpush1.bf16.msra.mxu1 %v7937_v26  ;;  %v1026_v26 = vld [vmem:[#allocation7 + $0x480] sm:$0xff] }
  0xc2   :  { %4004 = vmatprep.subr.bf16.mxu1 %v7930_v30  ;;  %v966_v30 = vld [vmem:[#allocation7 + $0x2a0] sm:$0xff]  ;;  %v8050_v32 = vcombine.high %v1026_v26, %v1030_v27 }
  0xc4   :  { %9232 = vmatpush3.bf16.msra.mxu0 %v9394_v29  ;;  %v962_v29 = vld [vmem:[#allocation7 + $0x280] sm:$0xff] }
  0xc5   :  { %9233 = vmatprep.subr.bf16.mxu0 %v9849_v10  ;;  %4005 = vmatpush1.bf16.msra.mxu1 %v7929_v31  ;;  %v8057_v31 = vcombine.low %v1034_v11, %v1038_v12  ;;  %v7985_v42 = vcombine.low %v962_v29, %v966_v30  ;;  %v1090_v12 = vld [vmem:[#allocation7 + $0x680] sm:$0xff] }
  0xc6   :  { %4006 = vmatprep.subr.bf16.mxu1 %v7922_v35  ;;  %v1022_v35 = vld [vmem:[#allocation7 + $0x460] sm:$0xff] }
  0xc8   :  { %9234 = vmatpush3.bf16.msra.mxu0 %v9398_v34  ;;  %v1018_v34 = vld [vmem:[#allocation7 + $0x440] sm:$0xff] }
  0xc9   :  { %9235 = vmatprep.subr.bf16.mxu0 %v9849_v10  ;;  %4007 = vmatpush1.bf16.msra.mxu1 %v7921_v37  ;;  %v7986_v37 = vcombine.high %v962_v29, %v966_v30  ;;  %v8346_v30 = vcombine.high %v10205_v18, %v10207_v20  ;;  %v1162_v18 = vld [vmem:[#allocation7 + $0x8c0] sm:$0xff] }
  0xca   :  { %4008 = vmatprep.subr.bf16.mxu1 %v7914_v41  ;;  %v8042_v41 = vcombine.high %v1018_v34, %v1022_v35  ;;  %v1166_v20 = vld [vmem:[#allocation7 + $0x8e0] sm:$0xff] }
  0xcc   :  { %9236 = vmatpush3.bf16.msra.mxu0 %v9402_v40  ;;  %v8049_v40 = vcombine.low %v1026_v26, %v1030_v27  ;;  %v1078_v26 = vld [vmem:[#allocation7 + $0x620] sm:$0xff] }
  0xcd   :  { %9237 = vmatprep.subr.bf16.mxu0 %v9849_v10  ;;  %4009 = vmatpush1.bf16.msra.mxu1 %v7913_v44  ;;  %v1014_v44 = vld [vmem:[#allocation7 + $0x420] sm:$0xff] }
  0xce   :  { %4010 = vmatprep.subr.bf16.mxu1 %v7906_v48  ;;  %v8041_v48 = vcombine.low %v1018_v34, %v1022_v35  ;;  %v8034_v49 = vcombine.high %v1010_v43, %v1014_v44 }
  0xd0   :  { %9238 = vmatpush3.bf16.msra.mxu0 %v9403_v47  ;;  %v950_v47 = vld [vmem:[#allocation7 + $0x220] sm:$0xff] }
  0xd1   :  { %4037 = vmatprep.subr.bf16.mxu0 %v8090_v51  ;;  %4011 = vmatpush1.bf16.msra.mxu1 %v7905_v52  ;;  %v1130_v51 = vld [vmem:[#allocation7 + $0x7c0] sm:$0xff]  ;;  %v7970_v53 = vcombine.high %v946_v46, %v950_v47 }
  0xd2   :  { %4012 = vmatprep.subr.bf16.mxu1 %v8026_v54  ;;  %v1134_v52 = vld [vmem:[#allocation7 + $0x7e0] sm:$0xff]  ;;  %v8033_v54 = vcombine.low %v1010_v43, %v1014_v44 }
  0xd3   :  { %9240 = vmatmul.mubr.bf16.vlgmr.msra.gmra.mxu0 %v10068_v36  ;;  %v8009_v36 = vcombine.low %v986_v62, %v990_v63  ;;  %v8154_v55 = vcombine.high %v1130_v51, %v1134_v52  ;;  %v8153_v60 = vcombine.low %v1130_v51, %v1134_v52  ;;  %v1114_v62 = vld [vmem:[#allocation7 + $0x740] sm:$0xff] }
  0xd4   :  { %4038 = vmatpush1.bf16.msra.mxu0 %v8089_v56  ;;  %v7969_v56 = vcombine.low %v946_v46, %v950_v47  ;;  %v1118_v63 = vld [vmem:[#allocation7 + $0x760] sm:$0xff] }
  0xd5   :  { %4039 = vmatprep.subr.bf16.mxu0 %v8082_v57  ;;  %4013 = vmatpush2.bf16.msra.mxu1 %v8025_v59  ;;  %v1122_v57 = vld [vmem:[#allocation7 + $0x780] sm:$0xff]  ;;  %v8218_v59 = vcombine.high %v10201_v16, %v10203_v17 }
  0xd6   :  { %4014 = vmatprep.subr.bf16.mxu1 %v8018_v61  ;;  %v8146_v61 = vcombine.high %v1122_v57, %v1126_v58 }
  0xd8   :  { %4040 = vmatpush1.bf16.msra.mxu0 %v8081_v1  ;;  %v8145_v1 = vcombine.low %v1122_v57, %v1126_v58 }
  0xd9   :  { %4041 = vmatprep.subr.bf16.mxu0 %v8074_v2  ;;  %4015 = vmatpush2.bf16.msra.mxu1 %v8017_v5  ;;  %v8138_v2 = vcombine.high %v1114_v62, %v1118_v63  ;;  %v8137_v5 = vcombine.low %v1114_v62, %v1118_v63 }
  0xda   :  { %4016 = vmatprep.subr.bf16.mxu1 %v8010_v7  ;;  %v1098_v7 = vld [vmem:[#allocation7 + $0x6c0] sm:$0xff] }
  0xdb   :  { %v8122_v11 = vcombine.high %v1098_v7, %v1102_v8 }
  0xdc   :  { %4042 = vmatpush1.bf16.msra.mxu0 %v8073_v9  ;;  %v8129_v9 = vcombine.low %v1106_v3, %v1110_v4 }
  0xdd   :  { %4043 = vmatprep.subr.bf16.mxu0 %v8066_v13  ;;  %4017 = vmatpush2.bf16.msra.mxu1 %v8009_v36  ;;  %v1094_v13 = vld [vmem:[#allocation7 + $0x6a0] sm:$0xff]  ;;  %v8121_v36 = vcombine.low %v1098_v7, %v1102_v8 }
  0xde   :  { %4018 = vmatprep.subr.bf16.mxu1 %v8002_v19  ;;  %v8114_v14 = vcombine.high %v1090_v12, %v1094_v13  ;;  %v1086_v19 = vld [vmem:[#allocation7 + $0x660] sm:$0xff] }
  0xdf   :  { %v8105_v27 = vcombine.low %v1082_v15, %v1086_v19  ;;  %v1182_v7 = vld [vmem:[#allocation7 + $0x960] sm:$0xff] }
  0xe0   :  { %4044 = vmatpush1.bf16.msra.mxu0 %v8065_v23  ;;  %v8113_v23 = vcombine.low %v1090_v12, %v1094_v13  ;;  %v1306_v8 = vld [vmem:[#allocation7 + $0xd40] sm:$0xff] }
  0xe1   :  { %4045 = vmatprep.subr.bf16.mxu0 %v8058_v24  ;;  %4019 = vmatpush2.bf16.msra.mxu1 %v8001_v25  ;;  %v8106_v24 = vcombine.high %v1082_v15, %v1086_v19  ;;  %v1074_v25 = vld [vmem:[#allocation7 + $0x600] sm:$0xff] }
  0xe2   :  { %4020 = vmatprep.subr.bf16.mxu1 %v7994_v28  ;;  %v8098_v28 = vcombine.high %v1074_v25, %v1078_v26  ;;  %v8097_v29 = vcombine.low %v1074_v25, %v1078_v26  ;;  %v1170_v13 = vld [vmem:[#allocation7 + $0x900] sm:$0xff] }
  0xe3   :  { %v1174_v15 = vld [vmem:[#allocation7 + $0x920] sm:$0xff] }
  0xe4   :  { %4046 = vmatpush1.bf16.msra.mxu0 %v8057_v31  ;;  %v818_v31 = vlaneseq  ;;  %v1298_v19 = vld [vmem:[#allocation7 + $0xd00] sm:$0xff]  ;;  %v8194_v16 = vcombine.high %v1170_v13, %v1174_v15  ;;  %v8193_v26 = vcombine.low %v1170_v13, %v1174_v15 }
  0xe5   :  { %4047 = vmatprep.subr.bf16.mxu0 %v8050_v32  ;;  %4021 = vmatpush2.bf16.msra.mxu1 %v7993_v33  ;;  %v10219_v33 = vld [vmem:[#allocation6] sm:$0xff] }
  0xe6   :  { %4022 = vmatprep.subr.bf16.mxu1 %v7986_v37  ;;  %v10217_v32 = vshrl.u32 %v818_v31, 7  ;;  %v1158_v31 = vld [vmem:[#allocation7 + $0x8a0] sm:$0xff] }
  0xe8   :  { %4048 = vmatpush1.bf16.msra.mxu0 %v8049_v40  ;;  %v828_v34 = vsub.s32 2, %v10217_v32  ;;  %v824_v35 = vsub.s32 1, %v10217_v32  ;;  %v820_v37 = vsub.s32 0, %v10217_v32  ;;  %v832_v38 = vsub.s32 3, %v10217_v32 }
  0xe9   :  { %4049 = vmatprep.subr.bf16.mxu0 %v8042_v41  ;;  %4023 = vmatpush2.bf16.msra.mxu1 %v7985_v42 }
  0xea   :  { %4024 = vmatprep.subr.bf16.mxu1 %v7978_v45  ;;  %v821_v39 = vrot.slane %v10219_v33, %v820_v37  ;;  %v829_v40 = vrot.slane %v10219_v33, %v828_v34  ;;  %v825_v41 = vrot.slane %v10219_v33, %v824_v35  ;;  %v833_v42 = vrot.slane %v10219_v33, %v832_v38 }
  0xec   :  { %4050 = vmatpush1.bf16.msra.mxu0 %v8041_v48 }
  0xed   :  { %4051 = vmatprep.subr.bf16.mxu0 %v8034_v49  ;;  %4025 = vmatpush2.bf16.msra.mxu1 %v7977_v50 }
  0xee   :  { %4026 = vmatprep.subr.bf16.mxu1 %v7970_v53 }
  0xf0   :  { %4052 = vmatpush1.bf16.msra.mxu0 %v8033_v54  ;;  %v1186_v54 = vld [vmem:[#allocation7 + $0x980] sm:$0xff] }
  0xf1   :  { %4053 = vmatprep.subr.bf16.mxu0 %v8154_v55  ;;  %4027 = vmatpush2.bf16.msra.mxu1 %v7969_v56  ;;  %v1190_v55 = vld [vmem:[#allocation7 + $0x9a0] sm:$0xff] }
  0xf2   :  { %4078 = vmatprep.subr.bf16.mxu1 %v8218_v59  ;;  %v1314_v59 = vld [vmem:[#allocation7 + $0xd80] sm:$0xff]  ;;  %v8210_v4 = vcombine.high %v1186_v54, %v1190_v55 }
  0xf4   :  { %4054 = vmatpush2.bf16.msra.mxu0 %v8153_v60  ;;  %v1318_v60 = vld [vmem:[#allocation7 + $0xda0] sm:$0xff] }
  0xf5   :  { %4055 = vmatprep.subr.bf16.mxu0 %v8146_v61  ;;  %v8337_v12 = vcombine.low %v1314_v59, %v1318_v60 }
  0xf8   :  { %4056 = vmatpush2.bf16.msra.mxu0 %v8145_v1 }
  0xf9   :  { %4057 = vmatprep.subr.bf16.mxu0 %v8138_v2 }
  0xfc   :  { %4058 = vmatpush2.bf16.msra.mxu0 %v8137_v5  ;;  %v8338_v5 = vcombine.high %v1314_v59, %v1318_v60 }
  0xfd   :  { %4059 = vmatprep.subr.bf16.mxu0 %v8130_v6  ;;  %v1178_v6 = vld [vmem:[#allocation7 + $0x940] sm:$0xff] }
 0x100   :  { %4060 = vmatpush2.bf16.msra.mxu0 %v8129_v9  ;;  %v1310_v9 = vld [vmem:[#allocation7 + $0xd60] sm:$0xff] }
 0x101   :  { %4061 = vmatprep.subr.bf16.mxu0 %v8122_v11  ;;  %v8209_v11 = vcombine.low %v1186_v54, %v1190_v55  ;;  %v8329_v25 = vcombine.low %v1306_v8, %v1310_v9  ;;  %v1138_v55 = vld [vmem:[#allocation7 + $0x800] sm:$0xff] }
 0x104   :  { %4062 = vmatpush2.bf16.msra.mxu0 %v8121_v36  ;;  %v8202_v36 = vcombine.high %v1178_v6, %v1182_v7 }
 0x105   :  { %4063 = vmatprep.subr.bf16.mxu0 %v8114_v14  ;;  %v8330_v14 = vcombine.high %v1306_v8, %v1310_v9  ;;  %v1386_v8 = vld [vmem:[#allocation7 + $0xfc0] sm:$0xff] }
 0x108   :  { %4064 = vmatpush2.bf16.msra.mxu0 %v8113_v23  ;;  %v1302_v23 = vld [vmem:[#allocation7 + $0xd20] sm:$0xff] }
 0x109   :  { %4065 = vmatprep.subr.bf16.mxu0 %v8106_v24  ;;  %v8201_v24 = vcombine.low %v1178_v6, %v1182_v7  ;;  %v8322_v17 = vcombine.high %v1298_v19, %v1302_v23  ;;  %v1258_v6 = vld [vmem:[#allocation7 + $0xbc0] sm:$0xff] }
 0x10a   :  { %v1262_v7 = vld [vmem:[#allocation7 + $0xbe0] sm:$0xff] }
 0x10c   :  { %4066 = vmatpush2.bf16.msra.mxu0 %v8105_v27  ;;  %v8321_v27 = vcombine.low %v1298_v19, %v1302_v23 }
 0x10d   :  { %4067 = vmatprep.subr.bf16.mxu0 %v8098_v28  ;;  %v8186_v28 = vcombine.high %v1162_v18, %v1166_v20 }
 0x110   :  { %4068 = vmatpush2.bf16.msra.mxu0 %v8097_v29 }
 0x111   :  { %4119 = vmatprep.subr.bf16.mxu0 %v8346_v30  ;;  %v1154_v30 = vld [vmem:[#allocation7 + $0x880] sm:$0xff] }
 0x153   :  { %v646_v43 = vpop.f32.mrf.mxu0  ;;  %v687_v44 = vpop.f32.mrf.mxu1 }
 0x154   :  { %v858_v45 = vadd.f32 %v821_v39, %v646_v43  ;;  %v860_v46 = vadd.f32 %v829_v40, %v687_v44  ;;  %v1282_v39 = vld [vmem:[#allocation7 + $0xc80] sm:$0xff]  ;;  %v8178_v44 = vcombine.high %v1154_v30, %v1158_v31 }
 0x155   :  { %v648_v47 = vpop.f32.mrf.mxu0  ;;  %v689_v48 = vpop.f32.mrf.mxu1  ;;  %v1286_v40 = vld [vmem:[#allocation7 + $0xca0] sm:$0xff] }
 0x156   :  { %v866_v49 = vmax.f32 %v858_v45, 0.0  ;;  %v859_v50 = vadd.f32 %v825_v41, %v648_v47  ;;  %v861_v51 = vadd.f32 %v833_v42, %v689_v48  ;;  %v868_v52 = vmax.f32 %v860_v46, 0.0  ;;  %v1146_v43 = vld [vmem:[#allocation7 + $0x840] sm:$0xff] }
 0x157   :  { %v691_v53 = vpop.f32.mrf.mxu1  ;;  %v650_v56 = vpop.f32.mrf.mxu0  ;;  %v8185_v41 = vcombine.low %v1162_v18, %v1166_v20  ;;  %v8306_v45 = vcombine.high %v1282_v39, %v1286_v40  ;;  %v1150_v46 = vld [vmem:[#allocation7 + $0x860] sm:$0xff] }
 0x158   :  { %v867_v57 = vmax.f32 %v859_v50, 0.0  ;;  %v869_v58 = vmax.f32 %v861_v51, 0.0  ;;  %v10237_v61 = vpack.c.bf16 %v866_v49, %v866_v49  ;;  %v10243_v3 = vpack.c.bf16 %v868_v52, %v868_v52  ;;  %v1274_v47 = vld [vmem:[#allocation7 + $0xc40] sm:$0xff] }
 0x159   :  { %v692_v62 = vpop.f32.mrf.mxu1  ;;  %v651_v63 = vpop.f32.mrf.mxu0  ;;  %v1278_v48 = vld [vmem:[#allocation7 + $0xc60] sm:$0xff]  ;;  %v840_v49 = vsub.s32 5, %v10217_v32  ;;  %v848_v50 = vsub.s32 7, %v10217_v32  ;;  %v8177_v51 = vcombine.low %v1154_v30, %v1158_v31  ;;  %v8305_v52 = vcombine.low %v1282_v39, %v1286_v40 }
 0x15a   :  { %v10239_v1 = vpack.c.bf16 %v867_v57, %v867_v57  ;;  %v10241_v2 = vpack.c.bf16 %v869_v58, %v869_v58  ;;  %v8170_v53 = vcombine.high %v1146_v43, %v1150_v46  ;;  %v8298_v54 = vcombine.high %v1274_v47, %v1278_v48  ;;  %v1142_v56 = vld [vmem:[#allocation7 + $0x820] sm:$0xff] }
 0x15b   :  { %v1266_v57 = vld [vmem:[#allocation7 + $0xc00] sm:$0xff]  ;;  %v8169_v59 = vcombine.low %v1146_v43, %v1150_v46  ;;  %v8297_v60 = vcombine.low %v1274_v47, %v1278_v48  ;;  %v841_v62 = vrot.slane %v10219_v33, %v840_v49  ;;  %v849_v63 = vrot.slane %v10219_v33, %v848_v50 }
 0x15c   :  { %4028 = vmatprep.mubr.bf16.mxu1 %v10239_v1  ;;  %4069 = vmatprep.mubr.bf16.mxu0 %v10241_v2  ;;  %v1270_v58 = vld [vmem:[#allocation7 + $0xc20] sm:$0xff]  ;;  %v8161_v13 = vcombine.low %v1138_v55, %v1142_v56 }
 0x15d   :  { %4029 = vmatmul.mubr.bf16.vlgmr.msra.gmra.mxu1 %v10237_v61  ;;  %4070 = vmatmul.mubr.bf16.vlgmr.msra.gmra.mxu0 %v10243_v3  ;;  %v8289_v15 = vcombine.low %v1266_v57, %v1270_v58  ;;  %v1242_v43 = vld [vmem:[#allocation7 + $0xb40] sm:$0xff] }
 0x15e   :  { %4079 = vmatpush1.bf16.msra.mxu1 %v8217_v21  ;;  %4120 = vmatpush1.bf16.msra.mxu0 %v8345_v22  ;;  %v1290_v21 = vld [vmem:[#allocation7 + $0xcc0] sm:$0xff] }
 0x15f   :  { %4080 = vmatprep.subr.bf16.mxu1 %v8210_v4  ;;  %4121 = vmatprep.subr.bf16.mxu0 %v8338_v5  ;;  %v1294_v22 = vld [vmem:[#allocation7 + $0xce0] sm:$0xff]  ;;  %v8162_v4 = vcombine.high %v1138_v55, %v1142_v56  ;;  %v8290_v5 = vcombine.high %v1266_v57, %v1270_v58 }
 0x160   :  { %v8314_v29 = vcombine.high %v1290_v21, %v1294_v22  ;;  %v8313_v42 = vcombine.low %v1290_v21, %v1294_v22  ;;  %v1378_v21 = vld [vmem:[#allocation7 + $0xf80] sm:$0xff] }
 0x161   :  { %v1382_v22 = vld [vmem:[#allocation7 + $0xfa0] sm:$0xff] }
 0x162   :  { %4081 = vmatpush1.bf16.msra.mxu1 %v8209_v11  ;;  %4122 = vmatpush1.bf16.msra.mxu0 %v8337_v12  ;;  %v1390_v12 = vld [vmem:[#allocation7 + $0xfe0] sm:$0xff]  ;;  %v8401_v48 = vcombine.low %v1378_v21, %v1382_v22 }
 0x163   :  { %4082 = vmatprep.subr.bf16.mxu1 %v8202_v36  ;;  %4123 = vmatprep.subr.bf16.mxu0 %v8330_v14  ;;  %v8409_v31 = vcombine.low %v1386_v8, %v1390_v12  ;;  %v1374_v46 = vld [vmem:[#allocation7 + $0xf60] sm:$0xff] }
 0x164   :  { %v1362_v55 = vld [vmem:[#allocation7 + $0xf00] sm:$0xff] }
 0x165   :  { %v1366_v56 = vld [vmem:[#allocation7 + $0xf20] sm:$0xff] }
 0x166   :  { %4083 = vmatpush1.bf16.msra.mxu1 %v8201_v24  ;;  %4124 = vmatpush1.bf16.msra.mxu0 %v8329_v25  ;;  %v8282_v24 = vcombine.high %v1258_v6, %v1262_v7  ;;  %v8410_v25 = vcombine.high %v1386_v8, %v1390_v12 }
 0x167   :  { %4084 = vmatprep.subr.bf16.mxu1 %v8194_v16  ;;  %4125 = vmatprep.subr.bf16.mxu0 %v8322_v17  ;;  %v1250_v16 = vld [vmem:[#allocation7 + $0xb80] sm:$0xff] }
 0x168   :  { %v1254_v17 = vld [vmem:[#allocation7 + $0xba0] sm:$0xff] }
 0x169   :  { %v8273_v47 = vcombine.low %v1250_v16, %v1254_v17 }
 0x16a   :  { %4085 = vmatpush1.bf16.msra.mxu1 %v8193_v26  ;;  %4126 = vmatpush1.bf16.msra.mxu0 %v8321_v27 }
 0x16b   :  { %4086 = vmatprep.subr.bf16.mxu1 %v8186_v28  ;;  %4127 = vmatprep.subr.bf16.mxu0 %v8314_v29  ;;  %v8281_v28 = vcombine.low %v1258_v6, %v1262_v7  ;;  %v8385_v7 = vcombine.low %v1362_v55, %v1366_v56 }
 0x16e   :  { %4087 = vmatpush1.bf16.msra.mxu1 %v8185_v41  ;;  %4128 = vmatpush1.bf16.msra.mxu0 %v8313_v42  ;;  %v8274_v41 = vcombine.high %v1250_v16, %v1254_v17  ;;  %v8402_v42 = vcombine.high %v1378_v21, %v1382_v22  ;;  %v1338_v21 = vld [vmem:[#allocation7 + $0xe40] sm:$0xff] }
 0x16f   :  { %4088 = vmatprep.subr.bf16.mxu1 %v8178_v44  ;;  %4129 = vmatprep.subr.bf16.mxu0 %v8306_v45  ;;  %v1246_v44 = vld [vmem:[#allocation7 + $0xb60] sm:$0xff] }
 0x170   :  { %v1370_v45 = vld [vmem:[#allocation7 + $0xf40] sm:$0xff]  ;;  %v8265_v57 = vcombine.low %v1242_v43, %v1246_v44 }
 0x171   :  { %v8393_v58 = vcombine.low %v1370_v45, %v1374_v46  ;;  %v1342_v22 = vld [vmem:[#allocation7 + $0xe60] sm:$0xff] }
 0x172   :  { %4089 = vmatpush1.bf16.msra.mxu1 %v8177_v51  ;;  %4130 = vmatpush1.bf16.msra.mxu0 %v8305_v52  ;;  %v8266_v51 = vcombine.high %v1242_v43, %v1246_v44  ;;  %v8394_v52 = vcombine.high %v1370_v45, %v1374_v46  ;;  %v1330_v43 = vld [vmem:[#allocation7 + $0xe00] sm:$0xff] }
 0x173   :  { %4090 = vmatprep.subr.bf16.mxu1 %v8170_v53  ;;  %4131 = vmatprep.subr.bf16.mxu0 %v8298_v54  ;;  %v10263_v9 = vpop.f32.mrf.mxu0  ;;  %v10265_v11 = vpop.f32.mrf.mxu1  ;;  %v1234_v53 = vld [vmem:[#allocation7 + $0xb00] sm:$0xff] }
 0x174   :  { %v1238_v54 = vld [vmem:[#allocation7 + $0xb20] sm:$0xff] }
 0x175   :  { %v730_v36 = vpop.f32.mrf.mxu0  ;;  %v771_v14 = vpop.f32.mrf.mxu1  ;;  %v8257_v6 = vcombine.low %v1234_v53, %v1238_v54  ;;  %v1334_v44 = vld [vmem:[#allocation7 + $0xe20] sm:$0xff] }
 0x176   :  { %4091 = vmatpush1.bf16.msra.mxu1 %v8169_v59  ;;  %4132 = vmatpush1.bf16.msra.mxu0 %v8297_v60  ;;  %v863_v19 = vadd.f32 %v841_v62, %v730_v36  ;;  %v865_v23 = vadd.f32 %v849_v63, %v771_v14  ;;  %v8258_v59 = vcombine.high %v1234_v53, %v1238_v54  ;;  %v1226_v62 = vld [vmem:[#allocation7 + $0xac0] sm:$0xff]  ;;  %v939_v53 = vld [vmem:[#allocation7 + $0x1c8] sm:$0xff] }
 0x177   :  { %4092 = vmatprep.subr.bf16.mxu1 %v8162_v4  ;;  %4133 = vmatprep.subr.bf16.mxu0 %v8290_v5  ;;  %v732_v18 = vpop.f32.mrf.mxu0  ;;  %v773_v20 = vpop.f32.mrf.mxu1  ;;  %v8386_v60 = vcombine.high %v1362_v55, %v1366_v56  ;;  %v1230_v63 = vld [vmem:[#allocation7 + $0xae0] sm:$0xff]  ;;  %v943_v55 = vld [vmem:[#allocation7 + $0x1e8] sm:$0xff] }
 0x178   :  { %v871_v26 = vmax.f32 %v863_v19, 0.0  ;;  %v873_v27 = vmax.f32 %v865_v23, 0.0  ;;  %v1354_v4 = vld [vmem:[#allocation7 + $0xec0] sm:$0xff]  ;;  %v8250_v8 = vcombine.high %v1226_v62, %v1230_v63  ;;  %v836_v19 = vsub.s32 4, %v10217_v32  ;;  %v1067_v56 = vld [vmem:[#allocation7 + $0x5c8] sm:$0xff] }
 0x179   :  { %v733_v29 = vpop.f32.mrf.mxu0  ;;  %v774_v30 = vpop.f32.mrf.mxu1  ;;  %v1358_v5 = vld [vmem:[#allocation7 + $0xee0] sm:$0xff]  ;;  %v8249_v23 = vcombine.low %v1226_v62, %v1230_v63  ;;  %v7964_v63 = vcombine.high %v939_v53, %v943_v55 }
 0x17a   :  { %4093 = vmatpush1.bf16.msra.mxu1 %v8161_v13  ;;  %4134 = vmatpush1.bf16.msra.mxu0 %v8289_v15  ;;  %v10267_v39 = vpack.c.bf16 %v871_v26, %v871_v26  ;;  %v10269_v40 = vpack.c.bf16 %v873_v27, %v873_v27  ;;  %v8378_v12 = vcombine.high %v1354_v4, %v1358_v5  ;;  %v1218_v13 = vld [vmem:[#allocation7 + $0xa80] sm:$0xff] }
 0x17b   :  { %4094 = vmatprep.subr.bf16.mxu1 %v8282_v24  ;;  %4135 = vmatprep.subr.bf16.mxu0 %v8410_v25  ;;  %v1222_v36 = vld [vmem:[#allocation7 + $0xaa0] sm:$0xff]  ;;  %v8377_v24 = vcombine.low %v1354_v4, %v1358_v5  ;;  %v844_v25 = vsub.s32 6, %v10217_v32  ;;  %v837_v26 = vrot.slane %v10219_v33, %v836_v19 }
 0x17c   :  { %4151 = vmatprep.mubr.bf16.mxu0 %v10269_v40  ;;  %4110 = vmatprep.mubr.bf16.mxu1 %v10267_v39  ;;  %v1346_v14 = vld [vmem:[#allocation7 + $0xe80] sm:$0xff]  ;;  %v8242_v16 = vcombine.high %v1218_v13, %v1222_v36  ;;  %v8241_v27 = vcombine.low %v1218_v13, %v1222_v36  ;;  %v1063_v13 = vld [vmem:[#allocation7 + $0x5a8] sm:$0xff] }
 0x17d   :  { %v1350_v15 = vld [vmem:[#allocation7 + $0xea0] sm:$0xff]  ;;  %v845_v29 = vrot.slane %v10219_v33, %v844_v25  ;;  %v862_v45 = vadd.f32 %v837_v26, %v10263_v9 }
 0x17e   :  { %4095 = vmatpush2.bf16.msra.mxu1 %v8281_v28  ;;  %4136 = vmatpush2.bf16.msra.mxu0 %v8409_v31  ;;  %v8370_v17 = vcombine.high %v1346_v14, %v1350_v15  ;;  %v1210_v18 = vld [vmem:[#allocation7 + $0xa40] sm:$0xff]  ;;  %v8369_v28 = vcombine.low %v1346_v14, %v1350_v15  ;;  %v8362_v31 = vcombine.high %v1338_v21, %v1342_v22 }
 0x17f   :  { %4096 = vmatprep.subr.bf16.mxu1 %v8274_v41  ;;  %4137 = vmatprep.subr.bf16.mxu0 %v8402_v42  ;;  %v1214_v20 = vld [vmem:[#allocation7 + $0xa60] sm:$0xff]  ;;  %v7963_v14 = vcombine.low %v939_v53, %v943_v55  ;;  %v899_v55 = vld [vmem:[#allocation7 + $0x88] sm:$0xff] }
 0x180   :  { %v8234_v30 = vcombine.high %v1210_v18, %v1214_v20  ;;  %v1202_v41 = vld [vmem:[#allocation7 + $0xa00] sm:$0xff]  ;;  %v8233_v46 = vcombine.low %v1210_v18, %v1214_v20  ;;  %v927_v18 = vld [vmem:[#allocation7 + $0x168] sm:$0xff] }
 0x181   :  { %v1206_v42 = vld [vmem:[#allocation7 + $0xa20] sm:$0xff]  ;;  %v1051_v20 = vld [vmem:[#allocation7 + $0x548] sm:$0xff] }
 0x182   :  { %4097 = vmatpush2.bf16.msra.mxu1 %v8273_v47  ;;  %4138 = vmatpush2.bf16.msra.mxu0 %v8401_v48  ;;  %v8361_v47 = vcombine.low %v1338_v21, %v1342_v22  ;;  %v864_v48 = vadd.f32 %v845_v29, %v10265_v11  ;;  %v8226_v33 = vcombine.high %v1202_v41, %v1206_v42  ;;  %v1055_v21 = vld [vmem:[#allocation7 + $0x568] sm:$0xff] }
 0x183   :  { %4098 = vmatprep.subr.bf16.mxu1 %v8266_v51  ;;  %4139 = vmatprep.subr.bf16.mxu0 %v8394_v52  ;;  %v8354_v52 = vcombine.high %v1330_v43, %v1334_v44  ;;  %v8225_v11 = vcombine.low %v1202_v41, %v1206_v42  ;;  %v915_v29 = vld [vmem:[#allocation7 + $0x108] sm:$0xff] }
 0x184   :  { %v872_v62 = vmax.f32 %v864_v48, 0.0  ;;  %v1047_v41 = vld [vmem:[#allocation7 + $0x528] sm:$0xff] }
 0x185   :  { %v1035_v48 = vld [vmem:[#allocation7 + $0x4c8] sm:$0xff] }
 0x186   :  { %4099 = vmatpush2.bf16.msra.mxu1 %v8265_v57  ;;  %4140 = vmatpush2.bf16.msra.mxu0 %v8393_v58  ;;  %v1071_v57 = vld [vmem:[#allocation7 + $0x5e8] sm:$0xff]  ;;  %v870_v58 = vmax.f32 %v862_v45, 0.0  ;;  %v10290_v15 = vpack.c.bf16 %v872_v62, %v872_v62 }
 0x187   :  { %4100 = vmatprep.subr.bf16.mxu1 %v8258_v59  ;;  %4141 = vmatprep.subr.bf16.mxu0 %v8386_v60  ;;  %v8353_v60 = vcombine.low %v1330_v43, %v1334_v44  ;;  %v8092_v4 = vcombine.high %v1067_v56, %v1071_v57  ;;  %v8075_v43 = vcombine.low %v1051_v20, %v1055_v21 }
 0x18a   :  { %4101 = vmatpush2.bf16.msra.mxu1 %v8257_v6  ;;  %4142 = vmatpush2.bf16.msra.mxu0 %v8385_v7  ;;  %v931_v6 = vld [vmem:[#allocation7 + $0x188] sm:$0xff]  ;;  %v10288_v7 = vpack.c.bf16 %v870_v58, %v870_v58 }
 0x18b   :  { %4102 = vmatprep.subr.bf16.mxu1 %v8250_v8  ;;  %4143 = vmatprep.subr.bf16.mxu0 %v8378_v12  ;;  %v935_v8 = vld [vmem:[#allocation7 + $0x1a8] sm:$0xff] }
 0x18c   :  { %v1059_v12 = vld [vmem:[#allocation7 + $0x588] sm:$0xff]  ;;  %v7955_v22 = vcombine.low %v931_v6, %v935_v8 }
 0x18d   :  { %v8083_v26 = vcombine.low %v1059_v12, %v1063_v13  ;;  %v1031_v58 = vld [vmem:[#allocation7 + $0x4a8] sm:$0xff] }
 0x18e   :  { %4103 = vmatpush2.bf16.msra.mxu1 %v8249_v23  ;;  %4144 = vmatpush2.bf16.msra.mxu0 %v8377_v24  ;;  %v8091_v23 = vcombine.low %v1067_v56, %v1071_v57  ;;  %v7956_v24 = vcombine.high %v931_v6, %v935_v8  ;;  %v903_v56 = vld [vmem:[#allocation7 + $0xa8] sm:$0xff] }
 0x18f   :  { %4104 = vmatprep.subr.bf16.mxu1 %v8242_v16  ;;  %4145 = vmatprep.subr.bf16.mxu0 %v8370_v17  ;;  %v8084_v16 = vcombine.high %v1059_v12, %v1063_v13  ;;  %v923_v17 = vld [vmem:[#allocation7 + $0x148] sm:$0xff]  ;;  %v7923_v8 = vcombine.low %v899_v55, %v903_v56 }
 0x190   :  { %v7947_v42 = vcombine.low %v923_v17, %v927_v18  ;;  %v1027_v57 = vld [vmem:[#allocation7 + $0x488] sm:$0xff] }
 0x191   :  { %v8052_v62 = vcombine.high %v1027_v57, %v1031_v58  ;;  %v1023_v6 = vld [vmem:[#allocation7 + $0x468] sm:$0xff]  ;;  %v8051_v12 = vcombine.low %v1027_v57, %v1031_v58 }
 0x192   :  { %4105 = vmatpush2.bf16.msra.mxu1 %v8241_v27  ;;  %4146 = vmatpush2.bf16.msra.mxu0 %v8369_v28  ;;  %v7948_v27 = vcombine.high %v923_v17, %v927_v18  ;;  %v8076_v28 = vcombine.high %v1051_v20, %v1055_v21 }
 0x193   :  { %v10283_v51 = vpop.f32.mrf.mxu0  ;;  %4106 = vmatprep.subr.bf16.mxu1 %v8234_v30  ;;  %4147 = vmatprep.subr.bf16.mxu0 %v8362_v31  ;;  %v919_v30 = vld [vmem:[#allocation7 + $0x128] sm:$0xff] }
 0x194   :  { %v5661_v54 = vsel %vm5660_vm1, %v10283_v51, -inf  ;;  %v4653_v9 = vsel %vm4652_vm2, %v10283_v51, -inf  ;;  %v1043_v31 = vld [vmem:[#allocation7 + $0x508] sm:$0xff]  ;;  %v7940_v44 = vcombine.high %v915_v29, %v919_v30 }
 0x195   :  { %5662 = vmax.xlane.f32.xlu1 %v5661_v54  ;;  %4654 = vmax.xlane.f32.xlu0 %v4653_v9  ;;  %v9241_v59 = vpop.f32.mrf.mxu0  ;;  %v8068_v45 = vcombine.high %v1043_v31, %v1047_v41  ;;  %v8067_v53 = vcombine.low %v1043_v31, %v1047_v41 }
 0x196   :  { %4107 = vmatpush2.bf16.msra.mxu1 %v8233_v46  ;;  %4148 = vmatpush2.bf16.msra.mxu0 %v8361_v47  ;;  %v907_v46 = vld [vmem:[#allocation7 + $0xc8] sm:$0xff] }
 0x197   :  { %4108 = vmatprep.subr.bf16.mxu1 %v8226_v33  ;;  %4149 = vmatprep.subr.bf16.mxu0 %v8354_v52  ;;  %v813_v5 = vpop.f32.mrf.mxu0  ;;  %v911_v47 = vld [vmem:[#allocation7 + $0xe8] sm:$0xff]  ;;  %v7939_v52 = vcombine.low %v915_v29, %v919_v30 }
 0x198   :  { %v1039_v33 = vld [vmem:[#allocation7 + $0x4e8] sm:$0xff]  ;;  %v7932_v54 = vcombine.high %v907_v46, %v911_v47  ;;  %v7931_v59 = vcombine.low %v907_v46, %v911_v47 }
 0x199   :  { %v9242_v36 = vpop.f32.mrf.mxu0  ;;  %v8060_v9 = vcombine.high %v1035_v48, %v1039_v33  ;;  %v1019_v5 = vld [vmem:[#allocation7 + $0x448] sm:$0xff] }
 0x19a   :  { %4109 = vmatpush2.bf16.msra.mxu1 %v8225_v11  ;;  %4150 = vmatpush2.bf16.msra.mxu0 %v8353_v60  ;;  %v8059_v11 = vcombine.low %v1035_v48, %v1039_v33  ;;  %v7924_v60 = vcombine.high %v899_v55, %v903_v56  ;;  %v8044_v36 = vcombine.high %v1019_v5, %v1023_v6 }
 0x19b   :  { %4160 = vmatprep.subr.bf16.mxu1 %v7964_v63  ;;  %4201 = vmatprep.subr.bf16.mxu0 %v8092_v4  ;;  %v891_v63 = vld [vmem:[#allocation7 + $0x48] sm:$0xff]  ;;  %v8043_v18 = vcombine.low %v1019_v5, %v1023_v6 }
 0x19c   :  { %v895_v4 = vld [vmem:[#allocation7 + $0x68] sm:$0xff] }
 0x19d   :  { %4111 = vmatmul.mubr.bf16.vlgmr.msra.gmra.mxu1 %v10288_v7  ;;  %4152 = vmatmul.mubr.bf16.vlgmr.msra.gmra.mxu0 %v10290_v15  ;;  %v7916_v13 = vcombine.high %v891_v63, %v895_v4  ;;  %v7915_v17 = vcombine.low %v891_v63, %v895_v4 }
 0x19e   :  { %4161 = vmatpush1.bf16.msra.mxu1 %v7963_v14  ;;  %4192 = vmatprep.mubr.bf16.mxu1 %v10239_v1  ;;  %v883_v14 = vld [vmem:[#allocation7 + $0x8] sm:$0xff] }
 0x19f   :  { %4202 = vmatpush1.bf16.msra.mxu0 %v8091_v23  ;;  %4233 = vmatprep.mubr.bf16.mxu0 %v10241_v2  ;;  %v887_v23 = vld [vmem:[#allocation7 + $0x28] sm:$0xff] }
 0x1a0   :  { %4162 = vmatprep.subr.bf16.mxu1 %v7956_v24  ;;  %4203 = vmatprep.subr.bf16.mxu0 %v8084_v16  ;;  %v1011_v24 = vld [vmem:[#allocation7 + $0x408] sm:$0xff]  ;;  %v7908_v20 = vcombine.high %v883_v14, %v887_v23  ;;  %v7907_v29 = vcombine.low %v883_v14, %v887_v23 }
 0x1a1   :  { %v1015_v16 = vld [vmem:[#allocation7 + $0x428] sm:$0xff] }
 0x1a2   :  { %4163 = vmatpush1.bf16.msra.mxu1 %v7955_v22  ;;  %v8036_v21 = vcombine.high %v1011_v24, %v1015_v16  ;;  %v1003_v22 = vld [vmem:[#allocation7 + $0x3c8] sm:$0xff]  ;;  %v8035_v30 = vcombine.low %v1011_v24, %v1015_v16 }
 0x1a3   :  { %4204 = vmatpush1.bf16.msra.mxu0 %v8083_v26  ;;  %4164 = vmatprep.subr.bf16.mxu1 %v7948_v27  ;;  %v1007_v26 = vld [vmem:[#allocation7 + $0x3e8] sm:$0xff] }
 0x1a4   :  { %4205 = vmatprep.subr.bf16.mxu0 %v8076_v28  ;;  %v1131_v27 = vld [vmem:[#allocation7 + $0x7c8] sm:$0xff]  ;;  %v8028_v31 = vcombine.high %v1003_v22, %v1007_v26  ;;  %v8027_v46 = vcombine.low %v1003_v22, %v1007_v26 }
 0x1a5   :  { %v1135_v28 = vld [vmem:[#allocation7 + $0x7e8] sm:$0xff] }
 0x1a6   :  { %4165 = vmatpush1.bf16.msra.mxu1 %v7947_v42  ;;  %v8156_v41 = vcombine.high %v1131_v27, %v1135_v28  ;;  %v995_v42 = vld [vmem:[#allocation7 + $0x388] sm:$0xff]  ;;  %v8155_v47 = vcombine.low %v1131_v27, %v1135_v28 }
 0x1a7   :  { %4206 = vmatpush1.bf16.msra.mxu0 %v8075_v43  ;;  %4166 = vmatprep.subr.bf16.mxu1 %v7940_v44  ;;  %v999_v43 = vld [vmem:[#allocation7 + $0x3a8] sm:$0xff] }
 0x1a8   :  { %4207 = vmatprep.subr.bf16.mxu0 %v8068_v45  ;;  %v1123_v44 = vld [vmem:[#allocation7 + $0x788] sm:$0xff]  ;;  %v8020_v48 = vcombine.high %v995_v42, %v999_v43  ;;  %v8019_v55 = vcombine.low %v995_v42, %v999_v43 }
 0x1a9   :  { %v1127_v45 = vld [vmem:[#allocation7 + $0x7a8] sm:$0xff] }
 0x1aa   :  { %4167 = vmatpush1.bf16.msra.mxu1 %v7939_v52  ;;  %v8148_v33 = vcombine.high %v1123_v44, %v1127_v45  ;;  %v987_v52 = vld [vmem:[#allocation7 + $0x348] sm:$0xff]  ;;  %v8147_v56 = vcombine.low %v1123_v44, %v1127_v45 }
 0x1ab   :  { %4208 = vmatpush1.bf16.msra.mxu0 %v8067_v53  ;;  %4168 = vmatprep.subr.bf16.mxu1 %v7932_v54  ;;  %v991_v53 = vld [vmem:[#allocation7 + $0x368] sm:$0xff] }
 0x1ac   :  { %4209 = vmatprep.subr.bf16.mxu0 %v8060_v9  ;;  %v1115_v54 = vld [vmem:[#allocation7 + $0x748] sm:$0xff]  ;;  %v8012_v57 = vcombine.high %v987_v52, %v991_v53  ;;  %v8011_v63 = vcombine.low %v987_v52, %v991_v53 }
 0x1ad   :  { %v1119_v9 = vld [vmem:[#allocation7 + $0x768] sm:$0xff] }
 0x1ae   :  { %4169 = vmatpush1.bf16.msra.mxu1 %v7931_v59  ;;  %v8140_v58 = vcombine.high %v1115_v54, %v1119_v9  ;;  %v979_v59 = vld [vmem:[#allocation7 + $0x308] sm:$0xff]  ;;  %v8139_v4 = vcombine.low %v1115_v54, %v1119_v9 }
 0x1af   :  { %4210 = vmatpush1.bf16.msra.mxu0 %v8059_v11  ;;  %4170 = vmatprep.subr.bf16.mxu1 %v7924_v60  ;;  %v983_v11 = vld [vmem:[#allocation7 + $0x328] sm:$0xff] }
 0x1b0   :  { %4211 = vmatprep.subr.bf16.mxu0 %v8052_v62  ;;  %v1107_v60 = vld [vmem:[#allocation7 + $0x708] sm:$0xff]  ;;  %v8004_v5 = vcombine.high %v979_v59, %v983_v11  ;;  %v8003_v14 = vcombine.low %v979_v59, %v983_v11 }
 0x1b1   :  { %v1111_v62 = vld [vmem:[#allocation7 + $0x728] sm:$0xff] }
 0x1b2   :  { %4171 = vmatpush1.bf16.msra.mxu1 %v7923_v8  ;;  %v8132_v6 = vcombine.high %v1107_v60, %v1111_v62  ;;  %v971_v8 = vld [vmem:[#allocation7 + $0x2c8] sm:$0xff]  ;;  %v8131_v23 = vcombine.low %v1107_v60, %v1111_v62 }
 0x1b3   :  { %4212 = vmatpush1.bf16.msra.mxu0 %v8051_v12  ;;  %4172 = vmatprep.subr.bf16.mxu1 %v7916_v13  ;;  %v975_v12 = vld [vmem:[#allocation7 + $0x2e8] sm:$0xff] }
 0x1b4   :  { %4213 = vmatprep.subr.bf16.mxu0 %v8044_v36  ;;  %v1099_v13 = vld [vmem:[#allocation7 + $0x6c8] sm:$0xff]  ;;  %v7996_v24 = vcombine.high %v971_v8, %v975_v12  ;;  %v7995_v22 = vcombine.low %v971_v8, %v975_v12 }
 0x1b5   :  { %v1103_v36 = vld [vmem:[#allocation7 + $0x6e8] sm:$0xff] }
 0x1b6   :  { %4173 = vmatpush1.bf16.msra.mxu1 %v7915_v17  ;;  %v8124_v16 = vcombine.high %v1099_v13, %v1103_v36  ;;  %v963_v17 = vld [vmem:[#allocation7 + $0x288] sm:$0xff]  ;;  %v8123_v26 = vcombine.low %v1099_v13, %v1103_v36 }
 0x1b7   :  { %4214 = vmatpush1.bf16.msra.mxu0 %v8043_v18  ;;  %4174 = vmatprep.subr.bf16.mxu1 %v7908_v20  ;;  %v967_v18 = vld [vmem:[#allocation7 + $0x2a8] sm:$0xff] }
 0x1b8   :  { %4215 = vmatprep.subr.bf16.mxu0 %v8036_v21  ;;  %v1091_v20 = vld [vmem:[#allocation7 + $0x688] sm:$0xff]  ;;  %v7988_v27 = vcombine.high %v963_v17, %v967_v18  ;;  %v7987_v42 = vcombine.low %v963_v17, %v967_v18 }
 0x1b9   :  { %v1095_v21 = vld [vmem:[#allocation7 + $0x6a8] sm:$0xff] }
 0x1ba   :  { %4175 = vmatpush1.bf16.msra.mxu1 %v7907_v29  ;;  %v8116_v28 = vcombine.high %v1091_v20, %v1095_v21  ;;  %v955_v29 = vld [vmem:[#allocation7 + $0x248] sm:$0xff]  ;;  %v8115_v43 = vcombine.low %v1091_v20, %v1095_v21 }
 0x1bb   :  { %4216 = vmatpush1.bf16.msra.mxu0 %v8035_v30  ;;  %4176 = vmatprep.subr.bf16.mxu1 %v8028_v31  ;;  %v959_v30 = vld [vmem:[#allocation7 + $0x268] sm:$0xff] }
 0x1bc   :  { %4217 = vmatprep.subr.bf16.mxu0 %v8156_v41  ;;  %v1083_v31 = vld [vmem:[#allocation7 + $0x648] sm:$0xff]  ;;  %v7980_v44 = vcombine.high %v955_v29, %v959_v30  ;;  %v7979_v52 = vcombine.low %v955_v29, %v959_v30 }
 0x1bd   :  { %v1087_v41 = vld [vmem:[#allocation7 + $0x668] sm:$0xff] }
 0x1be   :  { %4177 = vmatpush2.bf16.msra.mxu1 %v8027_v46  ;;  %v8108_v45 = vcombine.high %v1083_v31, %v1087_v41  ;;  %v947_v46 = vld [vmem:[#allocation7 + $0x208] sm:$0xff]  ;;  %v8107_v53 = vcombine.low %v1083_v31, %v1087_v41 }
 0x1bf   :  { %4218 = vmatpush2.bf16.msra.mxu0 %v8155_v47  ;;  %4178 = vmatprep.subr.bf16.mxu1 %v8020_v48  ;;  %v951_v47 = vld [vmem:[#allocation7 + $0x228] sm:$0xff] }
 0x1c0   :  { %4219 = vmatprep.subr.bf16.mxu0 %v8148_v33  ;;  %v1075_v48 = vld [vmem:[#allocation7 + $0x608] sm:$0xff]  ;;  %v7972_v54 = vcombine.high %v947_v46, %v951_v47  ;;  %v7971_v59 = vcombine.low %v947_v46, %v951_v47 }
 0x1c1   :  { %v1079_v33 = vld [vmem:[#allocation7 + $0x628] sm:$0xff] }
 0x1c2   :  { %4179 = vmatpush2.bf16.msra.mxu1 %v8019_v55  ;;  %v8100_v9 = vcombine.high %v1075_v48, %v1079_v33  ;;  %v1195_v55 = vld [vmem:[#allocation7 + $0x9c8] sm:$0xff]  ;;  %v8099_v11 = vcombine.low %v1075_v48, %v1079_v33 }
 0x1c3   :  { %4220 = vmatpush2.bf16.msra.mxu0 %v8147_v56  ;;  %4180 = vmatprep.subr.bf16.mxu1 %v8012_v57  ;;  %v1199_v56 = vld [vmem:[#allocation7 + $0x9e8] sm:$0xff] }
 0x1c4   :  { %4221 = vmatprep.subr.bf16.mxu0 %v8140_v58  ;;  %v1323_v57 = vld [vmem:[#allocation7 + $0xdc8] sm:$0xff]  ;;  %v8220_v60 = vcombine.high %v1195_v55, %v1199_v56 }
 0x1c5   :  { %v1327_v58 = vld [vmem:[#allocation7 + $0xde8] sm:$0xff] }
 0x1c6   :  { %4181 = vmatpush2.bf16.msra.mxu1 %v8011_v63  ;;  %v8348_v62 = vcombine.high %v1323_v57, %v1327_v58  ;;  %v1187_v63 = vld [vmem:[#allocation7 + $0x988] sm:$0xff]  ;;  %v8347_v12 = vcombine.low %v1323_v57, %v1327_v58 }
 0x1c7   :  { %4222 = vmatpush2.bf16.msra.mxu0 %v8139_v4  ;;  %4182 = vmatprep.subr.bf16.mxu1 %v8004_v5  ;;  %v1191_v4 = vld [vmem:[#allocation7 + $0x9a8] sm:$0xff]  ;;  %v8219_v5 = vcombine.low %v1195_v55, %v1199_v56 }
 0x1c8   :  { %4223 = vmatprep.subr.bf16.mxu0 %v8132_v6  ;;  %v1315_v6 = vld [vmem:[#allocation7 + $0xd88] sm:$0xff]  ;;  %v8212_v13 = vcombine.high %v1187_v63, %v1191_v4  ;;  %v8211_v17 = vcombine.low %v1187_v63, %v1191_v4 }
 0x1c9   :  { %v1319_v8 = vld [vmem:[#allocation7 + $0xda8] sm:$0xff] }
 0x1ca   :  { %4183 = vmatpush2.bf16.msra.mxu1 %v8003_v14  ;;  %v1179_v36 = vld [vmem:[#allocation7 + $0x948] sm:$0xff]  ;;  %v8339_v18 = vcombine.low %v1315_v6, %v1319_v8 }
 0x1cb   :  { %4224 = vmatpush2.bf16.msra.mxu0 %v8131_v23  ;;  %4184 = vmatprep.subr.bf16.mxu1 %v7996_v24  ;;  %v1183_v14 = vld [vmem:[#allocation7 + $0x968] sm:$0xff]  ;;  %v8340_v23 = vcombine.high %v1315_v6, %v1319_v8 }
 0x1cc   :  { %4225 = vmatprep.subr.bf16.mxu0 %v8124_v16  ;;  %v1307_v24 = vld [vmem:[#allocation7 + $0xd48] sm:$0xff]  ;;  %v8204_v20 = vcombine.high %v1179_v36, %v1183_v14  ;;  %v8203_v29 = vcombine.low %v1179_v36, %v1183_v14 }
 0x1cd   :  { %v1311_v16 = vld [vmem:[#allocation7 + $0xd68] sm:$0xff] }
 0x1ce   :  { %4185 = vmatpush2.bf16.msra.mxu1 %v7995_v22  ;;  %v8332_v21 = vcombine.high %v1307_v24, %v1311_v16  ;;  %v1171_v22 = vld [vmem:[#allocation7 + $0x908] sm:$0xff]  ;;  %v8331_v30 = vcombine.low %v1307_v24, %v1311_v16 }
 0x1cf   :  { %4226 = vmatpush2.bf16.msra.mxu0 %v8123_v26  ;;  %4186 = vmatprep.subr.bf16.mxu1 %v7988_v27  ;;  %v1175_v26 = vld [vmem:[#allocation7 + $0x928] sm:$0xff] }
 0x1d0   :  { %4227 = vmatprep.subr.bf16.mxu0 %v8116_v28  ;;  %v1299_v27 = vld [vmem:[#allocation7 + $0xd08] sm:$0xff]  ;;  %v8196_v31 = vcombine.high %v1171_v22, %v1175_v26  ;;  %v8195_v46 = vcombine.low %v1171_v22, %v1175_v26 }
 0x1d1   :  { %v1303_v28 = vld [vmem:[#allocation7 + $0xd28] sm:$0xff] }
 0x1d2   :  { %4187 = vmatpush2.bf16.msra.mxu1 %v7987_v42  ;;  %v8324_v41 = vcombine.high %v1299_v27, %v1303_v28  ;;  %v1163_v42 = vld [vmem:[#allocation7 + $0x8c8] sm:$0xff]  ;;  %v8323_v47 = vcombine.low %v1299_v27, %v1303_v28 }
 0x1d3   :  { %4228 = vmatpush2.bf16.msra.mxu0 %v8115_v43  ;;  %4188 = vmatprep.subr.bf16.mxu1 %v7980_v44  ;;  %v1167_v43 = vld [vmem:[#allocation7 + $0x8e8] sm:$0xff] }
 0x1d4   :  { %4229 = vmatprep.subr.bf16.mxu0 %v8108_v45  ;;  %v1291_v44 = vld [vmem:[#allocation7 + $0xcc8] sm:$0xff]  ;;  %v8188_v48 = vcombine.high %v1163_v42, %v1167_v43  ;;  %v8187_v55 = vcombine.low %v1163_v42, %v1167_v43 }
 0x1d5   :  { %v1295_v45 = vld [vmem:[#allocation7 + $0xce8] sm:$0xff] }
 0x1d6   :  { %4189 = vmatpush2.bf16.msra.mxu1 %v7979_v52  ;;  %v8316_v33 = vcombine.high %v1291_v44, %v1295_v45  ;;  %v1155_v52 = vld [vmem:[#allocation7 + $0x888] sm:$0xff]  ;;  %v8315_v56 = vcombine.low %v1291_v44, %v1295_v45 }
 0x1d7   :  { %4230 = vmatpush2.bf16.msra.mxu0 %v8107_v53  ;;  %4190 = vmatprep.subr.bf16.mxu1 %v7972_v54  ;;  %v1159_v53 = vld [vmem:[#allocation7 + $0x8a8] sm:$0xff] }
 0x1d8   :  { %4231 = vmatprep.subr.bf16.mxu0 %v8100_v9  ;;  %v1283_v54 = vld [vmem:[#allocation7 + $0xc88] sm:$0xff]  ;;  %v8180_v57 = vcombine.high %v1155_v52, %v1159_v53  ;;  %v8179_v63 = vcombine.low %v1155_v52, %v1159_v53 }
 0x1d9   :  { %v1287_v9 = vld [vmem:[#allocation7 + $0xca8] sm:$0xff] }
 0x1da   :  { %4191 = vmatpush2.bf16.msra.mxu1 %v7971_v59  ;;  %v8308_v58 = vcombine.high %v1283_v54, %v1287_v9  ;;  %v1147_v59 = vld [vmem:[#allocation7 + $0x848] sm:$0xff]  ;;  %v8307_v4 = vcombine.low %v1283_v54, %v1287_v9 }
 0x1db   :  { %4232 = vmatpush2.bf16.msra.mxu0 %v8099_v11  ;;  %4242 = vmatprep.subr.bf16.mxu1 %v8220_v60  ;;  %v1151_v11 = vld [vmem:[#allocation7 + $0x868] sm:$0xff] }
 0x1dc   :  { %4283 = vmatprep.subr.bf16.mxu0 %v8348_v62  ;;  %v1275_v60 = vld [vmem:[#allocation7 + $0xc48] sm:$0xff]  ;;  %v8171_v14 = vcombine.low %v1147_v59, %v1151_v11 }
 0x1dd   :  { %4193 = vmatmul.mubr.bf16.vlgmr.msra.gmra.mxu1 %v10237_v61  ;;  %v1279_v62 = vld [vmem:[#allocation7 + $0xc68] sm:$0xff] }
 0x1de   :  { %4234 = vmatmul.mubr.bf16.vlgmr.msra.gmra.mxu0 %v10243_v3  ;;  %4243 = vmatpush1.bf16.msra.mxu1 %v8219_v5  ;;  %v8172_v5 = vcombine.high %v1147_v59, %v1151_v11  ;;  %v8300_v6 = vcombine.high %v1275_v60, %v1279_v62  ;;  %v1139_v8 = vld [vmem:[#allocation7 + $0x808] sm:$0xff] }
 0x1df   :  { %4274 = vmatprep.mubr.bf16.mxu1 %v10267_v39  ;;  %4284 = vmatpush1.bf16.msra.mxu0 %v8347_v12  ;;  %v1143_v12 = vld [vmem:[#allocation7 + $0x828] sm:$0xff] }
 0x1e0   :  { %4315 = vmatprep.mubr.bf16.mxu0 %v10269_v40  ;;  %4244 = vmatprep.subr.bf16.mxu1 %v8212_v13  ;;  %v1267_v13 = vld [vmem:[#allocation7 + $0xc08] sm:$0xff]  ;;  %v8164_v24 = vcombine.high %v1139_v8, %v1143_v12  ;;  %v8163_v22 = vcombine.low %v1139_v8, %v1143_v12 }
 0x1e1   :  { %4285 = vmatprep.subr.bf16.mxu0 %v8340_v23  ;;  %v1271_v36 = vld [vmem:[#allocation7 + $0xc28] sm:$0xff]  ;;  %v8299_v23 = vcombine.low %v1275_v60, %v1279_v62 }
 0x1e2   :  { %4245 = vmatpush1.bf16.msra.mxu1 %v8211_v17  ;;  %v8292_v16 = vcombine.high %v1267_v13, %v1271_v36  ;;  %v1259_v17 = vld [vmem:[#allocation7 + $0xbc8] sm:$0xff]  ;;  %v8291_v26 = vcombine.low %v1267_v13, %v1271_v36 }
 0x1e3   :  { %4286 = vmatpush1.bf16.msra.mxu0 %v8339_v18  ;;  %4246 = vmatprep.subr.bf16.mxu1 %v8204_v20  ;;  %v1263_v18 = vld [vmem:[#allocation7 + $0xbe8] sm:$0xff] }
 0x1e4   :  { %4287 = vmatprep.subr.bf16.mxu0 %v8332_v21  ;;  %v1387_v20 = vld [vmem:[#allocation7 + $0xfc8] sm:$0xff]  ;;  %v8284_v27 = vcombine.high %v1259_v17, %v1263_v18  ;;  %v8283_v42 = vcombine.low %v1259_v17, %v1263_v18 }
 0x1e5   :  { %v1391_v21 = vld [vmem:[#allocation7 + $0xfe8] sm:$0xff] }
 0x1e6   :  { %4247 = vmatpush1.bf16.msra.mxu1 %v8203_v29  ;;  %v8412_v28 = vcombine.high %v1387_v20, %v1391_v21  ;;  %v1251_v29 = vld [vmem:[#allocation7 + $0xb88] sm:$0xff]  ;;  %v8411_v43 = vcombine.low %v1387_v20, %v1391_v21 }
 0x1e7   :  { %4288 = vmatpush1.bf16.msra.mxu0 %v8331_v30  ;;  %4248 = vmatprep.subr.bf16.mxu1 %v8196_v31  ;;  %v1255_v30 = vld [vmem:[#allocation7 + $0xba8] sm:$0xff] }
 0x1e8   :  { %4289 = vmatprep.subr.bf16.mxu0 %v8324_v41  ;;  %v1379_v31 = vld [vmem:[#allocation7 + $0xf88] sm:$0xff]  ;;  %v8276_v44 = vcombine.high %v1251_v29, %v1255_v30  ;;  %v8275_v52 = vcombine.low %v1251_v29, %v1255_v30 }
 0x1e9   :  { %v1383_v41 = vld [vmem:[#allocation7 + $0xfa8] sm:$0xff] }
 0x1ea   :  { %4249 = vmatpush1.bf16.msra.mxu1 %v8195_v46  ;;  %v8404_v45 = vcombine.high %v1379_v31, %v1383_v41  ;;  %v1243_v46 = vld [vmem:[#allocation7 + $0xb48] sm:$0xff]  ;;  %v8403_v53 = vcombine.low %v1379_v31, %v1383_v41 }
 0x1eb   :  { %4290 = vmatpush1.bf16.msra.mxu0 %v8323_v47  ;;  %4250 = vmatprep.subr.bf16.mxu1 %v8188_v48  ;;  %v1247_v47 = vld [vmem:[#allocation7 + $0xb68] sm:$0xff] }
 0x1ec   :  { %4291 = vmatprep.subr.bf16.mxu0 %v8316_v33  ;;  %v1371_v48 = vld [vmem:[#allocation7 + $0xf48] sm:$0xff]  ;;  %v8268_v54 = vcombine.high %v1243_v46, %v1247_v47  ;;  %v8267_v59 = vcombine.low %v1243_v46, %v1247_v47 }
 0x1ed   :  { %v1375_v33 = vld [vmem:[#allocation7 + $0xf68] sm:$0xff] }
 0x1ee   :  { %4251 = vmatpush1.bf16.msra.mxu1 %v8187_v55  ;;  %v8396_v9 = vcombine.high %v1371_v48, %v1375_v33  ;;  %v1235_v55 = vld [vmem:[#allocation7 + $0xb08] sm:$0xff]  ;;  %v8395_v11 = vcombine.low %v1371_v48, %v1375_v33 }
 0x1ef   :  { %4292 = vmatpush1.bf16.msra.mxu0 %v8315_v56  ;;  %4252 = vmatprep.subr.bf16.mxu1 %v8180_v57  ;;  %v1239_v56 = vld [vmem:[#allocation7 + $0xb28] sm:$0xff] }
 0x1f0   :  { %4293 = vmatprep.subr.bf16.mxu0 %v8308_v58  ;;  %v1363_v57 = vld [vmem:[#allocation7 + $0xf08] sm:$0xff]  ;;  %v8260_v60 = vcombine.high %v1235_v55, %v1239_v56  ;;  %v8259_v8 = vcombine.low %v1235_v55, %v1239_v56 }
 0x1f1   :  { %v1367_v58 = vld [vmem:[#allocation7 + $0xf28] sm:$0xff] }
 0x1f2   :  { %4253 = vmatpush1.bf16.msra.mxu1 %v8179_v63  ;;  %v8388_v62 = vcombine.high %v1363_v57, %v1367_v58  ;;  %v1227_v63 = vld [vmem:[#allocation7 + $0xac8] sm:$0xff]  ;;  %v8387_v12 = vcombine.low %v1363_v57, %v1367_v58  ;;  %v10300_v58 = vld [vmem:[#allocation9] sm:$0xff] }
 0x1f3   :  { %4294 = vmatpush1.bf16.msra.mxu0 %v8307_v4  ;;  %4254 = vmatprep.subr.bf16.mxu1 %v8172_v5  ;;  %v1231_v4 = vld [vmem:[#allocation7 + $0xae8] sm:$0xff] }
 0x1f4   :  { %4295 = vmatprep.subr.bf16.mxu0 %v8300_v6  ;;  %v1355_v5 = vld [vmem:[#allocation7 + $0xec8] sm:$0xff]  ;;  %v8252_v13 = vcombine.high %v1227_v63, %v1231_v4  ;;  %v8251_v17 = vcombine.low %v1227_v63, %v1231_v4  ;;  %v1399_v63 = vrot.slane %v10300_v58, %v820_v37  ;;  %v1060_v4 = vld [vmem:[#allocation7 + $0x590] sm:$0xff] }
 0x1f5   :  { %v1359_v6 = vld [vmem:[#allocation7 + $0xee8] sm:$0xff]  ;;  %v1056_v37 = vld [vmem:[#allocation7 + $0x570] sm:$0xff] }
 0x1f6   :  { %4255 = vmatpush1.bf16.msra.mxu1 %v8171_v14  ;;  %v8380_v36 = vcombine.high %v1355_v5, %v1359_v6  ;;  %v1219_v14 = vld [vmem:[#allocation7 + $0xa88] sm:$0xff]  ;;  %v8379_v18 = vcombine.low %v1355_v5, %v1359_v6  ;;  %v1064_v5 = vld [vmem:[#allocation7 + $0x5b0] sm:$0xff] }
 0x1f7   :  { %4296 = vmatpush1.bf16.msra.mxu0 %v8299_v23  ;;  %4256 = vmatprep.subr.bf16.mxu1 %v8164_v24  ;;  %v1223_v23 = vld [vmem:[#allocation7 + $0xaa8] sm:$0xff] }
 0x1f8   :  { %4297 = vmatprep.subr.bf16.mxu0 %v8292_v16  ;;  %v1347_v24 = vld [vmem:[#allocation7 + $0xe88] sm:$0xff]  ;;  %v8244_v20 = vcombine.high %v1219_v14, %v1223_v23  ;;  %v8243_v29 = vcombine.low %v1219_v14, %v1223_v23 }
 0x1f9   :  { %v1351_v16 = vld [vmem:[#allocation7 + $0xea8] sm:$0xff] }
 0x1fa   :  { %4257 = vmatpush1.bf16.msra.mxu1 %v8163_v22  ;;  %v8372_v21 = vcombine.high %v1347_v24, %v1351_v16  ;;  %v1211_v22 = vld [vmem:[#allocation7 + $0xa48] sm:$0xff]  ;;  %v8371_v30 = vcombine.low %v1347_v24, %v1351_v16  ;;  %v8086_v24 = vcombine.high %v1060_v4, %v1064_v5  ;;  %v1052_v16 = vld [vmem:[#allocation7 + $0x550] sm:$0xff] }
 0x1fb   :  { %4298 = vmatpush1.bf16.msra.mxu0 %v8291_v26  ;;  %4258 = vmatprep.subr.bf16.mxu1 %v8284_v27  ;;  %v1215_v26 = vld [vmem:[#allocation7 + $0xa68] sm:$0xff] }
 0x1fc   :  { %4299 = vmatprep.subr.bf16.mxu0 %v8412_v28  ;;  %v1339_v27 = vld [vmem:[#allocation7 + $0xe48] sm:$0xff]  ;;  %v8236_v31 = vcombine.high %v1211_v22, %v1215_v26  ;;  %v8235_v46 = vcombine.low %v1211_v22, %v1215_v26  ;;  %v8085_v22 = vcombine.low %v1060_v4, %v1064_v5 }
 0x1fd   :  { %v1343_v28 = vld [vmem:[#allocation7 + $0xe68] sm:$0xff] }
 0x1fe   :  { %4259 = vmatpush2.bf16.msra.mxu1 %v8283_v42  ;;  %v8364_v41 = vcombine.high %v1339_v27, %v1343_v28  ;;  %v1203_v42 = vld [vmem:[#allocation7 + $0xa08] sm:$0xff]  ;;  %v8363_v47 = vcombine.low %v1339_v27, %v1343_v28 }
 0x1ff   :  { %4300 = vmatpush2.bf16.msra.mxu0 %v8411_v43  ;;  %4260 = vmatprep.subr.bf16.mxu1 %v8276_v44  ;;  %v1207_v43 = vld [vmem:[#allocation7 + $0xa28] sm:$0xff] }
 0x200   :  { %4301 = vmatprep.subr.bf16.mxu0 %v8404_v45  ;;  %v1331_v44 = vld [vmem:[#allocation7 + $0xe08] sm:$0xff]  ;;  %v8228_v48 = vcombine.high %v1203_v42, %v1207_v43  ;;  %v8227_v55 = vcombine.low %v1203_v42, %v1207_v43  ;;  %v916_v42 = vld [vmem:[#allocation7 + $0x110] sm:$0xff] }
 0x201   :  { %v1335_v45 = vld [vmem:[#allocation7 + $0xe28] sm:$0xff]  ;;  %v920_v43 = vld [vmem:[#allocation7 + $0x130] sm:$0xff] }
 0x202   :  { %4261 = vmatpush2.bf16.msra.mxu1 %v8275_v52  ;;  %v8356_v33 = vcombine.high %v1331_v44, %v1335_v45  ;;  %v940_v52 = vld [vmem:[#allocation7 + $0x1d0] sm:$0xff]  ;;  %v8355_v56 = vcombine.low %v1331_v44, %v1335_v45 }
 0x203   :  { %4302 = vmatpush2.bf16.msra.mxu0 %v8403_v53  ;;  %4262 = vmatprep.subr.bf16.mxu1 %v8268_v54  ;;  %v944_v53 = vld [vmem:[#allocation7 + $0x1f0] sm:$0xff] }
 0x204   :  { %4303 = vmatprep.subr.bf16.mxu0 %v8396_v9  ;;  %v1068_v54 = vld [vmem:[#allocation7 + $0x5d0] sm:$0xff]  ;;  %v7966_v57 = vcombine.high %v940_v52, %v944_v53 }
 0x205   :  { %v1072_v9 = vld [vmem:[#allocation7 + $0x5f0] sm:$0xff] }
 0x206   :  { %4263 = vmatpush2.bf16.msra.mxu1 %v8267_v59  ;;  %v8094_v59 = vcombine.high %v1068_v54, %v1072_v9  ;;  %v8093_v6 = vcombine.low %v1068_v54, %v1072_v9  ;;  %v8077_v9 = vcombine.low %v1052_v16, %v1056_v37 }
 0x207   :  { %4304 = vmatpush2.bf16.msra.mxu0 %v8395_v11  ;;  %4264 = vmatprep.subr.bf16.mxu1 %v8260_v60  ;;  %v932_v11 = vld [vmem:[#allocation7 + $0x190] sm:$0xff] }
 0x208   :  { %4305 = vmatprep.subr.bf16.mxu0 %v8388_v62  ;;  %v936_v60 = vld [vmem:[#allocation7 + $0x1b0] sm:$0xff]  ;;  %v7965_v62 = vcombine.low %v940_v52, %v944_v53 }
 0x20a   :  { %4265 = vmatpush2.bf16.msra.mxu1 %v8259_v8  ;;  %v1403_v8 = vrot.slane %v10300_v58, %v824_v35 }
 0x20b   :  { %4306 = vmatpush2.bf16.msra.mxu0 %v8387_v12  ;;  %4266 = vmatprep.subr.bf16.mxu1 %v8252_v13  ;;  %v7958_v12 = vcombine.high %v932_v11, %v936_v60  ;;  %v924_v13 = vld [vmem:[#allocation7 + $0x150] sm:$0xff] }
 0x20c   :  { %4307 = vmatprep.subr.bf16.mxu0 %v8380_v36  ;;  %v928_v36 = vld [vmem:[#allocation7 + $0x170] sm:$0xff] }
 0x20d   :  { %v7949_v53 = vcombine.low %v924_v13, %v928_v36 }
 0x20e   :  { %4267 = vmatpush2.bf16.msra.mxu1 %v8251_v17 }
 0x20f   :  { %4308 = vmatpush2.bf16.msra.mxu0 %v8379_v18  ;;  %4268 = vmatprep.subr.bf16.mxu1 %v8244_v20 }
 0x210   :  { %4309 = vmatprep.subr.bf16.mxu0 %v8372_v21  ;;  %v7957_v21 = vcombine.low %v932_v11, %v936_v60  ;;  %v912_v11 = vld [vmem:[#allocation7 + $0xf0] sm:$0xff] }
 0x211   :  { %v1036_v60 = vld [vmem:[#allocation7 + $0x4d0] sm:$0xff] }
 0x212   :  { %4269 = vmatpush2.bf16.msra.mxu1 %v8243_v29  ;;  %v7950_v29 = vcombine.high %v924_v13, %v928_v36  ;;  %v1028_v13 = vld [vmem:[#allocation7 + $0x490] sm:$0xff] }
 0x213   :  { %4310 = vmatpush2.bf16.msra.mxu0 %v8371_v30  ;;  %4270 = vmatprep.subr.bf16.mxu1 %v8236_v31  ;;  %v1032_v36 = vld [vmem:[#allocation7 + $0x4b0] sm:$0xff] }
 0x214   :  { %4311 = vmatprep.subr.bf16.mxu0 %v8364_v41  ;;  %v8078_v41 = vcombine.high %v1052_v16, %v1056_v37  ;;  %v8054_v16 = vcombine.high %v1028_v13, %v1032_v36  ;;  %v892_v37 = vld [vmem:[#allocation7 + $0x50] sm:$0xff] }
 0x216   :  { %4271 = vmatpush2.bf16.msra.mxu1 %v8235_v46 }
 0x217   :  { %4312 = vmatpush2.bf16.msra.mxu0 %v8363_v47  ;;  %4272 = vmatprep.subr.bf16.mxu1 %v8228_v48  ;;  %v1044_v47 = vld [vmem:[#allocation7 + $0x510] sm:$0xff] }
 0x218   :  { %4313 = vmatprep.subr.bf16.mxu0 %v8356_v33  ;;  %v1048_v48 = vld [vmem:[#allocation7 + $0x530] sm:$0xff] }
 0x219   :  { %v8069_v4 = vcombine.low %v1044_v47, %v1048_v48 }
 0x21a   :  { %4273 = vmatpush2.bf16.msra.mxu1 %v8227_v55  ;;  %v7942_v55 = vcombine.high %v916_v42, %v920_v43 }
 0x21b   :  { %4314 = vmatpush2.bf16.msra.mxu0 %v8355_v56  ;;  %4324 = vmatprep.subr.bf16.mxu1 %v7966_v57  ;;  %v8070_v57 = vcombine.high %v1044_v47, %v1048_v48  ;;  %v1004_v48 = vld [vmem:[#allocation7 + $0x3d0] sm:$0xff] }
 0x21c   :  { %4365 = vmatprep.subr.bf16.mxu0 %v8094_v59  ;;  %v908_v59 = vld [vmem:[#allocation7 + $0xd0] sm:$0xff] }
 0x21d   :  { %4275 = vmatmul.mubr.bf16.vlgmr.msra.gmra.mxu1 %v10288_v7  ;;  %v4030_v14 = vpop.f32.mrf.mxu1  ;;  %v4071_v23 = vpop.f32.mrf.mxu0  ;;  %v7934_v5 = vcombine.high %v908_v59, %v912_v11 }
 0x21e   :  { %4316 = vmatmul.mubr.bf16.vlgmr.msra.gmra.mxu0 %v10290_v15  ;;  %v4031_v17 = vadd.f32 %v4030_v14, %v1399_v63  ;;  %4325 = vmatpush1.bf16.msra.mxu1 %v7965_v62  ;;  %v5663_v18 = vpop.xlane.xlu1 %5662  ;;  %v4655_v20 = vpop.xlane.xlu0 %4654  ;;  %v1040_v62 = vld [vmem:[#allocation7 + $0x4f0] sm:$0xff]  ;;  %v7941_v63 = vcombine.low %v916_v42, %v920_v43  ;;  %v7933_v14 = vcombine.low %v908_v59, %v912_v11 }
 0x21f   :  { %4356 = vmatprep.mubr.bf16.mxu1 %v10239_v1  ;;  %4366 = vmatpush1.bf16.msra.mxu0 %v8093_v6  ;;  %v5664_v35 = vsub.f32 %v10283_v51, %v5663_v18  ;;  %v4656_v26 = vsub.f32 %v10283_v51, %v4655_v20  ;;  %v4032_v27 = vpop.f32.mrf.mxu1  ;;  %v4073_v28 = vpop.f32.mrf.mxu0  ;;  %v8062_v6 = vcombine.high %v1036_v60, %v1040_v62  ;;  %v1020_v18 = vld [vmem:[#allocation7 + $0x450] sm:$0xff] }
 0x220   :  { %v10313_v30 = vadd.f32 %v4071_v23, %v4031_v17  ;;  %4397 = vmatprep.mubr.bf16.mxu0 %v10241_v2  ;;  %v4033_v31 = vadd.f32 %v4032_v27, %v1403_v8  ;;  %4326 = vmatprep.subr.bf16.mxu1 %v7958_v12  ;;  %v900_v8 = vld [vmem:[#allocation7 + $0x90] sm:$0xff]  ;;  %v8061_v23 = vcombine.low %v1036_v60, %v1040_v62 }
 0x221   :  { %v5665_v44 = vmul.f32 1.442695, %v5664_v35  ;;  %v4657_v45 = vmul.f32 1.442695, %v4656_v26  ;;  %4367 = vmatprep.subr.bf16.mxu0 %v8086_v24  ;;  %v4075_v46 = vpop.f32.mrf.mxu0  ;;  %v4034_v33 = vpop.f32.mrf.mxu1  ;;  %v904_v12 = vld [vmem:[#allocation7 + $0xb0] sm:$0xff] }
 0x222   :  { %v10316_v52 = vadd.f32 %v4073_v28, %v4033_v31  ;;  %4327 = vmatpush1.bf16.msra.mxu1 %v7957_v21  ;;  %v7926_v24 = vcombine.high %v900_v8, %v904_v12  ;;  %v896_v17 = vld [vmem:[#allocation7 + $0x70] sm:$0xff]  ;;  %v7925_v21 = vcombine.low %v900_v8, %v904_v12 }
 0x223   :  { %9619 = vpow2.f32 %v5665_v44  ;;  %4368 = vmatpush1.bf16.msra.mxu0 %v8085_v22  ;;  %v4076_v54 = vpop.f32.mrf.mxu0  ;;  %4328 = vmatprep.subr.bf16.mxu1 %v7950_v29  ;;  %v4035_v56 = vpop.f32.mrf.mxu1  ;;  %v1024_v20 = vld [vmem:[#allocation7 + $0x470] sm:$0xff]  ;;  %v8053_v22 = vcombine.low %v1028_v13, %v1032_v36  ;;  %v7918_v26 = vcombine.high %v892_v37, %v896_v17  ;;  %v7917_v44 = vcombine.low %v892_v37, %v896_v17 }
 0x224   :  { %9621 = vpow2.f32 %v4657_v45  ;;  %4369 = vmatprep.subr.bf16.mxu0 %v8078_v41  ;;  %v8046_v27 = vcombine.high %v1020_v18, %v1024_v20  ;;  %v884_v28 = vld [vmem:[#allocation7 + $0x10] sm:$0xff]  ;;  %v8045_v45 = vcombine.low %v1020_v18, %v1024_v20 }
 0x225   :  { %v888_v29 = vld [vmem:[#allocation7 + $0x30] sm:$0xff] }
 0x226   :  { %4329 = vmatpush1.bf16.msra.mxu1 %v7949_v53  ;;  %v1012_v41 = vld [vmem:[#allocation7 + $0x410] sm:$0xff]  ;;  %v7910_v46 = vcombine.high %v884_v28, %v888_v29 }
 0x227   :  { %4370 = vmatpush1.bf16.msra.mxu0 %v8077_v9  ;;  %4330 = vmatprep.subr.bf16.mxu1 %v7942_v55  ;;  %v1016_v42 = vld [vmem:[#allocation7 + $0x430] sm:$0xff]  ;;  %v7909_v9 = vcombine.low %v884_v28, %v888_v29 }
 0x228   :  { %4371 = vmatprep.subr.bf16.mxu0 %v8070_v57  ;;  %v8038_v47 = vcombine.high %v1012_v41, %v1016_v42  ;;  %v1008_v33 = vld [vmem:[#allocation7 + $0x3f0] sm:$0xff]  ;;  %v8037_v55 = vcombine.low %v1012_v41, %v1016_v42 }
 0x229   :  { %v1132_v53 = vld [vmem:[#allocation7 + $0x7d0] sm:$0xff]  ;;  %v8030_v56 = vcombine.high %v1004_v48, %v1008_v33 }
 0x22a   :  { %4331 = vmatpush1.bf16.msra.mxu1 %v7941_v63  ;;  %v1136_v54 = vld [vmem:[#allocation7 + $0x7f0] sm:$0xff]  ;;  %v8029_v63 = vcombine.low %v1004_v48, %v1008_v33 }
 0x22b   :  { %4372 = vmatpush1.bf16.msra.mxu0 %v8069_v4  ;;  %4332 = vmatprep.subr.bf16.mxu1 %v7934_v5  ;;  %v8158_v57 = vcombine.high %v1132_v53, %v1136_v54  ;;  %v996_v59 = vld [vmem:[#allocation7 + $0x390] sm:$0xff]  ;;  %v8157_v4 = vcombine.low %v1132_v53, %v1136_v54 }
 0x22c   :  { %4373 = vmatprep.subr.bf16.mxu0 %v8062_v6  ;;  %v1000_v11 = vld [vmem:[#allocation7 + $0x3b0] sm:$0xff] }
 0x22d   :  { %v1124_v60 = vld [vmem:[#allocation7 + $0x790] sm:$0xff]  ;;  %v8022_v5 = vcombine.high %v996_v59, %v1000_v11 }
 0x22e   :  { %4333 = vmatpush1.bf16.msra.mxu1 %v7933_v14  ;;  %v1128_v62 = vld [vmem:[#allocation7 + $0x7b0] sm:$0xff]  ;;  %v8021_v14 = vcombine.low %v996_v59, %v1000_v11 }
 0x22f   :  { %4374 = vmatpush1.bf16.msra.mxu0 %v8061_v23  ;;  %4334 = vmatprep.subr.bf16.mxu1 %v7926_v24  ;;  %v8150_v6 = vcombine.high %v1124_v60, %v1128_v62  ;;  %v988_v8 = vld [vmem:[#allocation7 + $0x350] sm:$0xff]  ;;  %v8149_v23 = vcombine.low %v1124_v60, %v1128_v62 }
 0x230   :  { %v10318_v35 = vpop.eup %9619  ;;  %4375 = vmatprep.subr.bf16.mxu0 %v8054_v16  ;;  %v992_v12 = vld [vmem:[#allocation7 + $0x370] sm:$0xff] }
 0x231   :  { %v10320_v31 = vpop.eup %9621  ;;  %5668 = vrot.lane.b32.xlu1 %v10318_v35, %s9851_s3  ;;  %v1116_v13 = vld [vmem:[#allocation7 + $0x750] sm:$0xff]  ;;  %v8014_v24 = vcombine.high %v988_v8, %v992_v12 }
 0x232   :  { %4335 = vmatpush1.bf16.msra.mxu1 %v7925_v21  ;;  %v4659_v43 = vsel %vm4652_vm2, %v10320_v31, 0.0  ;;  %v1120_v36 = vld [vmem:[#allocation7 + $0x770] sm:$0xff]  ;;  %v8013_v21 = vcombine.low %v988_v8, %v992_v12 }
 0x233   :  { %4376 = vmatpush1.bf16.msra.mxu0 %v8053_v22  ;;  %4660 = vadd.xlane.f32.xlu0 %v4659_v43  ;;  %v8142_v16 = vcombine.high %v1116_v13, %v1120_v36  ;;  %v980_v37 = vld [vmem:[#allocation7 + $0x310] sm:$0xff]  ;;  %v8141_v22 = vcombine.low %v1116_v13, %v1120_v36 }
 0x234   :  { %4336 = vmatprep.subr.bf16.mxu1 %v7918_v26  ;;  %4377 = vmatprep.subr.bf16.mxu0 %v8046_v27  ;;  %v984_v17 = vld [vmem:[#allocation7 + $0x330] sm:$0xff] }
 0x235   :  { %v1108_v18 = vld [vmem:[#allocation7 + $0x710] sm:$0xff]  ;;  %v8006_v26 = vcombine.high %v980_v37, %v984_v17  ;;  %v8005_v43 = vcombine.low %v980_v37, %v984_v17 }
 0x236   :  { %4337 = vmatpush1.bf16.msra.mxu1 %v7917_v44  ;;  %v1112_v20 = vld [vmem:[#allocation7 + $0x730] sm:$0xff] }
 0x237   :  { %4378 = vmatpush1.bf16.msra.mxu0 %v8045_v45  ;;  %4338 = vmatprep.subr.bf16.mxu1 %v7910_v46  ;;  %v8134_v27 = vcombine.high %v1108_v18, %v1112_v20  ;;  %v972_v28 = vld [vmem:[#allocation7 + $0x2d0] sm:$0xff]  ;;  %v8133_v44 = vcombine.low %v1108_v18, %v1112_v20 }
 0x238   :  { %4379 = vmatprep.subr.bf16.mxu0 %v8038_v47  ;;  %v976_v29 = vld [vmem:[#allocation7 + $0x2f0] sm:$0xff] }
 0x239   :  { %v1100_v41 = vld [vmem:[#allocation7 + $0x6d0] sm:$0xff]  ;;  %v7998_v45 = vcombine.high %v972_v28, %v976_v29  ;;  %v7997_v54 = vcombine.low %v972_v28, %v976_v29 }
 0x23a   :  { %4339 = vmatpush1.bf16.msra.mxu1 %v7909_v9  ;;  %v1104_v42 = vld [vmem:[#allocation7 + $0x6f0] sm:$0xff] }
 0x23b   :  { %4380 = vmatpush1.bf16.msra.mxu0 %v8037_v55  ;;  %4340 = vmatprep.subr.bf16.mxu1 %v8030_v56  ;;  %v8126_v46 = vcombine.high %v1100_v41, %v1104_v42  ;;  %v964_v47 = vld [vmem:[#allocation7 + $0x290] sm:$0xff]  ;;  %v8125_v9 = vcombine.low %v1100_v41, %v1104_v42 }
 0x23c   :  { %4381 = vmatprep.subr.bf16.mxu0 %v8158_v57  ;;  %v968_v48 = vld [vmem:[#allocation7 + $0x2b0] sm:$0xff] }
 0x23d   :  { %v1092_v33 = vld [vmem:[#allocation7 + $0x690] sm:$0xff]  ;;  %v7990_v55 = vcombine.high %v964_v47, %v968_v48  ;;  %v7989_v62 = vcombine.low %v964_v47, %v968_v48 }
 0x23e   :  { %4341 = vmatpush2.bf16.msra.mxu1 %v8029_v63  ;;  %v1096_v53 = vld [vmem:[#allocation7 + $0x6b0] sm:$0xff] }
 0x23f   :  { %4382 = vmatpush2.bf16.msra.mxu0 %v8157_v4  ;;  %4342 = vmatprep.subr.bf16.mxu1 %v8022_v5  ;;  %v8118_v56 = vcombine.high %v1092_v33, %v1096_v53  ;;  %v956_v57 = vld [vmem:[#allocation7 + $0x250] sm:$0xff]  ;;  %v8117_v63 = vcombine.low %v1092_v33, %v1096_v53 }
 0x240   :  { %4383 = vmatprep.subr.bf16.mxu0 %v8150_v6  ;;  %v960_v59 = vld [vmem:[#allocation7 + $0x270] sm:$0xff] }
 0x241   :  { %v1084_v11 = vld [vmem:[#allocation7 + $0x650] sm:$0xff]  ;;  %v7982_v4 = vcombine.high %v956_v57, %v960_v59  ;;  %v7981_v36 = vcombine.low %v956_v57, %v960_v59 }
 0x242   :  { %4343 = vmatpush2.bf16.msra.mxu1 %v8021_v14  ;;  %v1088_v60 = vld [vmem:[#allocation7 + $0x670] sm:$0xff] }
 0x243   :  { %4384 = vmatpush2.bf16.msra.mxu0 %v8149_v23  ;;  %4344 = vmatprep.subr.bf16.mxu1 %v8014_v24  ;;  %v8110_v5 = vcombine.high %v1084_v11, %v1088_v60  ;;  %v948_v6 = vld [vmem:[#allocation7 + $0x210] sm:$0xff]  ;;  %v8109_v14 = vcombine.low %v1084_v11, %v1088_v60  ;;  %v6631_v24 = vsel %vm6630_vm3, %v10283_v51, -inf  ;;  %vm7820_vm3 = vcmask 7168  }
 0x244   :  { %4385 = vmatprep.subr.bf16.mxu0 %v8142_v16  ;;  %v952_v8 = vld [vmem:[#allocation7 + $0x230] sm:$0xff] }
 0x245   :  { %v1076_v12 = vld [vmem:[#allocation7 + $0x610] sm:$0xff]  ;;  %v7974_v23 = vcombine.high %v948_v6, %v952_v8 }
 0x246   :  { %4345 = vmatpush2.bf16.msra.mxu1 %v8013_v21  ;;  %v1080_v13 = vld [vmem:[#allocation7 + $0x630] sm:$0xff]  ;;  %v7973_v21 = vcombine.low %v948_v6, %v952_v8 }
 0x247   :  { %4386 = vmatpush2.bf16.msra.mxu0 %v8141_v22  ;;  %4346 = vmatprep.subr.bf16.mxu1 %v8006_v26  ;;  %v8102_v16 = vcombine.high %v1076_v12, %v1080_v13  ;;  %v1196_v37 = vld [vmem:[#allocation7 + $0x9d0] sm:$0xff]  ;;  %v8101_v22 = vcombine.low %v1076_v12, %v1080_v13 }
 0x248   :  { %4387 = vmatprep.subr.bf16.mxu0 %v8134_v27  ;;  %v1200_v17 = vld [vmem:[#allocation7 + $0x9f0] sm:$0xff] }
 0x249   :  { %v1324_v18 = vld [vmem:[#allocation7 + $0xdd0] sm:$0xff]  ;;  %v8222_v26 = vcombine.high %v1196_v37, %v1200_v17  ;;  %v8221_v41 = vcombine.low %v1196_v37, %v1200_v17 }
 0x24a   :  { %4347 = vmatpush2.bf16.msra.mxu1 %v8005_v43  ;;  %v1328_v20 = vld [vmem:[#allocation7 + $0xdf0] sm:$0xff] }
 0x24b   :  { %4388 = vmatpush2.bf16.msra.mxu0 %v8133_v44  ;;  %4348 = vmatprep.subr.bf16.mxu1 %v7998_v45  ;;  %v8350_v27 = vcombine.high %v1324_v18, %v1328_v20  ;;  %v1188_v28 = vld [vmem:[#allocation7 + $0x990] sm:$0xff]  ;;  %v8349_v44 = vcombine.low %v1324_v18, %v1328_v20 }
 0x24c   :  { %4389 = vmatprep.subr.bf16.mxu0 %v8126_v46  ;;  %v1192_v29 = vld [vmem:[#allocation7 + $0x9b0] sm:$0xff] }
 0x24d   :  { %v1316_v42 = vld [vmem:[#allocation7 + $0xd90] sm:$0xff]  ;;  %v8214_v45 = vcombine.high %v1188_v28, %v1192_v29 }
 0x24e   :  { %4349 = vmatpush2.bf16.msra.mxu1 %v7997_v54  ;;  %v1320_v43 = vld [vmem:[#allocation7 + $0xdb0] sm:$0xff] }
 0x24f   :  { %4390 = vmatpush2.bf16.msra.mxu0 %v8125_v9  ;;  %4350 = vmatprep.subr.bf16.mxu1 %v7990_v55  ;;  %v1180_v46 = vld [vmem:[#allocation7 + $0x950] sm:$0xff]  ;;  %v8342_v53 = vcombine.high %v1316_v42, %v1320_v43  ;;  %v8341_v11 = vcombine.low %v1316_v42, %v1320_v43 }
 0x250   :  { %4391 = vmatprep.subr.bf16.mxu0 %v8118_v56  ;;  %v1184_v47 = vld [vmem:[#allocation7 + $0x970] sm:$0xff]  ;;  %v8213_v56 = vcombine.low %v1188_v28, %v1192_v29 }
 0x251   :  { %v1308_v54 = vld [vmem:[#allocation7 + $0xd50] sm:$0xff]  ;;  %v8206_v60 = vcombine.high %v1180_v46, %v1184_v47 }
 0x252   :  { %4351 = vmatpush2.bf16.msra.mxu1 %v7989_v62  ;;  %v1312_v9 = vld [vmem:[#allocation7 + $0xd70] sm:$0xff] }
 0x253   :  { %4392 = vmatpush2.bf16.msra.mxu0 %v8117_v63  ;;  %4352 = vmatprep.subr.bf16.mxu1 %v7982_v4  ;;  %v8334_v4 = vcombine.high %v1308_v54, %v1312_v9  ;;  %v1300_v8 = vld [vmem:[#allocation7 + $0xd10] sm:$0xff] }
 0x254   :  { %4393 = vmatprep.subr.bf16.mxu0 %v8110_v5  ;;  %v1176_v5 = vld [vmem:[#allocation7 + $0x930] sm:$0xff] }
 0x255   :  { %6632 = vmax.xlane.f32.xlu1 %v6631_v24  ;;  %v1304_v12 = vld [vmem:[#allocation7 + $0xd30] sm:$0xff]  ;;  %v8333_v24 = vcombine.low %v1308_v54, %v1312_v9 }
 0x256   :  { %4353 = vmatpush2.bf16.msra.mxu1 %v7981_v36  ;;  %v1164_v17 = vld [vmem:[#allocation7 + $0x8d0] sm:$0xff] }
 0x257   :  { %4394 = vmatpush2.bf16.msra.mxu0 %v8109_v14  ;;  %4354 = vmatprep.subr.bf16.mxu1 %v7974_v23  ;;  %v8205_v14 = vcombine.low %v1180_v46, %v1184_v47  ;;  %v1168_v18 = vld [vmem:[#allocation7 + $0x8f0] sm:$0xff] }
 0x258   :  { %4395 = vmatprep.subr.bf16.mxu0 %v8102_v16  ;;  %v1292_v20 = vld [vmem:[#allocation7 + $0xcd0] sm:$0xff] }
 0x259   :  { %v1156_v29 = vld [vmem:[#allocation7 + $0x890] sm:$0xff] }
 0x25a   :  { %4355 = vmatpush2.bf16.msra.mxu1 %v7973_v21  ;;  %v1296_v21 = vld [vmem:[#allocation7 + $0xcf0] sm:$0xff] }
 0x25b   :  { %4396 = vmatpush2.bf16.msra.mxu0 %v8101_v22  ;;  %4406 = vmatprep.subr.bf16.mxu1 %v8222_v26  ;;  %v8325_v26 = vcombine.low %v1300_v8, %v1304_v12  ;;  %v8318_v28 = vcombine.high %v1292_v20, %v1296_v21  ;;  %v1284_v42 = vld [vmem:[#allocation7 + $0xc90] sm:$0xff] }
 0x25c   :  { %4447 = vmatprep.subr.bf16.mxu0 %v8350_v27  ;;  %v8190_v27 = vcombine.high %v1164_v17, %v1168_v18  ;;  %v1288_v43 = vld [vmem:[#allocation7 + $0xcb0] sm:$0xff] }
 0x25d   :  { %v4112_v48 = vpop.f32.mrf.mxu1  ;;  %v4153_v33 = vpop.f32.mrf.mxu0  ;;  %4357 = vmatmul.mubr.bf16.vlgmr.msra.gmra.mxu1 %v10237_v61  ;;  %v8310_v47 = vcombine.high %v1284_v42, %v1288_v43  ;;  %v1280_v54 = vld [vmem:[#allocation7 + $0xc70] sm:$0xff] }
 0x25e   :  { %v4113_v55 = vadd.f32 %v4112_v48, %v10313_v30  ;;  %4398 = vmatmul.mubr.bf16.vlgmr.msra.gmra.mxu0 %v10243_v3  ;;  %4407 = vmatpush1.bf16.msra.mxu1 %v8221_v41  ;;  %v1172_v30 = vld [vmem:[#allocation7 + $0x910] sm:$0xff] }
 0x25f   :  { %4438 = vmatprep.mubr.bf16.mxu1 %v10267_v39  ;;  %4448 = vmatpush1.bf16.msra.mxu0 %v8349_v44  ;;  %v4114_v57 = vpop.f32.mrf.mxu1  ;;  %v4155_v59 = vpop.f32.mrf.mxu0  ;;  %v8198_v16 = vcombine.high %v1172_v30, %v1176_v5  ;;  %v8197_v22 = vcombine.low %v1172_v30, %v1176_v5  ;;  %v1160_v41 = vld [vmem:[#allocation7 + $0x8b0] sm:$0xff]  ;;  %v8189_v44 = vcombine.low %v1164_v17, %v1168_v18 }
 0x260   :  { %v10331_v62 = vadd.f32 %v4153_v33, %v4113_v55  ;;  %4479 = vmatprep.mubr.bf16.mxu0 %v10269_v40  ;;  %v4115_v63 = vadd.f32 %v4114_v57, %v10316_v52  ;;  %4408 = vmatprep.subr.bf16.mxu1 %v8214_v45  ;;  %v8326_v52 = vcombine.high %v1300_v8, %v1304_v12  ;;  %v1148_v48 = vld [vmem:[#allocation7 + $0x850] sm:$0xff] }
 0x261   :  { %v4157_v6 = vpop.f32.mrf.mxu0  ;;  %4449 = vmatprep.subr.bf16.mxu0 %v8342_v53  ;;  %v4116_v13 = vpop.f32.mrf.mxu1  ;;  %v8317_v45 = vcombine.low %v1292_v20, %v1296_v21  ;;  %v8182_v46 = vcombine.high %v1156_v29, %v1160_v41  ;;  %v1152_v33 = vld [vmem:[#allocation7 + $0x870] sm:$0xff]  ;;  %v8181_v9 = vcombine.low %v1156_v29, %v1160_v41  ;;  %v8309_v55 = vcombine.low %v1284_v42, %v1288_v43 }
 0x262   :  { %v10335_v36 = vadd.f32 %v4155_v59, %v4115_v63  ;;  %4409 = vmatpush1.bf16.msra.mxu1 %v8213_v56  ;;  %v1276_v53 = vld [vmem:[#allocation7 + $0xc50] sm:$0xff]  ;;  %v8174_v56 = vcombine.high %v1148_v48, %v1152_v33 }
 0x263   :  { %4450 = vmatpush1.bf16.msra.mxu0 %v8341_v11  ;;  %v4158_v23 = vpop.f32.mrf.mxu0  ;;  %4410 = vmatprep.subr.bf16.mxu1 %v8206_v60  ;;  %v4117_v37 = vpop.f32.mrf.mxu1  ;;  %v8302_v57 = vcombine.high %v1276_v53, %v1280_v54  ;;  %v1140_v59 = vld [vmem:[#allocation7 + $0x810] sm:$0xff]  ;;  %v8301_v30 = vcombine.low %v1276_v53, %v1280_v54 }
 0x264   :  { %4451 = vmatprep.subr.bf16.mxu0 %v8334_v4  ;;  %v1144_v11 = vld [vmem:[#allocation7 + $0x830] sm:$0xff]  ;;  %v8173_v4 = vcombine.low %v1148_v48, %v1152_v33 }
 0x265   :  { %v1268_v60 = vld [vmem:[#allocation7 + $0xc10] sm:$0xff]  ;;  %v8166_v5 = vcombine.high %v1140_v59, %v1144_v11  ;;  %v8165_v23 = vcombine.low %v1140_v59, %v1144_v11 }
 0x266   :  { %4411 = vmatpush1.bf16.msra.mxu1 %v8205_v14  ;;  %v1272_v63 = vld [vmem:[#allocation7 + $0xc30] sm:$0xff] }
 0x267   :  { %4452 = vmatpush1.bf16.msra.mxu0 %v8333_v24  ;;  %4412 = vmatprep.subr.bf16.mxu1 %v8198_v16  ;;  %v8294_v6 = vcombine.high %v1268_v60, %v1272_v63  ;;  %v1260_v8 = vld [vmem:[#allocation7 + $0xbd0] sm:$0xff]  ;;  %v8293_v24 = vcombine.low %v1268_v60, %v1272_v63 }
 0x268   :  { %4453 = vmatprep.subr.bf16.mxu0 %v8326_v52  ;;  %v1264_v12 = vld [vmem:[#allocation7 + $0xbf0] sm:$0xff] }
 0x269   :  { %v1388_v13 = vld [vmem:[#allocation7 + $0xfd0] sm:$0xff]  ;;  %v8286_v16 = vcombine.high %v1260_v8, %v1264_v12  ;;  %v8285_v21 = vcombine.low %v1260_v8, %v1264_v12 }
 0x26a   :  { %4413 = vmatpush1.bf16.msra.mxu1 %v8197_v22  ;;  %v1392_v14 = vld [vmem:[#allocation7 + $0xff0] sm:$0xff] }
 0x26b   :  { %4454 = vmatpush1.bf16.msra.mxu0 %v8325_v26  ;;  %4414 = vmatprep.subr.bf16.mxu1 %v8190_v27  ;;  %v8414_v37 = vcombine.high %v1388_v13, %v1392_v14  ;;  %v1252_v52 = vld [vmem:[#allocation7 + $0xb90] sm:$0xff]  ;;  %v8413_v22 = vcombine.low %v1388_v13, %v1392_v14 }
 0x26c   :  { %4455 = vmatprep.subr.bf16.mxu0 %v8318_v28  ;;  %v1256_v17 = vld [vmem:[#allocation7 + $0xbb0] sm:$0xff] }
 0x26d   :  { %v1380_v18 = vld [vmem:[#allocation7 + $0xf90] sm:$0xff]  ;;  %v8278_v26 = vcombine.high %v1252_v52, %v1256_v17  ;;  %v8277_v43 = vcombine.low %v1252_v52, %v1256_v17 }
 0x26e   :  { %4415 = vmatpush1.bf16.msra.mxu1 %v8189_v44  ;;  %v1384_v20 = vld [vmem:[#allocation7 + $0xfb0] sm:$0xff] }
 0x26f   :  { %4456 = vmatpush1.bf16.msra.mxu0 %v8317_v45  ;;  %4416 = vmatprep.subr.bf16.mxu1 %v8182_v46  ;;  %v8406_v27 = vcombine.high %v1380_v18, %v1384_v20  ;;  %v1244_v28 = vld [vmem:[#allocation7 + $0xb50] sm:$0xff]  ;;  %v8405_v44 = vcombine.low %v1380_v18, %v1384_v20 }
 0x270   :  { %4457 = vmatprep.subr.bf16.mxu0 %v8310_v47  ;;  %v1248_v29 = vld [vmem:[#allocation7 + $0xb70] sm:$0xff] }
 0x271   :  { %v1372_v41 = vld [vmem:[#allocation7 + $0xf50] sm:$0xff]  ;;  %v8270_v45 = vcombine.high %v1244_v28, %v1248_v29  ;;  %v8269_v54 = vcombine.low %v1244_v28, %v1248_v29 }
 0x272   :  { %4417 = vmatpush1.bf16.msra.mxu1 %v8181_v9  ;;  %v1376_v42 = vld [vmem:[#allocation7 + $0xf70] sm:$0xff] }
 0x273   :  { %4458 = vmatpush1.bf16.msra.mxu0 %v8309_v55  ;;  %4418 = vmatprep.subr.bf16.mxu1 %v8174_v56  ;;  %v8398_v46 = vcombine.high %v1372_v41, %v1376_v42  ;;  %v1236_v47 = vld [vmem:[#allocation7 + $0xb10] sm:$0xff]  ;;  %v8397_v9 = vcombine.low %v1372_v41, %v1376_v42 }
 0x274   :  { %4459 = vmatprep.subr.bf16.mxu0 %v8302_v57  ;;  %v1240_v48 = vld [vmem:[#allocation7 + $0xb30] sm:$0xff] }
 0x275   :  { %v1364_v33 = vld [vmem:[#allocation7 + $0xf10] sm:$0xff]  ;;  %v8262_v55 = vcombine.high %v1236_v47, %v1240_v48  ;;  %v8261_v63 = vcombine.low %v1236_v47, %v1240_v48  ;;  %v945_v47 = vld [vmem:[#allocation7 + $0x1f8] sm:$0xff] }
 0x276   :  { %4419 = vmatpush1.bf16.msra.mxu1 %v8173_v4  ;;  %v1368_v53 = vld [vmem:[#allocation7 + $0xf30] sm:$0xff]  ;;  %v1069_v48 = vld [vmem:[#allocation7 + $0x5d8] sm:$0xff] }
 0x277   :  { %4460 = vmatpush1.bf16.msra.mxu0 %v8301_v30  ;;  %4420 = vmatprep.subr.bf16.mxu1 %v8166_v5  ;;  %v8390_v56 = vcombine.high %v1364_v33, %v1368_v53  ;;  %v1228_v57 = vld [vmem:[#allocation7 + $0xad0] sm:$0xff]  ;;  %v8389_v4 = vcombine.low %v1364_v33, %v1368_v53  ;;  %v1073_v33 = vld [vmem:[#allocation7 + $0x5f8] sm:$0xff] }
 0x278   :  { %4461 = vmatprep.subr.bf16.mxu0 %v8294_v6  ;;  %v1232_v59 = vld [vmem:[#allocation7 + $0xaf0] sm:$0xff] }
 0x279   :  { %v1356_v11 = vld [vmem:[#allocation7 + $0xed0] sm:$0xff]  ;;  %v8254_v30 = vcombine.high %v1228_v57, %v1232_v59  ;;  %v8253_v14 = vcombine.low %v1228_v57, %v1232_v59  ;;  %v937_v57 = vld [vmem:[#allocation7 + $0x1b8] sm:$0xff]  ;;  %v1407_v59 = vrot.slane %v10300_v58, %v828_v34 }
 0x27a   :  { %4421 = vmatpush1.bf16.msra.mxu1 %v8165_v23  ;;  %v1360_v60 = vld [vmem:[#allocation7 + $0xef0] sm:$0xff]  ;;  %v1057_v34 = vld [vmem:[#allocation7 + $0x578] sm:$0xff] }
 0x27b   :  { %4462 = vmatpush1.bf16.msra.mxu0 %v8293_v24  ;;  %4422 = vmatprep.subr.bf16.mxu1 %v8286_v16  ;;  %v8382_v5 = vcombine.high %v1356_v11, %v1360_v60  ;;  %v1220_v6 = vld [vmem:[#allocation7 + $0xa90] sm:$0xff]  ;;  %v8381_v23 = vcombine.low %v1356_v11, %v1360_v60  ;;  %v1061_v60 = vld [vmem:[#allocation7 + $0x598] sm:$0xff] }
 0x27c   :  { %4463 = vmatprep.subr.bf16.mxu0 %v8414_v37  ;;  %v1224_v8 = vld [vmem:[#allocation7 + $0xab0] sm:$0xff] }
 0x27d   :  { %v1348_v12 = vld [vmem:[#allocation7 + $0xe90] sm:$0xff]  ;;  %v8246_v24 = vcombine.high %v1220_v6, %v1224_v8  ;;  %v8245_v20 = vcombine.low %v1220_v6, %v1224_v8  ;;  %v925_v6 = vld [vmem:[#allocation7 + $0x158] sm:$0xff] }
 0x27e   :  { %4423 = vmatpush2.bf16.msra.mxu1 %v8285_v21  ;;  %v1352_v13 = vld [vmem:[#allocation7 + $0xeb0] sm:$0xff]  ;;  %v929_v8 = vld [vmem:[#allocation7 + $0x178] sm:$0xff] }
 0x27f   :  { %4464 = vmatpush2.bf16.msra.mxu0 %v8413_v22  ;;  %4424 = vmatprep.subr.bf16.mxu1 %v8278_v26  ;;  %v8374_v16 = vcombine.high %v1348_v12, %v1352_v13  ;;  %v1212_v37 = vld [vmem:[#allocation7 + $0xa50] sm:$0xff]  ;;  %v8373_v21 = vcombine.low %v1348_v12, %v1352_v13 }
 0x280   :  { %4465 = vmatprep.subr.bf16.mxu0 %v8406_v27  ;;  %v1216_v52 = vld [vmem:[#allocation7 + $0xa70] sm:$0xff] }
 0x281   :  { %v1340_v17 = vld [vmem:[#allocation7 + $0xe50] sm:$0xff]  ;;  %v8238_v22 = vcombine.high %v1212_v37, %v1216_v52  ;;  %v8237_v42 = vcombine.low %v1212_v37, %v1216_v52 }
 0x282   :  { %4425 = vmatpush2.bf16.msra.mxu1 %v8277_v43  ;;  %v1344_v18 = vld [vmem:[#allocation7 + $0xe70] sm:$0xff] }
 0x283   :  { %4466 = vmatpush2.bf16.msra.mxu0 %v8405_v44  ;;  %4426 = vmatprep.subr.bf16.mxu1 %v8270_v45  ;;  %v8366_v26 = vcombine.high %v1340_v17, %v1344_v18  ;;  %v1204_v27 = vld [vmem:[#allocation7 + $0xa10] sm:$0xff]  ;;  %v8365_v43 = vcombine.low %v1340_v17, %v1344_v18 }
 0x284   :  { %4467 = vmatprep.subr.bf16.mxu0 %v8398_v46  ;;  %v1208_v28 = vld [vmem:[#allocation7 + $0xa30] sm:$0xff]  ;;  %v941_v46 = vld [vmem:[#allocation7 + $0x1d8] sm:$0xff] }
 0x285   :  { %v1332_v29 = vld [vmem:[#allocation7 + $0xe10] sm:$0xff]  ;;  %v8230_v44 = vcombine.high %v1204_v27, %v1208_v28  ;;  %v8229_v53 = vcombine.low %v1204_v27, %v1208_v28  ;;  %v7967_v11 = vcombine.low %v941_v46, %v945_v47  ;;  %v1045_v27 = vld [vmem:[#allocation7 + $0x518] sm:$0xff] }
 0x286   :  { %4427 = vmatpush2.bf16.msra.mxu1 %v8269_v54  ;;  %v1336_v41 = vld [vmem:[#allocation7 + $0xe30] sm:$0xff]  ;;  %v1049_v28 = vld [vmem:[#allocation7 + $0x538] sm:$0xff] }
 0x287   :  { %4468 = vmatpush2.bf16.msra.mxu0 %v8397_v9  ;;  %4428 = vmatprep.subr.bf16.mxu1 %v8262_v55  ;;  %v8358_v45 = vcombine.high %v1332_v29, %v1336_v41  ;;  %v8357_v54 = vcombine.low %v1332_v29, %v1336_v41  ;;  %v7968_v9 = vcombine.high %v941_v46, %v945_v47 }
 0x288   :  { %4469 = vmatprep.subr.bf16.mxu0 %v8390_v56  ;;  %v8096_v55 = vcombine.high %v1069_v48, %v1073_v33  ;;  %v933_v56 = vld [vmem:[#allocation7 + $0x198] sm:$0xff]  ;;  %v7951_v41 = vcombine.low %v925_v6, %v929_v8  ;;  %v8072_v47 = vcombine.high %v1045_v27, %v1049_v28 }
 0x28a   :  { %4429 = vmatpush2.bf16.msra.mxu1 %v8261_v63  ;;  %v1065_v63 = vld [vmem:[#allocation7 + $0x5b8] sm:$0xff] }
 0x28b   :  { %4470 = vmatpush2.bf16.msra.mxu0 %v8389_v4  ;;  %4430 = vmatprep.subr.bf16.mxu1 %v8254_v30  ;;  %v8095_v4 = vcombine.low %v1069_v48, %v1073_v33  ;;  %v1411_v30 = vrot.slane %v10300_v58, %v832_v38  ;;  %v8088_v13 = vcombine.high %v1061_v60, %v1065_v63  ;;  %v909_v48 = vld [vmem:[#allocation7 + $0xd8] sm:$0xff] }
 0x28c   :  { %4471 = vmatprep.subr.bf16.mxu0 %v8382_v5  ;;  %v7960_v5 = vcombine.high %v933_v56, %v937_v57  ;;  %v8087_v38 = vcombine.low %v1061_v60, %v1065_v63  ;;  %v7952_v58 = vcombine.high %v925_v6, %v929_v8  ;;  %v913_v33 = vld [vmem:[#allocation7 + $0xf8] sm:$0xff] }
 0x28d   :  { %v1029_v60 = vld [vmem:[#allocation7 + $0x498] sm:$0xff] }
 0x28e   :  { %4431 = vmatpush2.bf16.msra.mxu1 %v8253_v14  ;;  %v1053_v14 = vld [vmem:[#allocation7 + $0x558] sm:$0xff] }
 0x28f   :  { %4472 = vmatpush2.bf16.msra.mxu0 %v8381_v23  ;;  %4432 = vmatprep.subr.bf16.mxu1 %v8246_v24  ;;  %v1033_v63 = vld [vmem:[#allocation7 + $0x4b8] sm:$0xff] }
 0x290   :  { %4473 = vmatprep.subr.bf16.mxu0 %v8374_v16  ;;  %v7959_v16 = vcombine.low %v933_v56, %v937_v57  ;;  %v7936_v56 = vcombine.high %v909_v48, %v913_v33  ;;  %v8056_v6 = vcombine.high %v1029_v60, %v1033_v63  ;;  %v893_v8 = vld [vmem:[#allocation7 + $0x58] sm:$0xff] }
 0x292   :  { %4433 = vmatpush2.bf16.msra.mxu1 %v8245_v20  ;;  %v8080_v20 = vcombine.high %v1053_v14, %v1057_v34 }
 0x293   :  { %4474 = vmatpush2.bf16.msra.mxu0 %v8373_v21  ;;  %4434 = vmatprep.subr.bf16.mxu1 %v8238_v22  ;;  %v917_v21 = vld [vmem:[#allocation7 + $0x118] sm:$0xff] }
 0x294   :  { %4475 = vmatprep.subr.bf16.mxu0 %v8366_v26  ;;  %v921_v22 = vld [vmem:[#allocation7 + $0x138] sm:$0xff] }
 0x296   :  { %4435 = vmatpush2.bf16.msra.mxu1 %v8237_v42 }
 0x297   :  { %4476 = vmatpush2.bf16.msra.mxu0 %v8365_v43  ;;  %4436 = vmatprep.subr.bf16.mxu1 %v8230_v44  ;;  %v7944_v44 = vcombine.high %v917_v21, %v921_v22 }
 0x298   :  { %4477 = vmatprep.subr.bf16.mxu0 %v8358_v45 }
 0x29a   :  { %4437 = vmatpush2.bf16.msra.mxu1 %v8229_v53  ;;  %v1037_v53 = vld [vmem:[#allocation7 + $0x4d8] sm:$0xff] }
 0x29b   :  { %4478 = vmatpush2.bf16.msra.mxu0 %v8357_v54  ;;  %4488 = vmatprep.subr.bf16.mxu1 %v7968_v9  ;;  %v1041_v54 = vld [vmem:[#allocation7 + $0x4f8] sm:$0xff]  ;;  %v7943_v9 = vcombine.low %v917_v21, %v921_v22 }
 0x29c   :  { %4529 = vmatprep.subr.bf16.mxu0 %v8096_v55  ;;  %v8071_v55 = vcombine.low %v1045_v27, %v1049_v28  ;;  %v8064_v57 = vcombine.high %v1037_v53, %v1041_v54  ;;  %v1009_v27 = vld [vmem:[#allocation7 + $0x3f8] sm:$0xff] }
 0x29d   :  { %v4194_v12 = vpop.f32.mrf.mxu1  ;;  %4439 = vmatmul.mubr.bf16.vlgmr.msra.gmra.mxu1 %v10288_v7  ;;  %v1133_v28 = vld [vmem:[#allocation7 + $0x7d8] sm:$0xff] }
 0x29e   :  { %v4195_v23 = vadd.f32 %v4194_v12, %v1407_v59  ;;  %v4235_v24 = vpop.f32.mrf.mxu0  ;;  %4480 = vmatmul.mubr.bf16.vlgmr.msra.gmra.mxu0 %v10290_v15  ;;  %4489 = vmatpush1.bf16.msra.mxu1 %v7967_v11  ;;  %v901_v59 = vld [vmem:[#allocation7 + $0x98] sm:$0xff] }
 0x29f   :  { %4520 = vmatprep.mubr.bf16.mxu1 %v10239_v1  ;;  %4530 = vmatpush1.bf16.msra.mxu0 %v8095_v4  ;;  %v4196_v37 = vpop.f32.mrf.mxu1  ;;  %v905_v11 = vld [vmem:[#allocation7 + $0xb8] sm:$0xff]  ;;  %v7935_v4 = vcombine.low %v909_v48, %v913_v33 }
 0x2a0   :  { %v10346_v52 = vadd.f32 %v4235_v24, %v4195_v23  ;;  %4561 = vmatprep.mubr.bf16.mxu0 %v10241_v2  ;;  %v4197_v17 = vadd.f32 %v4196_v37, %v1411_v30  ;;  %v4237_v18 = vpop.f32.mrf.mxu0  ;;  %4490 = vmatprep.subr.bf16.mxu1 %v7960_v5  ;;  %v8079_v2 = vcombine.low %v1053_v14, %v1057_v34  ;;  %v897_v12 = vld [vmem:[#allocation7 + $0x78] sm:$0xff] }
 0x2a1   :  { %v4198_v26 = vpop.f32.mrf.mxu1  ;;  %4531 = vmatprep.subr.bf16.mxu0 %v8088_v13  ;;  %v8063_v30 = vcombine.low %v1037_v53, %v1041_v54  ;;  %v7928_v5 = vcombine.high %v901_v59, %v905_v11  ;;  %v1021_v13 = vld [vmem:[#allocation7 + $0x458] sm:$0xff]  ;;  %v7927_v34 = vcombine.low %v901_v59, %v905_v11  ;;  %v8055_v23 = vcombine.low %v1029_v60, %v1033_v63 }
 0x2a2   :  { %v10349_v29 = vadd.f32 %v4237_v18, %v4197_v17  ;;  %v4239_v1 = vpop.f32.mrf.mxu0  ;;  %4491 = vmatpush1.bf16.msra.mxu1 %v7959_v16  ;;  %v1025_v14 = vld [vmem:[#allocation7 + $0x478] sm:$0xff]  ;;  %v7920_v24 = vcombine.high %v893_v8, %v897_v12  ;;  %v7919_v18 = vcombine.low %v893_v8, %v897_v12 }
 0x2a3   :  { %4532 = vmatpush1.bf16.msra.mxu0 %v8087_v38  ;;  %v4199_v42 = vpop.f32.mrf.mxu1  ;;  %v5669_v43 = vpop.permute.xlu1 %5668  ;;  %4492 = vmatprep.subr.bf16.mxu1 %v7952_v58  ;;  %v8048_v16 = vcombine.high %v1021_v13, %v1025_v14  ;;  %v885_v37 = vld [vmem:[#allocation7 + $0x18] sm:$0xff] }
 0x2a4   :  { %v4240_v45 = vpop.f32.mrf.mxu0  ;;  %4533 = vmatprep.subr.bf16.mxu0 %v8080_v20  ;;  %v5671_v46 = vsel %vm4652_vm2, %v5669_v43, 0.0  ;;  %v889_v38 = vld [vmem:[#allocation7 + $0x38] sm:$0xff]  ;;  %v8047_v20 = vcombine.low %v1021_v13, %v1025_v14 }
 0x2a5   :  { %5672 = vadd.xlane.f32.xlu0 %v5671_v46  ;;  %v1013_v58 = vld [vmem:[#allocation7 + $0x418] sm:$0xff]  ;;  %v7912_v21 = vcombine.high %v885_v37, %v889_v38 }
 0x2a6   :  { %4493 = vmatpush1.bf16.msra.mxu1 %v7951_v41  ;;  %v1017_v17 = vld [vmem:[#allocation7 + $0x438] sm:$0xff]  ;;  %v7911_v41 = vcombine.low %v885_v37, %v889_v38 }
 0x2a7   :  { %4534 = vmatpush1.bf16.msra.mxu0 %v8079_v2  ;;  %4494 = vmatprep.subr.bf16.mxu1 %v7944_v44  ;;  %v8040_v22 = vcombine.high %v1013_v58, %v1017_v17  ;;  %v1005_v26 = vld [vmem:[#allocation7 + $0x3d8] sm:$0xff]  ;;  %v8039_v42 = vcombine.low %v1013_v58, %v1017_v17 }
 0x2a8   :  { %4535 = vmatprep.subr.bf16.mxu0 %v8072_v47  ;;  %v1137_v1 = vld [vmem:[#allocation7 + $0x7f8] sm:$0xff]  ;;  %v8032_v43 = vcombine.high %v1005_v26, %v1009_v27  ;;  %v8031_v48 = vcombine.low %v1005_v26, %v1009_v27 }
 0x2a9   :  { %v8160_v2 = vcombine.high %v1133_v28, %v1137_v1  ;;  %v997_v44 = vld [vmem:[#allocation7 + $0x398] sm:$0xff]  ;;  %v8159_v33 = vcombine.low %v1133_v28, %v1137_v1 }
 0x2aa   :  { %4495 = vmatpush1.bf16.msra.mxu1 %v7943_v9  ;;  %v1001_v45 = vld [vmem:[#allocation7 + $0x3b8] sm:$0xff] }
 0x2ab   :  { %4536 = vmatpush1.bf16.msra.mxu0 %v8071_v55  ;;  %4496 = vmatprep.subr.bf16.mxu1 %v7936_v56  ;;  %v1125_v46 = vld [vmem:[#allocation7 + $0x798] sm:$0xff]  ;;  %v8024_v53 = vcombine.high %v997_v44, %v1001_v45  ;;  %v8023_v59 = vcombine.low %v997_v44, %v1001_v45 }
 0x2ac   :  { %4537 = vmatprep.subr.bf16.mxu0 %v8064_v57  ;;  %v1129_v47 = vld [vmem:[#allocation7 + $0x7b8] sm:$0xff] }
 0x2ad   :  { %v8152_v54 = vcombine.high %v1125_v46, %v1129_v47  ;;  %v989_v9 = vld [vmem:[#allocation7 + $0x358] sm:$0xff]  ;;  %v8151_v11 = vcombine.low %v1125_v46, %v1129_v47 }
 0x2ae   :  { %4497 = vmatpush1.bf16.msra.mxu1 %v7935_v4  ;;  %v993_v55 = vld [vmem:[#allocation7 + $0x378] sm:$0xff] }
 0x2af   :  { %4538 = vmatpush1.bf16.msra.mxu0 %v8063_v30  ;;  %4498 = vmatprep.subr.bf16.mxu1 %v7928_v5  ;;  %v1117_v56 = vld [vmem:[#allocation7 + $0x758] sm:$0xff]  ;;  %v8016_v60 = vcombine.high %v989_v9, %v993_v55  ;;  %v8015_v8 = vcombine.low %v989_v9, %v993_v55 }
 0x2b0   :  { %4539 = vmatprep.subr.bf16.mxu0 %v8056_v6  ;;  %v1121_v57 = vld [vmem:[#allocation7 + $0x778] sm:$0xff] }
 0x2b1   :  { %v8144_v63 = vcombine.high %v1117_v56, %v1121_v57  ;;  %v981_v4 = vld [vmem:[#allocation7 + $0x318] sm:$0xff]  ;;  %v8143_v12 = vcombine.low %v1117_v56, %v1121_v57 }
 0x2b2   :  { %4499 = vmatpush1.bf16.msra.mxu1 %v7927_v34  ;;  %v985_v30 = vld [vmem:[#allocation7 + $0x338] sm:$0xff] }
 0x2b3   :  { %4540 = vmatpush1.bf16.msra.mxu0 %v8055_v23  ;;  %4500 = vmatprep.subr.bf16.mxu1 %v7920_v24  ;;  %v1109_v5 = vld [vmem:[#allocation7 + $0x718] sm:$0xff]  ;;  %v8008_v13 = vcombine.high %v981_v4, %v985_v30  ;;  %v8007_v37 = vcombine.low %v981_v4, %v985_v30 }
 0x2b4   :  { %4541 = vmatprep.subr.bf16.mxu0 %v8048_v16  ;;  %v1113_v6 = vld [vmem:[#allocation7 + $0x738] sm:$0xff] }
 0x2b5   :  { %v8136_v14 = vcombine.high %v1109_v5, %v1113_v6  ;;  %v973_v34 = vld [vmem:[#allocation7 + $0x2d8] sm:$0xff]  ;;  %v8135_v38 = vcombine.low %v1109_v5, %v1113_v6 }
 0x2b6   :  { %4501 = vmatpush1.bf16.msra.mxu1 %v7919_v18  ;;  %v977_v23 = vld [vmem:[#allocation7 + $0x2f8] sm:$0xff] }
 0x2b7   :  { %4542 = vmatpush1.bf16.msra.mxu0 %v8047_v20  ;;  %4502 = vmatprep.subr.bf16.mxu1 %v7912_v21  ;;  %v1101_v24 = vld [vmem:[#allocation7 + $0x6d8] sm:$0xff]  ;;  %v8000_v58 = vcombine.high %v973_v34, %v977_v23  ;;  %v7999_v26 = vcombine.low %v973_v34, %v977_v23 }
 0x2b8   :  { %4543 = vmatprep.subr.bf16.mxu0 %v8040_v22  ;;  %v1105_v16 = vld [vmem:[#allocation7 + $0x6f8] sm:$0xff] }
 0x2b9   :  { %v8128_v17 = vcombine.high %v1101_v24, %v1105_v16  ;;  %v965_v18 = vld [vmem:[#allocation7 + $0x298] sm:$0xff]  ;;  %v8127_v27 = vcombine.low %v1101_v24, %v1105_v16 }
 0x2ba   :  { %4503 = vmatpush1.bf16.msra.mxu1 %v7911_v41  ;;  %v969_v20 = vld [vmem:[#allocation7 + $0x2b8] sm:$0xff] }
 0x2bb   :  { %4544 = vmatpush1.bf16.msra.mxu0 %v8039_v42  ;;  %4504 = vmatprep.subr.bf16.mxu1 %v8032_v43  ;;  %v1093_v21 = vld [vmem:[#allocation7 + $0x698] sm:$0xff]  ;;  %v7992_v28 = vcombine.high %v965_v18, %v969_v20  ;;  %v7991_v44 = vcombine.low %v965_v18, %v969_v20 }
 0x2bc   :  { %4545 = vmatprep.subr.bf16.mxu0 %v8160_v2  ;;  %v1097_v22 = vld [vmem:[#allocation7 + $0x6b8] sm:$0xff] }
 0x2bd   :  { %v8120_v1 = vcombine.high %v1093_v21, %v1097_v22  ;;  %v957_v41 = vld [vmem:[#allocation7 + $0x258] sm:$0xff]  ;;  %v8119_v45 = vcombine.low %v1093_v21, %v1097_v22 }
 0x2be   :  { %4505 = vmatpush2.bf16.msra.mxu1 %v8031_v48  ;;  %v961_v42 = vld [vmem:[#allocation7 + $0x278] sm:$0xff] }
 0x2bf   :  { %4546 = vmatpush2.bf16.msra.mxu0 %v8159_v33  ;;  %4506 = vmatprep.subr.bf16.mxu1 %v8024_v53  ;;  %v1085_v43 = vld [vmem:[#allocation7 + $0x658] sm:$0xff]  ;;  %v7984_v46 = vcombine.high %v957_v41, %v961_v42  ;;  %v7983_v9 = vcombine.low %v957_v41, %v961_v42 }
 0x2c0   :  { %4547 = vmatprep.subr.bf16.mxu0 %v8152_v54  ;;  %v1089_v2 = vld [vmem:[#allocation7 + $0x678] sm:$0xff] }
 0x2c1   :  { %v8112_v47 = vcombine.high %v1085_v43, %v1089_v2  ;;  %v949_v48 = vld [vmem:[#allocation7 + $0x218] sm:$0xff]  ;;  %v8111_v55 = vcombine.low %v1085_v43, %v1089_v2 }
 0x2c2   :  { %4507 = vmatpush2.bf16.msra.mxu1 %v8023_v59  ;;  %v953_v33 = vld [vmem:[#allocation7 + $0x238] sm:$0xff] }
 0x2c3   :  { %4548 = vmatpush2.bf16.msra.mxu0 %v8151_v11  ;;  %4508 = vmatprep.subr.bf16.mxu1 %v8016_v60  ;;  %v1077_v53 = vld [vmem:[#allocation7 + $0x618] sm:$0xff]  ;;  %v7976_v56 = vcombine.high %v949_v48, %v953_v33  ;;  %v7975_v4 = vcombine.low %v949_v48, %v953_v33 }
 0x2c4   :  { %4549 = vmatprep.subr.bf16.mxu0 %v8144_v63  ;;  %v1081_v54 = vld [vmem:[#allocation7 + $0x638] sm:$0xff] }
 0x2c5   :  { %v8104_v57 = vcombine.high %v1077_v53, %v1081_v54  ;;  %v1197_v59 = vld [vmem:[#allocation7 + $0x9d8] sm:$0xff]  ;;  %v8103_v30 = vcombine.low %v1077_v53, %v1081_v54 }
 0x2c6   :  { %4509 = vmatpush2.bf16.msra.mxu1 %v8015_v8  ;;  %v1201_v11 = vld [vmem:[#allocation7 + $0x9f8] sm:$0xff] }
 0x2c7   :  { %4550 = vmatpush2.bf16.msra.mxu0 %v8143_v12  ;;  %4510 = vmatprep.subr.bf16.mxu1 %v8008_v13  ;;  %v1325_v60 = vld [vmem:[#allocation7 + $0xdd8] sm:$0xff]  ;;  %v8224_v5 = vcombine.high %v1197_v59, %v1201_v11  ;;  %v8223_v13 = vcombine.low %v1197_v59, %v1201_v11 }
 0x2c8   :  { %4551 = vmatprep.subr.bf16.mxu0 %v8136_v14  ;;  %v1329_v63 = vld [vmem:[#allocation7 + $0xdf8] sm:$0xff] }
 0x2c9   :  { %v8352_v6 = vcombine.high %v1325_v60, %v1329_v63  ;;  %v1189_v8 = vld [vmem:[#allocation7 + $0x998] sm:$0xff]  ;;  %v8351_v23 = vcombine.low %v1325_v60, %v1329_v63 }
 0x2ca   :  { %4511 = vmatpush2.bf16.msra.mxu1 %v8007_v37  ;;  %v1193_v12 = vld [vmem:[#allocation7 + $0x9b8] sm:$0xff] }
 0x2cb   :  { %4552 = vmatpush2.bf16.msra.mxu0 %v8135_v38  ;;  %4512 = vmatprep.subr.bf16.mxu1 %v8000_v58  ;;  %v1317_v14 = vld [vmem:[#allocation7 + $0xd98] sm:$0xff]  ;;  %v8216_v24 = vcombine.high %v1189_v8, %v1193_v12  ;;  %v8215_v22 = vcombine.low %v1189_v8, %v1193_v12 }
 0x2cc   :  { %4553 = vmatprep.subr.bf16.mxu0 %v8128_v17  ;;  %v1321_v34 = vld [vmem:[#allocation7 + $0xdb8] sm:$0xff] }
 0x2cd   :  { %v1181_v16 = vld [vmem:[#allocation7 + $0x958] sm:$0xff]  ;;  %v8344_v58 = vcombine.high %v1317_v14, %v1321_v34 }
 0x2ce   :  { %4513 = vmatpush2.bf16.msra.mxu1 %v7999_v26  ;;  %v1185_v37 = vld [vmem:[#allocation7 + $0x978] sm:$0xff] }
 0x2cf   :  { %4554 = vmatpush2.bf16.msra.mxu0 %v8127_v27  ;;  %4514 = vmatprep.subr.bf16.mxu1 %v7992_v28  ;;  %v1309_v17 = vld [vmem:[#allocation7 + $0xd58] sm:$0xff]  ;;  %v8343_v27 = vcombine.low %v1317_v14, %v1321_v34  ;;  %v8208_v28 = vcombine.high %v1181_v16, %v1185_v37 }
 0x2d0   :  { %4555 = vmatprep.subr.bf16.mxu0 %v8120_v1  ;;  %v1313_v18 = vld [vmem:[#allocation7 + $0xd78] sm:$0xff] }
 0x2d1   :  { %v1173_v42 = vld [vmem:[#allocation7 + $0x918] sm:$0xff] }
 0x2d2   :  { %4515 = vmatpush2.bf16.msra.mxu1 %v7991_v44  ;;  %v1177_v43 = vld [vmem:[#allocation7 + $0x938] sm:$0xff] }
 0x2d3   :  { %4556 = vmatpush2.bf16.msra.mxu0 %v8119_v45  ;;  %4516 = vmatprep.subr.bf16.mxu1 %v7984_v46  ;;  %v1301_v2 = vld [vmem:[#allocation7 + $0xd18] sm:$0xff]  ;;  %v8207_v46 = vcombine.low %v1181_v16, %v1185_v37  ;;  %v8200_v48 = vcombine.high %v1173_v42, %v1177_v43 }
 0x2d4   :  { %4557 = vmatprep.subr.bf16.mxu0 %v8112_v47  ;;  %v1305_v44 = vld [vmem:[#allocation7 + $0xd38] sm:$0xff] }
 0x2d5   :  { %v8328_v33 = vcombine.high %v1301_v2, %v1305_v44  ;;  %v1165_v53 = vld [vmem:[#allocation7 + $0x8d8] sm:$0xff] }
 0x2d6   :  { %4517 = vmatpush2.bf16.msra.mxu1 %v7983_v9  ;;  %v1169_v54 = vld [vmem:[#allocation7 + $0x8f8] sm:$0xff] }
 0x2d7   :  { %4558 = vmatpush2.bf16.msra.mxu0 %v8111_v55  ;;  %4518 = vmatprep.subr.bf16.mxu1 %v7976_v56  ;;  %v1293_v9 = vld [vmem:[#allocation7 + $0xcd8] sm:$0xff]  ;;  %v8199_v56 = vcombine.low %v1173_v42, %v1177_v43  ;;  %v8192_v59 = vcombine.high %v1165_v53, %v1169_v54 }
 0x2d8   :  { %4559 = vmatprep.subr.bf16.mxu0 %v8104_v57  ;;  %v1297_v55 = vld [vmem:[#allocation7 + $0xcf8] sm:$0xff]  ;;  %v8327_v57 = vcombine.low %v1301_v2, %v1305_v44 }
 0x2d9   :  { %v8320_v11 = vcombine.high %v1293_v9, %v1297_v55  ;;  %v1157_v60 = vld [vmem:[#allocation7 + $0x898] sm:$0xff] }
 0x2da   :  { %4519 = vmatpush2.bf16.msra.mxu1 %v7975_v4  ;;  %v1161_v63 = vld [vmem:[#allocation7 + $0x8b8] sm:$0xff] }
 0x2db   :  { %4560 = vmatpush2.bf16.msra.mxu0 %v8103_v30  ;;  %4570 = vmatprep.subr.bf16.mxu1 %v8224_v5  ;;  %v1285_v4 = vld [vmem:[#allocation7 + $0xc98] sm:$0xff]  ;;  %v8191_v5 = vcombine.low %v1165_v53, %v1169_v54  ;;  %v8184_v8 = vcombine.high %v1157_v60, %v1161_v63 }
 0x2dc   :  { %4611 = vmatprep.subr.bf16.mxu0 %v8352_v6  ;;  %v1289_v30 = vld [vmem:[#allocation7 + $0xcb8] sm:$0xff]  ;;  %v8319_v6 = vcombine.low %v1293_v9, %v1297_v55 }
 0x2dd   :  { %v4276_v38 = vpop.f32.mrf.mxu1  ;;  %4521 = vmatmul.mubr.bf16.vlgmr.msra.gmra.mxu1 %v10237_v61  ;;  %v8312_v12 = vcombine.high %v1285_v4, %v1289_v30  ;;  %v1153_v14 = vld [vmem:[#allocation7 + $0x878] sm:$0xff]  ;;  %v8311_v16 = vcombine.low %v1285_v4, %v1289_v30 }
 0x2de   :  { %v4277_v20 = vadd.f32 %v4276_v38, %v10346_v52  ;;  %v4317_v21 = vpop.f32.mrf.mxu0  ;;  %4562 = vmatmul.mubr.bf16.vlgmr.msra.gmra.mxu0 %v10243_v3  ;;  %4571 = vmatpush1.bf16.msra.mxu1 %v8223_v13  ;;  %v8336_v52 = vcombine.high %v1309_v17, %v1313_v18  ;;  %v1149_v13 = vld [vmem:[#allocation7 + $0x858] sm:$0xff] }
 0x2df   :  { %4602 = vmatprep.mubr.bf16.mxu1 %v10267_v39  ;;  %4612 = vmatpush1.bf16.msra.mxu0 %v8351_v23  ;;  %v4278_v26 = vpop.f32.mrf.mxu1  ;;  %v1277_v34 = vld [vmem:[#allocation7 + $0xc58] sm:$0xff]  ;;  %v8176_v37 = vcombine.high %v1149_v13, %v1153_v14 }
 0x2e0   :  { %v10356_v1 = vadd.f32 %v4317_v21, %v4277_v20  ;;  %4643 = vmatprep.mubr.bf16.mxu0 %v10269_v40  ;;  %v4279_v61 = vadd.f32 %v4278_v26, %v10349_v29  ;;  %v4319_v41 = vpop.f32.mrf.mxu0  ;;  %4572 = vmatprep.subr.bf16.mxu1 %v8216_v24  ;;  %v8335_v40 = vcombine.low %v1309_v17, %v1313_v18  ;;  %v1281_v23 = vld [vmem:[#allocation7 + $0xc78] sm:$0xff] }
 0x2e1   :  { %v4280_v3 = vpop.f32.mrf.mxu1  ;;  %4613 = vmatprep.subr.bf16.mxu0 %v8344_v58  ;;  %v8183_v24 = vcombine.low %v1157_v60, %v1161_v63  ;;  %v8304_v38 = vcombine.high %v1277_v34, %v1281_v23  ;;  %v1141_v58 = vld [vmem:[#allocation7 + $0x818] sm:$0xff]  ;;  %v8175_v21 = vcombine.low %v1149_v13, %v1153_v14 }
 0x2e2   :  { %v10360_v39 = vadd.f32 %v4319_v41, %v4279_v61  ;;  %v4321_v45 = vpop.f32.mrf.mxu0  ;;  %4573 = vmatpush1.bf16.msra.mxu1 %v8215_v22  ;;  %v1145_v17 = vld [vmem:[#allocation7 + $0x838] sm:$0xff]  ;;  %v8303_v22 = vcombine.low %v1277_v34, %v1281_v23 }
 0x2e3   :  { %4614 = vmatpush1.bf16.msra.mxu0 %v8343_v27  ;;  %v4281_v47 = vpop.f32.mrf.mxu1  ;;  %4574 = vmatprep.subr.bf16.mxu1 %v8208_v28  ;;  %v1269_v18 = vld [vmem:[#allocation7 + $0xc18] sm:$0xff]  ;;  %v8168_v26 = vcombine.high %v1141_v58, %v1145_v17  ;;  %v8167_v42 = vcombine.low %v1141_v58, %v1145_v17 }
 0x2e4   :  { %v4322_v29 = vpop.f32.mrf.mxu0  ;;  %4615 = vmatprep.subr.bf16.mxu0 %v8336_v52  ;;  %v1273_v20 = vld [vmem:[#allocation7 + $0xc38] sm:$0xff] }
 0x2e5   :  { %v8296_v27 = vcombine.high %v1269_v18, %v1273_v20  ;;  %v1261_v28 = vld [vmem:[#allocation7 + $0xbd8] sm:$0xff]  ;;  %v8295_v43 = vcombine.low %v1269_v18, %v1273_v20 }
 0x2e6   :  { %4575 = vmatpush1.bf16.msra.mxu1 %v8207_v46  ;;  %v1265_v61 = vld [vmem:[#allocation7 + $0xbf8] sm:$0xff] }
 0x2e7   :  { %4616 = vmatpush1.bf16.msra.mxu0 %v8335_v40  ;;  %4576 = vmatprep.subr.bf16.mxu1 %v8200_v48  ;;  %v1389_v41 = vld [vmem:[#allocation7 + $0xfd8] sm:$0xff]  ;;  %v8288_v3 = vcombine.high %v1261_v28, %v1265_v61  ;;  %v8287_v40 = vcombine.low %v1261_v28, %v1265_v61 }
 0x2e8   :  { %4617 = vmatprep.subr.bf16.mxu0 %v8328_v33  ;;  %v1393_v52 = vld [vmem:[#allocation7 + $0xff8] sm:$0xff] }
 0x2e9   :  { %v8416_v2 = vcombine.high %v1389_v41, %v1393_v52  ;;  %v1253_v44 = vld [vmem:[#allocation7 + $0xb98] sm:$0xff]  ;;  %v8415_v48 = vcombine.low %v1389_v41, %v1393_v52 }
 0x2ea   :  { %4577 = vmatpush1.bf16.msra.mxu1 %v8199_v56  ;;  %v1257_v45 = vld [vmem:[#allocation7 + $0xbb8] sm:$0xff] }
 0x2eb   :  { %4618 = vmatpush1.bf16.msra.mxu0 %v8327_v57  ;;  %4578 = vmatprep.subr.bf16.mxu1 %v8192_v59  ;;  %v1381_v46 = vld [vmem:[#allocation7 + $0xf98] sm:$0xff]  ;;  %v8280_v29 = vcombine.high %v1253_v44, %v1257_v45  ;;  %v8279_v56 = vcombine.low %v1253_v44, %v1257_v45 }
 0x2ec   :  { %4619 = vmatprep.subr.bf16.mxu0 %v8320_v11  ;;  %v1385_v47 = vld [vmem:[#allocation7 + $0xfb8] sm:$0xff] }
 0x2ed   :  { %v8408_v33 = vcombine.high %v1381_v46, %v1385_v47  ;;  %v1245_v53 = vld [vmem:[#allocation7 + $0xb58] sm:$0xff]  ;;  %v8407_v57 = vcombine.low %v1381_v46, %v1385_v47 }
 0x2ee   :  { %4579 = vmatpush1.bf16.msra.mxu1 %v8191_v5  ;;  %v1249_v54 = vld [vmem:[#allocation7 + $0xb78] sm:$0xff] }
 0x2ef   :  { %4620 = vmatpush1.bf16.msra.mxu0 %v8319_v6  ;;  %4580 = vmatprep.subr.bf16.mxu1 %v8184_v8  ;;  %v1373_v9 = vld [vmem:[#allocation7 + $0xf58] sm:$0xff]  ;;  %v8272_v59 = vcombine.high %v1245_v53, %v1249_v54  ;;  %v8271_v5 = vcombine.low %v1245_v53, %v1249_v54 }
 0x2f0   :  { %4621 = vmatprep.subr.bf16.mxu0 %v8312_v12  ;;  %v1377_v55 = vld [vmem:[#allocation7 + $0xf78] sm:$0xff] }
 0x2f1   :  { %v8400_v11 = vcombine.high %v1373_v9, %v1377_v55  ;;  %v1237_v60 = vld [vmem:[#allocation7 + $0xb18] sm:$0xff]  ;;  %v8399_v6 = vcombine.low %v1373_v9, %v1377_v55  ;;  %v4665_v55 = vld [vmem:[#allocation10] sm:$0xff] }
 0x2f2   :  { %4581 = vmatpush1.bf16.msra.mxu1 %v8183_v24  ;;  %v1241_v63 = vld [vmem:[#allocation7 + $0xb38] sm:$0xff] }
 0x2f3   :  { %4622 = vmatpush1.bf16.msra.mxu0 %v8311_v16  ;;  %4582 = vmatprep.subr.bf16.mxu1 %v8176_v37  ;;  %v1365_v4 = vld [vmem:[#allocation7 + $0xf18] sm:$0xff]  ;;  %v8264_v8 = vcombine.high %v1237_v60, %v1241_v63  ;;  %v8263_v24 = vcombine.low %v1237_v60, %v1241_v63  ;;  %v4666_v63 = vld [vmem:[#allocation10 + $0x8] sm:$0xff] }
 0x2f4   :  { %4623 = vmatprep.subr.bf16.mxu0 %v8304_v38  ;;  %v1369_v30 = vld [vmem:[#allocation7 + $0xf38] sm:$0xff] }
 0x2f5   :  { %v8392_v12 = vcombine.high %v1365_v4, %v1369_v30  ;;  %v1229_v13 = vld [vmem:[#allocation7 + $0xad8] sm:$0xff]  ;;  %v8391_v16 = vcombine.low %v1365_v4, %v1369_v30  ;;  %v4670_v4 = vld [vmem:[#allocation10 + $0x28] sm:$0xff]  ;;  %v10366_v30 = vld [vmem:[#allocation9] sm:$0xff] }
 0x2f6   :  { %4583 = vmatpush1.bf16.msra.mxu1 %v8175_v21  ;;  %v1233_v14 = vld [vmem:[#allocation7 + $0xaf8] sm:$0xff] }
 0x2f7   :  { %4624 = vmatpush1.bf16.msra.mxu0 %v8303_v22  ;;  %4584 = vmatprep.subr.bf16.mxu1 %v8168_v26  ;;  %v1357_v34 = vld [vmem:[#allocation7 + $0xed8] sm:$0xff]  ;;  %v8256_v37 = vcombine.high %v1229_v13, %v1233_v14  ;;  %v8255_v21 = vcombine.low %v1229_v13, %v1233_v14 }
 0x2f8   :  { %4625 = vmatprep.subr.bf16.mxu0 %v8296_v27  ;;  %v1361_v23 = vld [vmem:[#allocation7 + $0xef8] sm:$0xff]  ;;  %v4661_v27 = vpop.xlane.xlu0 %4660 }
 0x2f9   :  { %v8384_v38 = vcombine.high %v1357_v34, %v1361_v23  ;;  %v1221_v58 = vld [vmem:[#allocation7 + $0xa98] sm:$0xff]  ;;  %v8383_v22 = vcombine.low %v1357_v34, %v1361_v23  ;;  %9623 = vrcp.f32 %v4661_v27  ;;  %v1419_v34 = vrot.slane %v10366_v30, %v840_v49 }
 0x2fa   :  { %4585 = vmatpush1.bf16.msra.mxu1 %v8167_v42  ;;  %v1225_v17 = vld [vmem:[#allocation7 + $0xab8] sm:$0xff]  ;;  %v10380_v23 = vcombine.high %v4666_v63, %v4670_v4  ;;  %v10399_v27 = vcombine.low %v4666_v63, %v4670_v4 }
 0x2fb   :  { %4626 = vmatpush1.bf16.msra.mxu0 %v8295_v43  ;;  %4586 = vmatprep.subr.bf16.mxu1 %v8288_v3  ;;  %v1349_v18 = vld [vmem:[#allocation7 + $0xe98] sm:$0xff]  ;;  %v8248_v26 = vcombine.high %v1221_v58, %v1225_v17  ;;  %v8247_v43 = vcombine.low %v1221_v58, %v1225_v17 }
 0x2fc   :  { %4627 = vmatprep.subr.bf16.mxu0 %v8416_v2  ;;  %v1353_v20 = vld [vmem:[#allocation7 + $0xeb8] sm:$0xff] }
 0x2fd   :  { %v8376_v28 = vcombine.high %v1349_v18, %v1353_v20  ;;  %v1213_v61 = vld [vmem:[#allocation7 + $0xa58] sm:$0xff]  ;;  %v8375_v3 = vcombine.low %v1349_v18, %v1353_v20 }
 0x2fe   :  { %4587 = vmatpush2.bf16.msra.mxu1 %v8287_v40  ;;  %v1217_v41 = vld [vmem:[#allocation7 + $0xa78] sm:$0xff] }
 0x2ff   :  { %4628 = vmatpush2.bf16.msra.mxu0 %v8415_v48  ;;  %4588 = vmatprep.subr.bf16.mxu1 %v8280_v29  ;;  %v1341_v52 = vld [vmem:[#allocation7 + $0xe58] sm:$0xff]  ;;  %v8240_v2 = vcombine.high %v1213_v61, %v1217_v41  ;;  %v8239_v48 = vcombine.low %v1213_v61, %v1217_v41 }
 0x300   :  { %4629 = vmatprep.subr.bf16.mxu0 %v8408_v33  ;;  %v1345_v42 = vld [vmem:[#allocation7 + $0xe78] sm:$0xff] }
 0x301   :  { %v8368_v44 = vcombine.high %v1341_v52, %v1345_v42  ;;  %v1205_v45 = vld [vmem:[#allocation7 + $0xa18] sm:$0xff]  ;;  %v8367_v29 = vcombine.low %v1341_v52, %v1345_v42  ;;  %v9404_v42 = vld [vmem:[%s11252_s8 + $0x78] sm:$0xff]  }
 0x302   :  { %4589 = vmatpush2.bf16.msra.mxu1 %v8279_v56  ;;  %v1209_v46 = vld [vmem:[#allocation7 + $0xa38] sm:$0xff]  ;;  %v4669_v56 = vld [vmem:[#allocation10 + $0x20] sm:$0xff] }
 0x303   :  { %4630 = vmatpush2.bf16.msra.mxu0 %v8407_v57  ;;  %4590 = vmatprep.subr.bf16.mxu1 %v8272_v59  ;;  %v1333_v47 = vld [vmem:[#allocation7 + $0xe18] sm:$0xff]  ;;  %v8232_v33 = vcombine.high %v1205_v45, %v1209_v46  ;;  %v8231_v57 = vcombine.low %v1205_v45, %v1209_v46  ;;  %v10364_v60 = vcombine.high %v4665_v55, %v4669_v56  ;;  %v9407_v45 = vld [vmem:[%s11252_s8 + $0x30] sm:$0xff]  }
 0x304   :  { %4631 = vmatprep.subr.bf16.mxu0 %v8400_v11  ;;  %v1337_v40 = vld [vmem:[#allocation7 + $0xe38] sm:$0xff]  ;;  %v10373_v13 = vcombine.low %v4665_v55, %v4669_v56  ;;  %v9413_v46 = vld [vmem:[%s11252_s8 + $0xf0] sm:$0xff]   ;;  %v9416_v55 = vld [vmem:[%s11252_s8 + $0x58] sm:$0xff]  }
 0x305   :  { %v8360_v53 = vcombine.high %v1333_v47, %v1337_v40  ;;  %v4667_v54 = vld [vmem:[#allocation10 + $0x10] sm:$0xff]  ;;  %v8359_v59 = vcombine.low %v1333_v47, %v1337_v40 }
 0x306   :  { %4591 = vmatpush2.bf16.msra.mxu1 %v8271_v5  ;;  %v4671_v9 = vld [vmem:[#allocation10 + $0x30] sm:$0xff]  ;;  %v1415_v5 = vrot.slane %v10366_v30, %v836_v19  ;;  %v9624_v14 = vpop.eup %9623 }
 0x307   :  { %4632 = vmatpush2.bf16.msra.mxu0 %v8399_v6  ;;  %4592 = vmatprep.subr.bf16.mxu1 %v8264_v8  ;;  %v10362_v11 = vcombine.high %v4667_v54, %v4671_v9  ;;  %v10371_v6 = vcombine.low %v4667_v54, %v4671_v9  ;;  %v4668_v8 = vld [vmem:[#allocation10 + $0x18] sm:$0xff]  ;;  %v4663_v49 = vmul.f32 %v9624_v14, %v10320_v31  ;;  %v9408_v40 = vld [vmem:[%s11252_s8 + $0x68] sm:$0xff]   ;;  %v9414_v9 = vld [vmem:[%s11252_s8 + $0x20] sm:$0xff]  }
 0x308   :  { %4633 = vmatprep.subr.bf16.mxu0 %v8392_v12  ;;  %v4672_v12 = vld [vmem:[#allocation10 + $0x38] sm:$0xff] }
 0x309   :  { %v10383_v19 = vcombine.high %v4668_v8, %v4672_v12 }
 0x30a   :  { %4593 = vmatpush2.bf16.msra.mxu1 %v8263_v24 }
 0x30b   :  { %4634 = vmatpush2.bf16.msra.mxu0 %v8391_v16  ;;  %4594 = vmatprep.subr.bf16.mxu1 %v8256_v37 }
 0x30c   :  { %4635 = vmatprep.subr.bf16.mxu0 %v8384_v38 }
 0x30e   :  { %4595 = vmatpush2.bf16.msra.mxu1 %v8255_v21  ;;  %v10397_v21 = vcombine.low %v4668_v8, %v4672_v12 }
 0x30f   :  { %4636 = vmatpush2.bf16.msra.mxu0 %v8383_v22  ;;  %4596 = vmatprep.subr.bf16.mxu1 %v8248_v26  ;;  %v4664_v26 = vpack.c.bf16 %v4663_v49, %v4663_v49 }
 0x310   :  { %4637 = vmatprep.subr.bf16.mxu0 %v8376_v28  ;;  %v6633_v28 = vpop.xlane.xlu1 %6632 }
 0x311   :  { %v6634_v41 = vsub.f32 %v10283_v51, %v6633_v28  ;;  %v9411_v51 = vld [vmem:[%s11252_s8 + $0xb8] sm:$0xff]   ;;  %v9430_v28 = vld [vmem:[%s11252_s8] sm:$0xff]  }
 0x312   :  { %4597 = vmatpush2.bf16.msra.mxu1 %v8247_v43  ;;  %v9405_v43 = vld [vmem:[%s11252_s8 + $0x38] sm:$0xff]  }
 0x313   :  { %4638 = vmatpush2.bf16.msra.mxu0 %v8375_v3  ;;  %4598 = vmatprep.subr.bf16.mxu1 %v8240_v2  ;;  %v6635_v52 = vmul.f32 1.442695, %v6634_v41  ;;  %v9406_v3 = vld [vmem:[%s11252_s8 + $0x70] sm:$0xff]   ;;  %v9409_v2 = vld [vmem:[%s11252_s8 + $0xf8] sm:$0xff]   ;;  %v9432_v41 = vld [vmem:[%s11252_s8 + $0xc8] sm:$0xff]  }
 0x314   :  { %4639 = vmatprep.subr.bf16.mxu0 %v8368_v44 }
 0x316   :  { %4599 = vmatpush2.bf16.msra.mxu1 %v8239_v48  ;;  %v9415_v48 = vld [vmem:[%s11252_s8 + $0xb0] sm:$0xff]  }
 0x317   :  { %4640 = vmatpush2.bf16.msra.mxu0 %v8367_v29  ;;  %4600 = vmatprep.subr.bf16.mxu1 %v8232_v33  ;;  %v9417_v33 = vld [vmem:[%s11252_s8 + $0xe8] sm:$0xff]  }
 0x318   :  { %4641 = vmatprep.subr.bf16.mxu0 %v8360_v53  ;;  %v9412_v53 = vld [vmem:[%s11252_s8 + $0x60] sm:$0xff]  }
 0x31a   :  { %4601 = vmatpush2.bf16.msra.mxu1 %v8231_v57  ;;  %v9418_v57 = vld [vmem:[%s11252_s8 + $0x18] sm:$0xff]  }
 0x31b   :  { %4642 = vmatpush2.bf16.msra.mxu0 %v8359_v59  ;;  %4812 = vmatprep.subr.bf16.mxu1 %v10362_v11  ;;  %v9419_v59 = vld [vmem:[%s11252_s8 + $0xa8] sm:$0xff]  }
 0x31c   :  { %4730 = vmatprep.subr.bf16.mxu0 %v10364_v60 }
 0x31d   :  { %v4358_v24 = vpop.f32.mrf.mxu1  ;;  %4603 = vmatmul.mubr.bf16.vlgmr.msra.gmra.mxu1 %v10288_v7 }
 0x31e   :  { %v4359_v16 = vadd.f32 %v4358_v24, %v1415_v5  ;;  %v4399_v37 = vpop.f32.mrf.mxu0  ;;  %4644 = vmatmul.mubr.bf16.vlgmr.msra.gmra.mxu0 %v10290_v15  ;;  %4813 = vmatpush1.bf16.msra.mxu1 %v10371_v6  ;;  %v9421_v24 = vld [vmem:[%s11252_s8 + $0xe0] sm:$0xff]  }
 0x31f   :  { %4731 = vmatpush1.bf16.msra.mxu0 %v10373_v13  ;;  %v4360_v38 = vpop.f32.mrf.mxu1  ;;  %4748 = vmatprep.mubr.bf16.mxu0 %v9848_v0 }
 0x320   :  { %v10390_v58 = vadd.f32 %v4399_v37, %v4359_v16  ;;  %v4361_v17 = vadd.f32 %v4360_v38, %v1419_v34  ;;  %v4401_v18 = vpop.f32.mrf.mxu0  ;;  %4830 = vmatprep.mubr.bf16.mxu1 %v9848_v0  ;;  %4771 = vmatprep.subr.bf16.mxu0 %v10380_v23  ;;  %v9420_v34 = vld [vmem:[%s11252_s8 + $0x50] sm:$0xff]   ;;  %v9423_v38 = vld [vmem:[%s11252_s8 + $0xa0] sm:$0xff]  }
 0x321   :  { %v4362_v7 = vpop.f32.mrf.mxu1  ;;  %4853 = vmatprep.subr.bf16.mxu1 %v10383_v19  ;;  %v9422_v37 = vld [vmem:[%s11252_s8 + $0x10] sm:$0xff]  }
 0x322   :  { %v10395_v15 = vadd.f32 %v4401_v18, %v4361_v17  ;;  %v4403_v20 = vpop.f32.mrf.mxu0  ;;  %v9424_v7 = vld [vmem:[%s11252_s8 + $0x48] sm:$0xff]  }
 0x323   :  { %v4363_v22 = vpop.f32.mrf.mxu1  ;;  %v9426_v20 = vld [vmem:[%s11252_s8 + $0x8] sm:$0xff]  }
 0x324   :  { %v4404_v31 = vpop.f32.mrf.mxu0  ;;  %v9427_v22 = vld [vmem:[%s11252_s8 + $0x98] sm:$0xff]  }
 0x325   :  { %8427 = vmatmul.mubr.msk.bf16.vlgmr.msra.gmra.mxu1 %vm4652_vm2, %v4664_v26  ;;  %v9429_v31 = vld [vmem:[%s11252_s8 + $0xd0] sm:$0xff]  }
 0x326   :  { %8425 = vmatmul.mubr.msk.bf16.vlgmr.msra.gmra.mxu0 %vm4652_vm2, %v4664_v26  ;;  %4854 = vmatpush1.bf16.msra.mxu1 %v10397_v21 }
 0x327   :  { %4772 = vmatpush1.bf16.msra.mxu0 %v10399_v27  ;;  %4789 = vmatprep.mubr.bf16.mxu0 %v9848_v0 }
 0x328   :  { %4871 = vmatprep.mubr.bf16.mxu1 %v9848_v0  ;;  %8944 = vmatprep.subr.bf16.mxu0 %v9404_v42  ;;  %v9434_v42 = vld [vmem:[%s11252_s8 + $0x88] sm:$0xff]  }
 0x329   :  { %8966 = vmatprep.subr.bf16.mxu1 %v9409_v2  ;;  %v9441_v2 = vld [vmem:[%s11252_s8 + $0x1f8] sm:$0xff]  }
 0x32d   :  { %8428 = vmatmul.mubr.msk.bf16.vlgmr.msra.gmra.mxu1 %vm4652_vm2, %v4664_v26 }
 0x32e   :  { %8426 = vmatmul.mubr.msk.bf16.vlgmr.msra.gmra.mxu0 %vm4652_vm2, %v4664_v26  ;;  %v5673_v61 = vpop.xlane.xlu0 %5672  ;;  %8967 = vmatpush3.bf16.msra.mxu1 %v9411_v51  ;;  %v9428_v26 = vld [vmem:[%s11252_s8 + $0x40] sm:$0xff]   ;;  %v1423_v51 = vrot.slane %v10366_v30, %v844_v25 }
 0x32f   :  { %9625 = vrcp.f32 %v5673_v61  ;;  %8945 = vmatpush3.bf16.msra.mxu0 %v9405_v43  ;;  %8968 = vmatprep.subr.bf16.mxu1 %v9413_v46  ;;  %v9431_v61 = vld [vmem:[%s11252_s8 + $0x90] sm:$0xff]   ;;  %v9436_v43 = vld [vmem:[%s11252_s8 + $0xc0] sm:$0xff]  }
 0x330   :  { %9627 = vpow2.f32 %v6635_v52  ;;  %8946 = vmatprep.subr.bf16.mxu0 %v9406_v3  ;;  %v9433_v52 = vld [vmem:[%s11252_s8 + $0x178] sm:$0xff]   ;;  %v9438_v3 = vld [vmem:[%s11252_s8 + $0x80] sm:$0xff]  }
 0x332   :  { %8969 = vmatpush3.bf16.msra.mxu1 %v9415_v48 }
 0x333   :  { %8947 = vmatpush3.bf16.msra.mxu0 %v9407_v45  ;;  %8970 = vmatprep.subr.bf16.mxu1 %v9417_v33 }
 0x334   :  { %8948 = vmatprep.subr.bf16.mxu0 %v9408_v40 }
 0x336   :  { %8971 = vmatpush3.bf16.msra.mxu1 %v9419_v59 }
 0x337   :  { %8972 = vmatprep.subr.bf16.mxu1 %v9421_v24 }
 0x33a   :  { %8973 = vmatpush3.bf16.msra.mxu1 %v9423_v38 }
 0x33c   :  { %v9626_v44 = vpop.eup %9625 }
 0x33d   :  { %v5675_v47 = vmul.f32 %v9626_v44, %v10318_v35  ;;  %v9410_v35 = vld [vmem:[%s11252_s8 + $0x28] sm:$0xff]   ;;  %v10448_v54 = vpop.eup %9627  ;;  %v1427_v44 = vrot.slane %v10366_v30, %v848_v50 }
 0x33e   :  { %8949 = vmatpush3.bf16.msra.mxu0 %v9410_v35 }
 0x33f   :  { %v5676_v29 = vpack.c.bf16 %v5675_v47, %v5675_v47  ;;  %8950 = vmatprep.subr.bf16.mxu0 %v9412_v53 }
 0x341   :  { %5678 = vrot.lane.b32.xlu0 %v5676_v29, %s9851_s3 }
 0x342   :  { %8951 = vmatpush3.bf16.msra.mxu0 %v9414_v9 }
 0x343   :  { %8952 = vmatprep.subr.bf16.mxu0 %v9416_v55 }
 0x345   :  { %6638 = vrot.lane.b32.xlu0 %v10448_v54, %s9852_s7 }
 0x346   :  { %8953 = vmatpush3.bf16.msra.mxu0 %v9418_v57 }
 0x347   :  { %8954 = vmatprep.subr.bf16.mxu0 %v9420_v34 }
 0x34a   :  { %8955 = vmatpush3.bf16.msra.mxu0 %v9422_v37 }
 0x34b   :  { %8956 = vmatprep.subr.bf16.mxu0 %v9424_v7 }
 0x34e   :  { %8957 = vmatpush3.bf16.msra.mxu0 %v9426_v20 }
 0x34f   :  { %8958 = vmatprep.subr.bf16.mxu0 %v9428_v26 }
 0x352   :  { %8959 = vmatpush3.bf16.msra.mxu0 %v9430_v28 }
 0x353   :  { %8988 = vmatprep.subr.bf16.mxu0 %v9433_v52 }
 0x35d   :  { %v4440_v56 = vpop.f32.mrf.mxu1 }
 0x35e   :  { %v4441_v63 = vadd.f32 %v4440_v56, %v10390_v58  ;;  %v4481_v4 = vpop.f32.mrf.mxu0 }
 0x35f   :  { %v4442_v5 = vpop.f32.mrf.mxu1 }
 0x360   :  { %v10465_v8 = vadd.f32 %v4481_v4, %v4441_v63  ;;  %v4443_v12 = vadd.f32 %v4442_v5, %v10395_v15  ;;  %v4483_v14 = vpop.f32.mrf.mxu0  ;;  %v9425_v15 = vld [vmem:[%s11252_s8 + $0xd8] sm:$0xff]  }
 0x361   :  { %v4444_v16 = vpop.f32.mrf.mxu1  ;;  %8974 = vmatprep.subr.bf16.mxu1 %v9425_v15 }
 0x362   :  { %v10480_v49 = vadd.f32 %v4483_v14, %v4443_v12  ;;  %v4485_v58 = vpop.f32.mrf.mxu0  ;;  %8975 = vmatpush3.bf16.msra.mxu1 %v9427_v22  ;;  %v9435_v22 = vld [vmem:[%s11252_s8 + $0x138] sm:$0xff]  }
 0x363   :  { %v4445_v17 = vpop.f32.mrf.mxu1  ;;  %8976 = vmatprep.subr.bf16.mxu1 %v9429_v31 }
 0x364   :  { %v4486_v18 = vpop.f32.mrf.mxu0 }
 0x366   :  { %8977 = vmatpush3.bf16.msra.mxu1 %v9431_v61  ;;  %v9437_v61 = vld [vmem:[%s11252_s8 + $0x170] sm:$0xff]  }
 0x367   :  { %8978 = vmatprep.subr.bf16.mxu1 %v9432_v41 }
 0x36a   :  { %8979 = vmatpush3.bf16.msra.mxu1 %v9434_v42 }
 0x36b   :  { %8980 = vmatprep.subr.bf16.mxu1 %v9436_v43 }
 0x36e   :  { %8981 = vmatpush3.bf16.msra.mxu1 %v9438_v3  ;;  %v9439_v3 = vld [vmem:[%s11252_s8 + $0x130] sm:$0xff]  }
 0x36f   :  { %9010 = vmatprep.subr.bf16.mxu1 %v9441_v2 }
 0x39d   :  { %v4522_v45 = vpop.f32.mrf.mxu1 }
 0x39e   :  { %v4523_v46 = vadd.f32 %v4522_v45, %v1423_v51  ;;  %v4563_v47 = vpop.f32.mrf.mxu0  ;;  %v9440_v45 = vld [vmem:[%s11252_s8 + $0x168] sm:$0xff]  }
 0x39f   :  { %v4524_v40 = vpop.f32.mrf.mxu1 }
 0x3a0   :  { %v10530_v48 = vadd.f32 %v4563_v47, %v4523_v46  ;;  %v4525_v29 = vadd.f32 %v4524_v40, %v1427_v44  ;;  %v4565_v33 = vpop.f32.mrf.mxu0 }
 0x3a1   :  { %v4526_v35 = vpop.f32.mrf.mxu1 }
 0x3a2   :  { %v4566_v53 = vadd.f32 %v4565_v33, %v4525_v29  ;;  %v4567_v9 = vpop.f32.mrf.mxu0 }
 0x3a3   :  { %v4527_v55 = vpop.f32.mrf.mxu1  ;;  %v9443_v9 = vld [vmem:[%s11252_s8 + $0x1b8] sm:$0xff]  }
 0x3a4   :  { %v4568_v56 = vpop.f32.mrf.mxu0 }
 0x3b3   :  { %v10532_v57 = vpop.permute.xlu0 %5678 }
 0x3b7   :  { %v6639_v25 = vpop.permute.xlu0 %6638 }
 0x3b8   :  { %v6641_v32 = vsel %vm4652_vm2, %v6639_v25, 0.0  ;;  %v9444_v25 = vld [vmem:[%s11252_s8 + $0x160] sm:$0xff]  }
 0x3b9   :  { %6642 = vadd.xlane.f32.xlu0 %v6641_v32  ;;  %v9445_v32 = vld [vmem:[%s11252_s8 + $0x1f0] sm:$0xff]  }
 0x3dd   :  { %v10535_v50 = vpop.f32.mrf.mxu1 }
 0x3de   :  { %v10537_v30 = vpop.f32.mrf.mxu0 }
 0x3df   :  { %v4606_v59 = vpop.f32.mrf.mxu1 }
 0x3e0   :  { %v4647_v63 = vpop.f32.mrf.mxu0  ;;  %v4607_v26 = vadd.f32 %v4606_v59, %v4566_v53  ;;  %v9442_v53 = vld [vmem:[%s11252_s8 + $0x128] sm:$0xff]  }
 0x3e1   :  { %v4608_v4 = vpop.f32.mrf.mxu1 }
 0x3e2   :  { %v4649_v5 = vpop.f32.mrf.mxu0  ;;  %v10555_v2 = vadd.f32 %v4647_v63, %v4607_v26  ;;  %v9446_v63 = vld [vmem:[%s11252_s8 + $0x120] sm:$0xff]   ;;  %v9447_v4 = vld [vmem:[%s11252_s8 + $0x1b0] sm:$0xff]  }
 0x3e3   :  { %v4609_v12 = vpop.f32.mrf.mxu1  ;;  %v9448_v5 = vld [vmem:[%s11252_s8 + $0x158] sm:$0xff]   ;;  %v9462_v26 = vld [vmem:[%s11252_s8 + $0x100] sm:$0xff]  }
 0x3e4   :  { %v4650_v14 = vpop.f32.mrf.mxu0  ;;  %v9449_v12 = vld [vmem:[%s11252_s8 + $0x1e8] sm:$0xff]  }
 0x3e5   :  { %v10539_v34 = vpop.f32.mrf.mxu1  ;;  %v9450_v14 = vld [vmem:[%s11252_s8 + $0x118] sm:$0xff]  }
 0x3e6   :  { %v4750_v24 = vpop.f32.mrf.mxu0 }
 0x3e7   :  { %v4834_v16 = vpop.f32.mrf.mxu1  ;;  %v4880_v37 = vmul.f32 %v4750_v24, %v10331_v62  ;;  %v9451_v24 = vld [vmem:[%s11252_s8 + $0x1a8] sm:$0xff]  }
 0x3e8   :  { %v4752_v38 = vpop.f32.mrf.mxu0  ;;  %v4885_v17 = vmul.f32 %v4834_v16, %v10480_v49  ;;  %v9452_v16 = vld [vmem:[%s11252_s8 + $0x150] sm:$0xff]  }
 0x3e9   :  { %v4881_v58 = vmul.f32 %v4752_v38, %v10335_v36  ;;  %v4836_v18 = vpop.f32.mrf.mxu1  ;;  %v4888_v31 = vpack.c.bf16 %v4880_v37, %v4880_v37  ;;  %v9453_v37 = vld [vmem:[%s11252_s8 + $0x1e0] sm:$0xff]   ;;  %v9454_v38 = vld [vmem:[%s11252_s8 + $0x110] sm:$0xff]  }
 0x3ea   :  { %v4754_v7 = vpop.f32.mrf.mxu0  ;;  %v4893_v41 = vpack.c.bf16 %v4885_v17, %v4885_v17  ;;  %v9456_v17 = vld [vmem:[%s11252_s8 + $0x148] sm:$0xff]   ;;  %v9457_v18 = vld [vmem:[%s11252_s8 + $0x1d8] sm:$0xff]  }
 0x3eb   :  { %v4889_v15 = vpack.c.bf16 %v4881_v58, %v4881_v58  ;;  %v4837_v20 = vpop.f32.mrf.mxu1  ;;  %v9455_v58 = vld [vmem:[%s11252_s8 + $0x1a0] sm:$0xff]   ;;  %v9458_v7 = vld [vmem:[%s11252_s8 + $0x108] sm:$0xff]  }
 0x3ec   :  { %v4755_v28 = vpop.f32.mrf.mxu0  ;;  %v9460_v20 = vld [vmem:[%s11252_s8 + $0x140] sm:$0xff]  }
 0x3ed   :  { %5447 = vmatprep.mubr.bf16.mxu0 %v4889_v15  ;;  %v10550_v52 = vpop.f32.mrf.mxu1  ;;  %v9459_v15 = vld [vmem:[%s11252_s8 + $0x198] sm:$0xff]   ;;  %v4884_v28 = vmul.f32 %v10539_v34, %v10465_v8  ;;  %v9466_v34 = vld [vmem:[%s11252_s8 + $0x1c0] sm:$0xff]  }
 0x3ee   :  { %v4791_v42 = vpop.f32.mrf.mxu0  ;;  %5448 = vmatmul.mubr.bf16.vlgmr.msra.gmra.mxu0 %v4888_v31  ;;  %v9463_v31 = vld [vmem:[%s11252_s8 + $0x190] sm:$0xff]  }
 0x3ef   :  { %8989 = vmatpush3.bf16.msra.mxu0 %v9435_v22  ;;  %5527 = vmatprep.mubr.bf16.mxu0 %v4893_v41  ;;  %v4875_v43 = vpop.f32.mrf.mxu1  ;;  %v4882_v51 = vmul.f32 %v4791_v42, %v10356_v1  ;;  %v9461_v22 = vld [vmem:[%s11252_s8 + $0x1d0] sm:$0xff]   ;;  %v4605_v41 = vadd.f32 %v10535_v50, %v10530_v48  ;;  %v9465_v42 = vld [vmem:[%s11252_s8 + $0x188] sm:$0xff]   ;;  %v9467_v48 = vld [vmem:[%s11252_s8 + $0x180] sm:$0xff]  }
 0x3f0   :  { %v4793_v44 = vpop.f32.mrf.mxu0  ;;  %8990 = vmatprep.subr.bf16.mxu0 %v9437_v61  ;;  %v4887_v40 = vmul.f32 %v4875_v43, %v10555_v2  ;;  %v9464_v61 = vld [vmem:[%s11252_s8 + $0x1c8] sm:$0xff]   ;;  %v4892_v43 = vpack.c.bf16 %v4884_v28, %v4884_v28  ;;  %v8429_v28 = vld [vmem:[#allocation12] ss:$0 sm:$0xff] }
 0x3f1   :  { %v4883_v46 = vmul.f32 %v4793_v44, %v10360_v39  ;;  %v4877_v47 = vpop.f32.mrf.mxu1  ;;  %v4890_v55 = vpack.c.bf16 %v4882_v51, %v4882_v51  ;;  %v9469_v44 = vld [vmem:[%s11252_s8 + $0x2b8] sm:$0xff]  }
 0x3f2   :  { %v4795_v29 = vpop.f32.mrf.mxu0  ;;  %v4895_v59 = vpack.c.bf16 %v4887_v40, %v4887_v40  ;;  %v9471_v47 = vld [vmem:[%s11254_s10 + $0x18] sm:$0xff]   ;;  %v9472_v40 = vld [vmem:[%s11252_s8 + $0x2b0] sm:$0xff]  }
 0x3f3   :  { %v4891_v33 = vpack.c.bf16 %v4883_v46, %v4883_v46  ;;  %8991 = vmatpush3.bf16.msra.mxu0 %v9439_v3  ;;  %v4878_v35 = vpop.f32.mrf.mxu1  ;;  %v10644_v3 = vadd.f32 %v10537_v30, %v4605_v41 }
 0x3f4   :  { %v4796_v56 = vpop.f32.mrf.mxu0  ;;  %8992 = vmatprep.subr.bf16.mxu0 %v9440_v45  ;;  %v9470_v45 = vld [vmem:[%s11252_s8 + $0x2f0] sm:$0xff]   ;;  %v9473_v35 = vld [vmem:[%s11252_s8 + $0x2e8] sm:$0xff]  }
 0x3f5   :  { %5487 = vmatprep.mubr.bf16.mxu1 %v4891_v33  ;;  %v4886_v50 = vmul.f32 %v10550_v52, %v10644_v3  ;;  %v9468_v52 = vld [vmem:[%s11252_s8 + $0x2f8] sm:$0xff]   ;;  %v9478_v56 = vld [vmem:[%s11252_s8 + $0x2a0] sm:$0xff]  }
 0x3f6   :  { %5488 = vmatmul.mubr.bf16.vlgmr.msra.gmra.mxu1 %v4890_v55  ;;  %v9477_v55 = vld [vmem:[%s11254_s10 + $0x8] sm:$0xff]  }
 0x3f7   :  { %8993 = vmatpush3.bf16.msra.mxu0 %v9442_v53  ;;  %9011 = vmatpush3.bf16.msra.mxu1 %v9443_v9  ;;  %v4894_v51 = vpack.c.bf16 %v4886_v50, %v4886_v50  ;;  %v9474_v53 = vld [vmem:[%s11254_s10 + $0x10] sm:$0xff]   ;;  %v9475_v9 = vld [vmem:[%s11252_s8 + $0x2a8] sm:$0xff]  }
 0x3f8   :  { %5567 = vmatprep.mubr.bf16.mxu1 %v4895_v59  ;;  %8994 = vmatprep.subr.bf16.mxu0 %v9444_v25  ;;  %v9479_v25 = vld [vmem:[%s11252_s8 + $0x2d8] sm:$0xff]  }
 0x3f9   :  { %9012 = vmatprep.subr.bf16.mxu1 %v9445_v32  ;;  %v9480_v32 = vld [vmem:[%s11254_s10] sm:$0xff]   ;;  %v9481_v59 = vld [vmem:[%s11252_s8 + $0x298] sm:$0xff]  }
 0x3fb   :  { %8995 = vmatpush3.bf16.msra.mxu0 %v9446_v63  ;;  %9013 = vmatpush3.bf16.msra.mxu1 %v9447_v4  ;;  %v9482_v63 = vld [vmem:[%s11252_s8 + $0x2d0] sm:$0xff]  }
 0x3fc   :  { %8996 = vmatprep.subr.bf16.mxu0 %v9448_v5  ;;  %9014 = vmatprep.subr.bf16.mxu1 %v9449_v12  ;;  %v9483_v4 = vld [vmem:[%s11252_s8 + $0x290] sm:$0xff]   ;;  %v9484_v5 = vld [vmem:[%s11252_s8 + $0x2c8] sm:$0xff]  }
 0x3fd   :  { %v9485_v12 = vld [vmem:[%s11252_s8 + $0x288] sm:$0xff]  }
 0x3ff   :  { %8997 = vmatpush3.bf16.msra.mxu0 %v9450_v14  ;;  %9015 = vmatpush3.bf16.msra.mxu1 %v9451_v24  ;;  %v9488_v14 = vld [vmem:[%s11252_s8 + $0x2c0] sm:$0xff]  }
 0x400   :  { %8998 = vmatprep.subr.bf16.mxu0 %v9452_v16  ;;  %9016 = vmatprep.subr.bf16.mxu1 %v9453_v37  ;;  %v9489_v24 = vld [vmem:[%s11252_s8 + $0x280] sm:$0xff]   ;;  %v9492_v16 = vld [vmem:[%s11252_s8 + $0x3f8] sm:$0xff]  }
 0x403   :  { %8999 = vmatpush3.bf16.msra.mxu0 %v9454_v38  ;;  %9017 = vmatpush3.bf16.msra.mxu1 %v9455_v58 }
 0x404   :  { %9000 = vmatprep.subr.bf16.mxu0 %v9456_v17  ;;  %9018 = vmatprep.subr.bf16.mxu1 %v9457_v18 }
 0x407   :  { %9001 = vmatpush3.bf16.msra.mxu0 %v9458_v7  ;;  %9019 = vmatpush3.bf16.msra.mxu1 %v9459_v15 }
 0x408   :  { %9002 = vmatprep.subr.bf16.mxu0 %v9460_v20  ;;  %9020 = vmatprep.subr.bf16.mxu1 %v9461_v22 }
 0x40b   :  { %9003 = vmatpush3.bf16.msra.mxu0 %v9462_v26  ;;  %9021 = vmatpush3.bf16.msra.mxu1 %v9463_v31 }
 0x40c   :  { %9022 = vmatprep.subr.bf16.mxu1 %v9464_v61  ;;  %9243 = vmatprep.subr.bf16.mxu0 %v9849_v10 }
 0x40e   :  { %5528 = vmatmul.mubr.bf16.vlgmr.msra.gmra.mxu0 %v4892_v43 }
 0x40f   :  { %9023 = vmatpush3.bf16.msra.mxu1 %v9465_v42  ;;  %9251 = vmatprep.mubr.msk.bf16.mxu0 %vm9850_vm0, %v9849_v10 }
 0x410   :  { %9024 = vmatprep.subr.bf16.mxu1 %v9466_v34  ;;  %9244 = vmatpush3.bf16.msra.mxu0 %v9471_v47 }
 0x411   :  { %9245 = vmatprep.subr.bf16.mxu0 %v9849_v10 }
 0x413   :  { %9025 = vmatpush3.bf16.msra.mxu1 %v9467_v48 }
 0x414   :  { %5697 = vmatprep.subr.bf16.mxu1 %v10364_v60  ;;  %9246 = vmatpush3.bf16.msra.mxu0 %v9474_v53 }
 0x415   :  { %9247 = vmatprep.subr.bf16.mxu0 %v9849_v10 }
 0x416   :  { %5568 = vmatmul.mubr.bf16.vlgmr.msra.gmra.mxu1 %v4894_v51 }
 0x417   :  { %5698 = vmatpush1.bf16.msra.mxu1 %v10373_v13  ;;  %5715 = vmatprep.mubr.bf16.mxu1 %v9848_v0 }
 0x418   :  { %5738 = vmatprep.subr.bf16.mxu1 %v10380_v23  ;;  %9248 = vmatpush3.bf16.msra.mxu0 %v9477_v55 }
 0x419   :  { %9249 = vmatprep.subr.bf16.mxu0 %v9849_v10 }
 0x41c   :  { %9250 = vmatpush3.bf16.msra.mxu0 %v9480_v32 }
 0x41d   :  { %5779 = vmatprep.subr.bf16.mxu0 %v10362_v11 }
 0x41e   :  { %8500 = vmatmul.mubr.msk.bf16.vlgmr.msra.gmra.mxu1 %vm4652_vm2, %v10532_v57 }
 0x41f   :  { %5739 = vmatpush1.bf16.msra.mxu1 %v10399_v27  ;;  %5756 = vmatprep.mubr.bf16.mxu1 %v9848_v0 }
 0x420   :  { %5820 = vmatprep.subr.bf16.mxu1 %v10383_v19 }
 0x426   :  { %8501 = vmatmul.mubr.msk.bf16.vlgmr.msra.gmra.mxu1 %vm4652_vm2, %v10532_v57 }
 0x427   :  { %5821 = vmatpush1.bf16.msra.mxu1 %v10397_v21  ;;  %5838 = vmatprep.mubr.bf16.mxu1 %v9848_v0 }
 0x428   :  { %9059 = vmatprep.subr.bf16.mxu1 %v9468_v52 }
 0x42e   :  { %8503 = vmatmul.mubr.msk.bf16.vlgmr.msra.gmra.mxu1 %vm4652_vm2, %v10532_v57 }
 0x42f   :  { %9060 = vmatpush3.bf16.msra.mxu1 %v9469_v44 }
 0x430   :  { %9061 = vmatprep.subr.bf16.mxu1 %v9470_v45 }
 0x433   :  { %9062 = vmatpush3.bf16.msra.mxu1 %v9472_v40 }
 0x434   :  { %9063 = vmatprep.subr.bf16.mxu1 %v9473_v35 }
 0x437   :  { %9064 = vmatpush3.bf16.msra.mxu1 %v9475_v9 }
 0x442   :  { %v6643_v30 = vpop.xlane.xlu0 %6642 }
 0x443   :  { %9629 = vrcp.f32 %v6643_v30 }
 0x450   :  { %v9630_v46 = vpop.eup %9629 }
 0x451   :  { %v6645_v29 = vmul.f32 %v9630_v46, %v10448_v54  ;;  %v9476_v54 = vld [vmem:[%s11252_s8 + $0x2e0] sm:$0xff]  }
 0x452   :  { %9065 = vmatprep.subr.bf16.mxu1 %v9476_v54 }
 0x453   :  { %v6646_v33 = vpack.c.bf16 %v6645_v29, %v6645_v29  ;;  %9066 = vmatpush3.bf16.msra.mxu1 %v9478_v56  ;;  %v9487_v56 = vld [vmem:[%s11252_s8 + $0x238] sm:$0xff]  }
 0x454   :  { %9067 = vmatprep.subr.bf16.mxu1 %v9479_v25  ;;  %v9490_v25 = vld [vmem:[%s11252_s8 + $0x270] sm:$0xff]  }
 0x455   :  { %6648 = vrot.lane.b32.xlu1 %v6646_v33, %s9852_s7  ;;  %v9486_v33 = vld [vmem:[%s11252_s8 + $0x278] sm:$0xff]  }
 0x457   :  { %9068 = vmatpush3.bf16.msra.mxu1 %v9481_v59 }
 0x458   :  { %9069 = vmatprep.subr.bf16.mxu1 %v9482_v63 }
 0x45b   :  { %9070 = vmatpush3.bf16.msra.mxu1 %v9483_v4 }
 0x45c   :  { %9071 = vmatprep.subr.bf16.mxu1 %v9484_v5 }
 0x45f   :  { %9072 = vmatpush3.bf16.msra.mxu1 %v9485_v12  ;;  %v9491_v12 = vld [vmem:[%s11252_s8 + $0x230] sm:$0xff]  }
 0x460   :  { %9073 = vmatprep.subr.bf16.mxu1 %v9488_v14 }
 0x463   :  { %9074 = vmatpush3.bf16.msra.mxu1 %v9489_v24  ;;  %v9493_v24 = vld [vmem:[%s11252_s8 + $0x3b8] sm:$0xff]  }
 0x464   :  { %9103 = vmatprep.subr.bf16.mxu1 %v9492_v16  ;;  %v9494_v16 = vld [vmem:[%s11252_s8 + $0x268] sm:$0xff]  }
 0x4ae   :  { %v8960_v37 = vpop.f32.mrf.mxu0 }
 0x4b0   :  { %v8961_v38 = vpop.f32.mrf.mxu0 }
 0x4b1   :  { %v8962_v31 = vadd.f32 %v8961_v38, %v8960_v37 }
 0x4b2   :  { %v8963_v58 = vpop.f32.mrf.mxu0 }
 0x4b3   :  { %v5450_v43 = vadd.f32 %v8962_v31, %v8429_v28  ;;  %v9499_v31 = vld [vmem:[%s11252_s8 + $0x220] sm:$0xff]  }
 0x4b4   :  { %v8964_v17 = vpop.f32.mrf.mxu0 }
 0x4b5   :  { %v9495_v17 = vld [vmem:[%s11252_s8 + $0x228] sm:$0xff]  }
 0x4b6   :  { %v8982_v18 = vpop.f32.mrf.mxu1 }
 0x4b8   :  { %v8983_v7 = vpop.f32.mrf.mxu1 }
 0x4b9   :  { %v8984_v41 = vadd.f32 %v8983_v7, %v8982_v18  ;;  %v9497_v18 = vld [vmem:[%s11252_s8 + $0x3b0] sm:$0xff]   ;;  %v9498_v7 = vld [vmem:[%s11252_s8 + $0x260] sm:$0xff]  }
 0x4ba   :  { %v8985_v15 = vpop.f32.mrf.mxu1 }
 0x4bb   :  { %v5490_v50 = vadd.f32 %v8984_v41, %v5450_v43  ;;  %v9502_v41 = vld [vmem:[%s11252_s8 + $0x258] sm:$0xff]   ;;  %v9504_v43 = vld [vmem:[%s11252_s8 + $0x3e0] sm:$0xff]  }
 0x4bc   :  { %v8986_v20 = vpop.f32.mrf.mxu1 }
 0x4bd   :  { %v9500_v20 = vld [vmem:[%s11252_s8 + $0x3e8] sm:$0xff]  }
 0x4ce   :  { %v9004_v22 = vpop.f32.mrf.mxu0 }
 0x4d0   :  { %v9005_v26 = vpop.f32.mrf.mxu0 }
 0x4d1   :  { %v9006_v34 = vadd.f32 %v9005_v26, %v9004_v22 }
 0x4d2   :  { %v9007_v61 = vpop.f32.mrf.mxu0 }
 0x4d3   :  { %v5530_v30 = vadd.f32 %v9006_v34, %v5490_v50  ;;  %v9501_v61 = vld [vmem:[%s11252_s8 + $0x3a8] sm:$0xff]   ;;  %v9503_v34 = vld [vmem:[%s11252_s8 + $0x218] sm:$0xff]   ;;  %v9506_v50 = vld [vmem:[%s11252_s8 + $0x250] sm:$0xff]  }
 0x4d4   :  { %v9008_v42 = vpop.f32.mrf.mxu0 }
 0x4d6   :  { %v9026_v48 = vpop.f32.mrf.mxu1 }
 0x4d8   :  { %v9027_v51 = vpop.f32.mrf.mxu1 }
 0x4d9   :  { %v9028_v52 = vadd.f32 %v9027_v51, %v9026_v48  ;;  %v9505_v48 = vld [vmem:[%s11252_s8 + $0x3a0] sm:$0xff]   ;;  %v9508_v51 = vld [vmem:[%s11252_s8 + $0x3d8] sm:$0xff]  }
 0x4da   :  { %v9029_v44 = vpop.f32.mrf.mxu1 }
 0x4db   :  { %v5570_v45 = vadd.f32 %v9028_v52, %v5530_v30  ;;  %v9507_v30 = vld [vmem:[%s11252_s8 + $0x210] sm:$0xff]   ;;  %v9509_v52 = vld [vmem:[%s11252_s8 + $0x398] sm:$0xff]   ;;  %v9510_v44 = vld [vmem:[%s11252_s8 + $0x248] sm:$0xff]  }
 0x4dc   :  { %v9030_v46 = vpop.f32.mrf.mxu1 }
 0x4dd   :  { %v5575_v47 = vmax.f32 %v5570_v45, 0.0  ;;  %v9512_v45 = vld [vmem:[%s11252_s8 + $0x3d0] sm:$0xff]   ;;  %v9511_v46 = vld [vmem:[%s11252_s8 + $0x208] sm:$0xff]  }
 0x4de   :  { %v10737_v40 = vpop.f32.mrf.mxu1 }
 0x4df   :  { %v5576_v29 = vpack.c.bf16 %v5575_v47, %v5575_v47  ;;  %v9513_v47 = vld [vmem:[%s11252_s8 + $0x390] sm:$0xff]  }
 0x4e0   :  { %v5719_v35 = vpop.f32.mrf.mxu1 }
 0x4e1   :  { %9252 = vmatmul.mubr.msk.bf16.vlgmr.msra.gmra.mxu0 %vm5616_vm4, %v5576_v29  ;;  %v5848_v9 = vmul.f32 %v5719_v35, %v10335_v36  ;;  %v9514_v29 = vld [vmem:[%s11252_s8 + $0x240] sm:$0xff]  }
 0x4e2   :  { %v5721_v53 = vpop.f32.mrf.mxu1  ;;  %5780 = vmatpush1.bf16.msra.mxu0 %v10371_v6  ;;  %5797 = vmatprep.mubr.bf16.mxu0 %v9848_v0  ;;  %v9515_v35 = vld [vmem:[%s11252_s8 + $0x200] sm:$0xff]  }
 0x4e3   :  { %9037 = vmatprep.subr.bf16.mxu0 %v9486_v33  ;;  %v5856_v32 = vpack.c.bf16 %v5848_v9, %v5848_v9  ;;  %v9516_v33 = vld [vmem:[%s11252_s8 + $0x3c8] sm:$0xff]   ;;  %v5847_v53 = vmul.f32 %v10737_v40, %v10331_v62  ;;  %v9521_v40 = vld [vmem:[%s11252_s8 + $0x338] sm:$0xff]  }
 0x4e4   :  { %v5722_v54 = vpop.f32.mrf.mxu1  ;;  %v9517_v9 = vld [vmem:[%s11252_s8 + $0x388] sm:$0xff]  }
 0x4e5   :  { %v9520_v54 = vld [vmem:[%s11252_s8 + $0x378] sm:$0xff]  }
 0x4e6   :  { %v5758_v55 = vpop.f32.mrf.mxu1 }
 0x4e7   :  { %v5849_v59 = vmul.f32 %v5758_v55, %v10356_v1  ;;  %v9518_v55 = vld [vmem:[%s11252_s8 + $0x3c0] sm:$0xff]  }
 0x4e8   :  { %v5760_v63 = vpop.f32.mrf.mxu1 }
 0x4e9   :  { %v5850_v4 = vmul.f32 %v5760_v63, %v10360_v39  ;;  %8502 = vmatmul.mubr.msk.bf16.vlgmr.msra.gmra.mxu0 %vm4652_vm2, %v10532_v57  ;;  %v5857_v37 = vpack.c.bf16 %v5849_v59, %v5849_v59  ;;  %v9496_v57 = vld [vmem:[%s11252_s8 + $0x3f0] sm:$0xff]  }
 0x4ea   :  { %9038 = vmatpush3.bf16.msra.mxu0 %v9487_v56  ;;  %v5762_v5 = vpop.f32.mrf.mxu1  ;;  %6416 = vmatprep.mubr.bf16.mxu0 %v5856_v32  ;;  %v5855_v56 = vpack.c.bf16 %v5847_v53, %v5847_v53  ;;  %v9522_v32 = vld [vmem:[%s11252_s8 + $0x370] sm:$0xff]   ;;  %v9568_v53 = vld [vmem:[%s11254_s10 + $0x38] sm:$0xff]  }
 0x4eb   :  { %v5858_v14 = vpack.c.bf16 %v5850_v4, %v5850_v4  ;;  %9039 = vmatprep.subr.bf16.mxu0 %v9490_v25  ;;  %v9519_v25 = vld [vmem:[%s11252_s8 + $0x380] sm:$0xff]   ;;  %v9523_v63 = vld [vmem:[%s11252_s8 + $0x330] sm:$0xff]   ;;  %v9524_v5 = vld [vmem:[%s11252_s8 + $0x368] sm:$0xff]  }
 0x4ec   :  { %v5763_v38 = vpop.f32.mrf.mxu1 }
 0x4ed   :  { %6456 = vmatprep.mubr.bf16.mxu1 %v5858_v14  ;;  %v9526_v14 = vld [vmem:[%s11252_s8 + $0x360] sm:$0xff]  }
 0x4ee   :  { %9040 = vmatpush3.bf16.msra.mxu0 %v9491_v12  ;;  %v10768_v58 = vpop.f32.mrf.mxu1  ;;  %6457 = vmatmul.mubr.bf16.vlgmr.msra.gmra.mxu1 %v5857_v37  ;;  %v9525_v12 = vld [vmem:[%s11252_s8 + $0x328] sm:$0xff]   ;;  %v9534_v37 = vld [vmem:[%s11252_s8 + $0x340] sm:$0xff]  }
 0x4ef   :  { %9104 = vmatpush3.bf16.msra.mxu1 %v9493_v24  ;;  %9041 = vmatprep.subr.bf16.mxu0 %v9494_v16  ;;  %v5853_v59 = vmul.f32 %v10768_v58, %v10644_v3  ;;  %v10875_v24 = vpop.permute.xlu1 %6648  ;;  %v9533_v16 = vld [vmem:[%s11252_s8 + $0x308] sm:$0xff]   ;;  %v9535_v38 = vld [vmem:[%s11252_s8 + $0x300] sm:$0xff]   ;;  %v9537_v58 = vld [vmem:[%s11252_s8 + $0x4b8] sm:$0xff]  }
 0x4f0   :  { %v5842_v15 = vpop.f32.mrf.mxu1  ;;  %9105 = vmatprep.subr.bf16.mxu1 %v9496_v57  ;;  %v9536_v57 = vld [vmem:[%s11252_s8 + $0x4f8] sm:$0xff]  }
 0x4f1   :  { %v5854_v22 = vmul.f32 %v5842_v15, %v10555_v2  ;;  %v5861_v4 = vpack.c.bf16 %v5853_v59, %v5853_v59  ;;  %v9541_v15 = vld [vmem:[%s11252_s8 + $0x4a8] sm:$0xff]   ;;  %v8632_v59 = vld [vmem:[#allocation12 + $0x1] ss:$0 sm:$0xff] }
 0x4f2   :  { %9042 = vmatpush3.bf16.msra.mxu0 %v9495_v17  ;;  %v5844_v26 = vpop.f32.mrf.mxu1  ;;  %v9538_v17 = vld [vmem:[%s11252_s8 + $0x4f0] sm:$0xff]  }
 0x4f3   :  { %v5862_v28 = vpack.c.bf16 %v5854_v22, %v5854_v22  ;;  %9106 = vmatpush3.bf16.msra.mxu1 %v9497_v18  ;;  %9043 = vmatprep.subr.bf16.mxu0 %v9498_v7  ;;  %v9539_v18 = vld [vmem:[%s11252_s8 + $0x4b0] sm:$0xff]   ;;  %v9540_v7 = vld [vmem:[%s11252_s8 + $0x4e8] sm:$0xff]   ;;  %v9543_v22 = vld [vmem:[%s11252_s8 + $0x4a0] sm:$0xff]  }
 0x4f4   :  { %v5845_v42 = vpop.f32.mrf.mxu1  ;;  %9107 = vmatprep.subr.bf16.mxu1 %v9500_v20  ;;  %v9542_v20 = vld [vmem:[%s11252_s8 + $0x4e0] sm:$0xff]   ;;  %v9544_v26 = vld [vmem:[%s11252_s8 + $0x4d8] sm:$0xff]  }
 0x4f5   :  { %6536 = vmatprep.mubr.bf16.mxu1 %v5862_v28  ;;  %v9546_v28 = vld [vmem:[%s11252_s8 + $0x4d0] sm:$0xff]   ;;  %v9549_v42 = vld [vmem:[%s11252_s8 + $0x488] sm:$0xff]  }
 0x4f6   :  { %9044 = vmatpush3.bf16.msra.mxu0 %v9499_v31  ;;  %v9545_v31 = vld [vmem:[%s11252_s8 + $0x498] sm:$0xff]  }
 0x4f7   :  { %9108 = vmatpush3.bf16.msra.mxu1 %v9501_v61  ;;  %9045 = vmatprep.subr.bf16.mxu0 %v9502_v41  ;;  %v9547_v61 = vld [vmem:[%s11252_s8 + $0x490] sm:$0xff]   ;;  %v9548_v41 = vld [vmem:[%s11252_s8 + $0x4c8] sm:$0xff]  }
 0x4f8   :  { %9109 = vmatprep.subr.bf16.mxu1 %v9504_v43  ;;  %v9550_v43 = vld [vmem:[%s11252_s8 + $0x4c0] sm:$0xff]  }
 0x4fa   :  { %9046 = vmatpush3.bf16.msra.mxu0 %v9503_v34  ;;  %v9551_v34 = vld [vmem:[%s11252_s8 + $0x480] sm:$0xff]  }
 0x4fb   :  { %9110 = vmatpush3.bf16.msra.mxu1 %v9505_v48  ;;  %9047 = vmatprep.subr.bf16.mxu0 %v9506_v50  ;;  %v9552_v48 = vld [vmem:[%s11252_s8 + $0x5f8] sm:$0xff]  }
 0x4fc   :  { %9111 = vmatprep.subr.bf16.mxu1 %v9508_v51 }
 0x4fe   :  { %9048 = vmatpush3.bf16.msra.mxu0 %v9507_v30 }
 0x4ff   :  { %9112 = vmatpush3.bf16.msra.mxu1 %v9509_v52  ;;  %9049 = vmatprep.subr.bf16.mxu0 %v9510_v44 }
 0x500   :  { %9113 = vmatprep.subr.bf16.mxu1 %v9512_v45 }
 0x502   :  { %9050 = vmatpush3.bf16.msra.mxu0 %v9511_v46 }
 0x503   :  { %9114 = vmatpush3.bf16.msra.mxu1 %v9513_v47  ;;  %9051 = vmatprep.subr.bf16.mxu0 %v9514_v29 }
 0x504   :  { %9115 = vmatprep.subr.bf16.mxu1 %v9516_v33 }
 0x506   :  { %9052 = vmatpush3.bf16.msra.mxu0 %v9515_v35 }
 0x507   :  { %9116 = vmatpush3.bf16.msra.mxu1 %v9517_v9  ;;  %9081 = vmatprep.subr.bf16.mxu0 %v9520_v54 }
 0x508   :  { %9117 = vmatprep.subr.bf16.mxu1 %v9518_v55 }
 0x509   :  { %6417 = vmatmul.mubr.bf16.vlgmr.msra.gmra.mxu0 %v5855_v56 }
 0x50a   :  { %9082 = vmatpush3.bf16.msra.mxu0 %v9521_v40 }
 0x50b   :  { %9118 = vmatpush3.bf16.msra.mxu1 %v9519_v25  ;;  %9083 = vmatprep.subr.bf16.mxu0 %v9522_v32 }
 0x50c   :  { %6667 = vmatprep.subr.bf16.mxu1 %v10364_v60  ;;  %v9527_v60 = vld [vmem:[%s11252_s8 + $0x320] sm:$0xff]  }
 0x50e   :  { %6537 = vmatmul.mubr.bf16.vlgmr.msra.gmra.mxu1 %v5861_v4  ;;  %9084 = vmatpush3.bf16.msra.mxu0 %v9523_v63 }
 0x50f   :  { %6668 = vmatpush1.bf16.msra.mxu1 %v10373_v13  ;;  %6685 = vmatprep.mubr.bf16.mxu1 %v9848_v0  ;;  %v9528_v13 = vld [vmem:[%s11252_s8 + $0x358] sm:$0xff]  }
 0x510   :  { %6708 = vmatprep.subr.bf16.mxu1 %v10380_v23  ;;  %9085 = vmatprep.subr.bf16.mxu0 %v9524_v5  ;;  %v9529_v23 = vld [vmem:[%s11252_s8 + $0x318] sm:$0xff]  }
 0x512   :  { %9086 = vmatpush3.bf16.msra.mxu0 %v9525_v12 }
 0x513   :  { %9087 = vmatprep.subr.bf16.mxu0 %v9526_v14 }
 0x516   :  { %8711 = vmatmul.mubr.msk.bf16.vlgmr.msra.gmra.mxu1 %vm4652_vm2, %v10875_v24  ;;  %9088 = vmatpush3.bf16.msra.mxu0 %v9527_v60 }
 0x517   :  { %6709 = vmatpush1.bf16.msra.mxu1 %v10399_v27  ;;  %6726 = vmatprep.mubr.bf16.mxu1 %v9848_v0  ;;  %v9532_v27 = vld [vmem:[%s11252_s8 + $0x348] sm:$0xff]  }
 0x518   :  { %6790 = vmatprep.subr.bf16.mxu1 %v10383_v19  ;;  %9089 = vmatprep.subr.bf16.mxu0 %v9528_v13  ;;  %v9530_v19 = vld [vmem:[%s11252_s8 + $0x350] sm:$0xff]  }
 0x51a   :  { %9090 = vmatpush3.bf16.msra.mxu0 %v9529_v23 }
 0x51b   :  { %9091 = vmatprep.subr.bf16.mxu0 %v9530_v19 }
 0x51e   :  { %8712 = vmatmul.mubr.msk.bf16.vlgmr.msra.gmra.mxu1 %vm4652_vm2, %v10875_v24 }
 0x51f   :  { %6791 = vmatpush1.bf16.msra.mxu1 %v10397_v21  ;;  %6808 = vmatprep.mubr.bf16.mxu1 %v9848_v0  ;;  %v9531_v21 = vld [vmem:[%s11252_s8 + $0x310] sm:$0xff]  }
 0x520   :  { %9092 = vmatpush3.bf16.msra.mxu0 %v9531_v21  ;;  %9152 = vmatprep.subr.bf16.mxu1 %v9536_v57 }
 0x521   :  { %9093 = vmatprep.subr.bf16.mxu0 %v9532_v27 }
 0x524   :  { %9094 = vmatpush3.bf16.msra.mxu0 %v9533_v16 }
 0x525   :  { %9095 = vmatprep.subr.bf16.mxu0 %v9534_v37 }
 0x526   :  { %8714 = vmatmul.mubr.msk.bf16.vlgmr.msra.gmra.mxu1 %vm4652_vm2, %v10875_v24 }
 0x527   :  { %9153 = vmatpush3.bf16.msra.mxu1 %v9537_v58 }
 0x528   :  { %9096 = vmatpush3.bf16.msra.mxu0 %v9535_v38  ;;  %9154 = vmatprep.subr.bf16.mxu1 %v9538_v17 }
 0x529   :  { %9255 = vmatprep.subr.bf16.mxu0 %v9849_v10 }
 0x52b   :  { %9155 = vmatpush3.bf16.msra.mxu1 %v9539_v18 }
 0x52c   :  { %9156 = vmatprep.subr.bf16.mxu1 %v9540_v7 }
 0x52f   :  { %9157 = vmatpush3.bf16.msra.mxu1 %v9541_v15 }
 0x530   :  { %9158 = vmatprep.subr.bf16.mxu1 %v9542_v20 }
 0x533   :  { %9159 = vmatpush3.bf16.msra.mxu1 %v9543_v22  ;;  %v9553_v22 = vld [vmem:[%s11252_s8 + $0x5b8] sm:$0xff]  }
 0x534   :  { %9160 = vmatprep.subr.bf16.mxu1 %v9544_v26 }
 0x537   :  { %9161 = vmatpush3.bf16.msra.mxu1 %v9545_v31 }
 0x538   :  { %9162 = vmatprep.subr.bf16.mxu1 %v9546_v28  ;;  %v9554_v28 = vld [vmem:[%s11252_s8 + $0x5f0] sm:$0xff]  }
 0x53b   :  { %9163 = vmatpush3.bf16.msra.mxu1 %v9547_v61 }
 0x53c   :  { %9164 = vmatprep.subr.bf16.mxu1 %v9548_v41  ;;  %v9556_v41 = vld [vmem:[%s11252_s8 + $0x5e8] sm:$0xff]  }
 0x53f   :  { %9165 = vmatpush3.bf16.msra.mxu1 %v9549_v42 }
 0x540   :  { %9166 = vmatprep.subr.bf16.mxu1 %v9550_v43 }
 0x543   :  { %9167 = vmatpush3.bf16.msra.mxu1 %v9551_v34 }
 0x544   :  { %9196 = vmatprep.subr.bf16.mxu1 %v9552_v48  ;;  %v9557_v48 = vld [vmem:[%s11252_s8 + $0x5a8] sm:$0xff]  }
 0x5a1   :  { %v10964_v50 = vpop.f32.mrf.mxu0 }
 0x5a3   :  { %v9253_v51 = vpop.f32.mrf.mxu0 }
 0x5a5   :  { %v5657_v30 = vpop.f32.mrf.mxu0 }
 0x5a6   :  { %v9558_v30 = vld [vmem:[%s11252_s8 + $0x5e0] sm:$0xff]  }
 0x5a7   :  { %v9254_v52 = vpop.f32.mrf.mxu0 }
 0x5a8   :  { %v9559_v52 = vld [vmem:[%s11252_s8 + $0x5a0] sm:$0xff]  }
 0x5a9   :  { %v5799_v44 = vpop.f32.mrf.mxu0 }
 0x5aa   :  { %v5851_v45 = vmul.f32 %v5799_v44, %v10465_v8  ;;  %v9561_v44 = vld [vmem:[%s11252_s8 + $0x598] sm:$0xff]  }
 0x5ab   :  { %v5801_v46 = vpop.f32.mrf.mxu0 }
 0x5ac   :  { %v5852_v47 = vmul.f32 %v5801_v46, %v10480_v49  ;;  %v5859_v9 = vpack.c.bf16 %v5851_v45, %v5851_v45  ;;  %v9569_v45 = vld [vmem:[%s11254_s10 + $0x30] sm:$0xff]  }
 0x5ad   :  { %v5803_v29 = vpop.f32.mrf.mxu0  ;;  %v9562_v46 = vld [vmem:[%s11252_s8 + $0x5d0] sm:$0xff]  }
 0x5ae   :  { %v5860_v33 = vpack.c.bf16 %v5852_v47, %v5852_v47  ;;  %v9075_v35 = vpop.f32.mrf.mxu1  ;;  %v9563_v47 = vld [vmem:[%s11252_s8 + $0x590] sm:$0xff]   ;;  %v9570_v29 = vld [vmem:[%s11254_s10 + $0x28] sm:$0xff]  }
 0x5af   :  { %v5804_v54 = vpop.f32.mrf.mxu0 }
 0x5b0   :  { %v9076_v55 = vpop.f32.mrf.mxu1  ;;  %6496 = vmatprep.mubr.bf16.mxu0 %v5860_v33  ;;  %v9564_v33 = vld [vmem:[%s11252_s8 + $0x5c8] sm:$0xff]   ;;  %v9567_v54 = vld [vmem:[%s11252_s8 + $0x580] sm:$0xff]  }
 0x5b1   :  { %v9077_v40 = vadd.f32 %v9076_v55, %v9075_v35  ;;  %6497 = vmatmul.mubr.bf16.vlgmr.msra.gmra.mxu0 %v5859_v9  ;;  %v9565_v35 = vld [vmem:[%s11252_s8 + $0x588] sm:$0xff]   ;;  %v9566_v9 = vld [vmem:[%s11252_s8 + $0x5c0] sm:$0xff]  }
 0x5b2   :  { %v9078_v56 = vpop.f32.mrf.mxu1  ;;  %9256 = vmatpush3.bf16.msra.mxu0 %v9568_v53  ;;  %9263 = vmatprep.mubr.msk.bf16.mxu0 %vm9850_vm0, %v9849_v10  ;;  %v9571_v53 = vld [vmem:[%s11254_s10 + $0x20] sm:$0xff]  }
 0x5b3   :  { %9257 = vmatprep.subr.bf16.mxu0 %v9849_v10 }
 0x5b4   :  { %v9079_v25 = vpop.f32.mrf.mxu1 }
 0x5b6   :  { %9258 = vmatpush3.bf16.msra.mxu0 %v9569_v45  ;;  %v9601_v45 = vld [vmem:[%s11252_s8 + $0x548] sm:$0xff]  }
 0x5b7   :  { %9259 = vmatprep.subr.bf16.mxu0 %v9849_v10 }
 0x5ba   :  { %9260 = vmatpush3.bf16.msra.mxu0 %v9570_v29 }
 0x5bb   :  { %9261 = vmatprep.subr.bf16.mxu0 %v9849_v10 }
 0x5be   :  { %9262 = vmatpush3.bf16.msra.mxu0 %v9571_v53  ;;  %v9604_v53 = vld [vmem:[%s11252_s8 + $0x540] sm:$0xff]  }
 0x5bf   :  { %6749 = vmatprep.subr.bf16.mxu0 %v10362_v11 }
 0x5c9   :  { %v9053_v32 = vpop.f32.mrf.mxu0 }
 0x5cb   :  { %v9054_v63 = vpop.f32.mrf.mxu0 }
 0x5cc   :  { %v9055_v4 = vadd.f32 %v9054_v63, %v9053_v32 }
 0x5cd   :  { %v9056_v5 = vpop.f32.mrf.mxu0 }
 0x5ce   :  { %v6419_v12 = vadd.f32 %v9055_v4, %v8632_v59  ;;  %v9119_v14 = vpop.f32.mrf.mxu1 }
 0x5cf   :  { %v9057_v60 = vpop.f32.mrf.mxu0 }
 0x5d0   :  { %v9120_v13 = vpop.f32.mrf.mxu1  ;;  %v10974_v23 = vadd.f32 %v9077_v40, %v6419_v12  ;;  %v9573_v60 = vld [vmem:[%s11252_s8 + $0x438] sm:$0xff]  }
 0x5d1   :  { %v10976_v19 = vadd.f32 %v9120_v13, %v9119_v14  ;;  %v9574_v13 = vld [vmem:[%s11252_s8 + $0x470] sm:$0xff]  }
 0x5d2   :  { %v9122_v21 = vpop.f32.mrf.mxu1 }
 0x5d3   :  { %v9579_v21 = vld [vmem:[%s11252_s8 + $0x420] sm:$0xff]  }
 0x5d4   :  { %v9123_v27 = vpop.f32.mrf.mxu1 }
 0x5d5   :  { %v9580_v27 = vld [vmem:[%s11252_s8 + $0x458] sm:$0xff]  }
 0x5d6   :  { %v10978_v16 = vpop.f32.mrf.mxu1 }
 0x5d8   :  { %v10980_v37 = vpop.f32.mrf.mxu1 }
 0x5d9   :  { %v6818_v14 = vmul.f32 %v10980_v37, %v10335_v36  ;;  %v9576_v36 = vld [vmem:[%s11252_s8 + $0x468] sm:$0xff]   ;;  %v9581_v37 = vld [vmem:[%s11252_s8 + $0x418] sm:$0xff]  }
 0x5da   :  { %v6691_v38 = vpop.f32.mrf.mxu1 }
 0x5db   :  { %v9582_v38 = vld [vmem:[%s11252_s8 + $0x450] sm:$0xff]  }
 0x5dc   :  { %v6692_v57 = vpop.f32.mrf.mxu1 }
 0x5dd   :  { %v9583_v57 = vld [vmem:[%s11252_s8 + $0x410] sm:$0xff]  }
 0x5de   :  { %v6728_v58 = vpop.f32.mrf.mxu1 }
 0x5df   :  { %v6819_v17 = vmul.f32 %v6728_v58, %v10356_v1  ;;  %v9555_v1 = vld [vmem:[%s11252_s8 + $0x5b0] sm:$0xff]   ;;  %v9584_v58 = vld [vmem:[%s11252_s8 + $0x448] sm:$0xff]  }
 0x5e0   :  { %v6730_v18 = vpop.f32.mrf.mxu1 }
 0x5e1   :  { %v6820_v7 = vmul.f32 %v6730_v18, %v10360_v39  ;;  %v6827_v26 = vpack.c.bf16 %v6819_v17, %v6819_v17  ;;  %v9585_v17 = vld [vmem:[%s11252_s8 + $0x408] sm:$0xff]   ;;  %v9586_v18 = vld [vmem:[%s11252_s8 + $0x440] sm:$0xff]  }
 0x5e2   :  { %v6732_v15 = vpop.f32.mrf.mxu1 }
 0x5e3   :  { %v6828_v20 = vpack.c.bf16 %v6820_v7, %v6820_v7  ;;  %v9587_v7 = vld [vmem:[%s11252_s8 + $0x400] sm:$0xff]   ;;  %v6817_v15 = vmul.f32 %v10978_v16, %v10331_v62  ;;  %v9591_v62 = vld [vmem:[%s11252_s8 + $0x530] sm:$0xff]  }
 0x5e4   :  { %v6733_v31 = vpop.f32.mrf.mxu1 }
 0x5e5   :  { %7426 = vmatprep.mubr.bf16.mxu1 %v6828_v20  ;;  %v9588_v20 = vld [vmem:[%s11252_s8 + $0x578] sm:$0xff]   ;;  %v9590_v31 = vld [vmem:[%s11252_s8 + $0x570] sm:$0xff]  }
 0x5e6   :  { %v6810_v61 = vpop.f32.mrf.mxu1  ;;  %7427 = vmatmul.mubr.bf16.vlgmr.msra.gmra.mxu1 %v6827_v26  ;;  %v6825_v26 = vpack.c.bf16 %v6817_v15, %v6817_v15 }
 0x5e7   :  { %9197 = vmatpush3.bf16.msra.mxu1 %v9553_v22  ;;  %v6823_v55 = vmul.f32 %v6810_v61, %v10644_v3  ;;  %v9572_v3 = vld [vmem:[%s11252_s8 + $0x478] sm:$0xff]   ;;  %v9592_v61 = vld [vmem:[%s11252_s8 + $0x568] sm:$0xff]  }
 0x5e8   :  { %v6812_v39 = vpop.f32.mrf.mxu1  ;;  %9198 = vmatprep.subr.bf16.mxu1 %v9554_v28  ;;  %v9589_v22 = vld [vmem:[%s11252_s8 + $0x538] sm:$0xff]  }
 0x5e9   :  { %v6824_v42 = vmul.f32 %v6812_v39, %v10555_v2  ;;  %v9560_v2 = vld [vmem:[%s11252_s8 + $0x5d8] sm:$0xff]   ;;  %v6831_v40 = vpack.c.bf16 %v6823_v55, %v6823_v55 }
 0x5ea   :  { %v6814_v43 = vpop.f32.mrf.mxu1 }
 0x5eb   :  { %v6832_v34 = vpack.c.bf16 %v6824_v42, %v6824_v42  ;;  %9199 = vmatpush3.bf16.msra.mxu1 %v9555_v1  ;;  %v9594_v43 = vld [vmem:[%s11252_s8 + $0x560] sm:$0xff]  }
 0x5ec   :  { %v6815_v51 = vpop.f32.mrf.mxu1  ;;  %9200 = vmatprep.subr.bf16.mxu1 %v9556_v41  ;;  %v9593_v41 = vld [vmem:[%s11252_s8 + $0x528] sm:$0xff]  }
 0x5ed   :  { %7506 = vmatprep.mubr.bf16.mxu1 %v6832_v34  ;;  %v9595_v34 = vld [vmem:[%s11252_s8 + $0x520] sm:$0xff]   ;;  %v9597_v51 = vld [vmem:[%s11252_s8 + $0x518] sm:$0xff]  }
 0x5ef   :  { %9201 = vmatpush3.bf16.msra.mxu1 %v9557_v48  ;;  %v9596_v48 = vld [vmem:[%s11252_s8 + $0x558] sm:$0xff]  }
 0x5f0   :  { %9202 = vmatprep.subr.bf16.mxu1 %v9558_v30  ;;  %v9598_v30 = vld [vmem:[%s11252_s8 + $0x550] sm:$0xff]  }
 0x5f3   :  { %9203 = vmatpush3.bf16.msra.mxu1 %v9559_v52  ;;  %v9599_v52 = vld [vmem:[%s11252_s8 + $0x510] sm:$0xff]  }
 0x5f4   :  { %9204 = vmatprep.subr.bf16.mxu1 %v9560_v2  ;;  %v9600_v2 = vld [vmem:[%s11256_s12 + $0x38] sm:$0xff]  }
 0x5f7   :  { %9205 = vmatpush3.bf16.msra.mxu1 %v9561_v44 }
 0x5f8   :  { %9206 = vmatprep.subr.bf16.mxu1 %v9562_v46  ;;  %v9603_v46 = vld [vmem:[%s11256_s12 + $0x30] sm:$0xff]  }
 0x5fb   :  { %9207 = vmatpush3.bf16.msra.mxu1 %v9563_v47  ;;  %v9602_v47 = vld [vmem:[%s11252_s8 + $0x508] sm:$0xff]  }
 0x5fc   :  { %9208 = vmatprep.subr.bf16.mxu1 %v9564_v33 }
 0x5ff   :  { %9209 = vmatpush3.bf16.msra.mxu1 %v9565_v35 }
 0x600   :  { %9210 = vmatprep.subr.bf16.mxu1 %v9566_v9  ;;  %v9606_v9 = vld [vmem:[%s11256_s12 + $0x28] sm:$0xff]  }
 0x603   :  { %9211 = vmatpush3.bf16.msra.mxu1 %v9567_v54  ;;  %v9605_v54 = vld [vmem:[%s11252_s8 + $0x500] sm:$0xff]  }
 0x604   :  { %7741 = vmatprep.subr.bf16.mxu1 %v9848_v0 }
 0x606   :  { %7507 = vmatmul.mubr.bf16.vlgmr.msra.gmra.mxu1 %v6831_v40  ;;  %v9607_v40 = vld [vmem:[%s11256_s12 + $0x20] sm:$0xff]  }
 0x607   :  { %7742 = vmatpush1.bf16.msra.mxu1 %v9600_v2 }
 0x608   :  { %7743 = vmatprep.subr.bf16.mxu1 %v9848_v0 }
 0x60b   :  { %7744 = vmatpush1.bf16.msra.mxu1 %v9603_v46 }
 0x60c   :  { %7745 = vmatprep.subr.bf16.mxu1 %v9848_v0 }
 0x60f   :  { %7746 = vmatpush1.bf16.msra.mxu1 %v9606_v9 }
 0x610   :  { %7747 = vmatprep.subr.bf16.mxu1 %v9848_v0 }
 0x613   :  { %7748 = vmatpush1.bf16.msra.mxu1 %v9607_v40  ;;  %v8705_v40 = vld [vmem:[#allocation13 + $0x1] ss:$0 sm:$0xff] }
 0x614   :  { %7749 = vmatprep.subr.bf16.mxu1 %v9848_v0 }
 0x671   :  { %v9097_v56 = vpop.f32.mrf.mxu0 }
 0x673   :  { %v9098_v25 = vpop.f32.mrf.mxu0 }
 0x674   :  { %v9099_v32 = vadd.f32 %v9098_v25, %v9097_v56  ;;  %v9608_v56 = vld [vmem:[%s11256_s12 + $0x18] sm:$0xff]   ;;  %v9609_v25 = vld [vmem:[%s11256_s12 + $0x10] sm:$0xff]  }
 0x675   :  { %v9100_v59 = vpop.f32.mrf.mxu0  ;;  %7750 = vmatpush1.bf16.msra.mxu1 %v9608_v56 }
 0x676   :  { %v6499_v63 = vadd.f32 %v9099_v32, %v10974_v23  ;;  %v6826_v23 = vpack.c.bf16 %v6818_v14, %v6818_v14  ;;  %7751 = vmatprep.subr.bf16.mxu1 %v9848_v0  ;;  %v9610_v32 = vld [vmem:[%s11256_s12 + $0x8] sm:$0xff]   ;;  %v9611_v59 = vld [vmem:[%s11256_s12] sm:$0xff]  }
 0x677   :  { %v9101_v11 = vpop.f32.mrf.mxu0  ;;  %v7636_v14 = vld [vmem:[#allocation4] sm:$0xff] }
 0x678   :  { %v6539_v4 = vadd.f32 %v10976_v19, %v6499_v63  ;;  %v9577_v19 = vld [vmem:[%s11252_s8 + $0x428] sm:$0xff]   ;;  %v9612_v63 = vld [vmem:[%s11256_s12 + $0x50] sm:$0xff]  }
 0x679   :  { %7752 = vmatpush1.bf16.msra.mxu1 %v9609_v25  ;;  %v9613_v11 = vld [vmem:[%s11256_s12 + $0x48] sm:$0xff]   ;;  %v8494_v25 = vld [vmem:[#allocation13] ss:$0 sm:$0xff] }
 0x67a   :  { %v6544_v5 = vmax.f32 %v6539_v4, 0.0  ;;  %7753 = vmatprep.subr.bf16.mxu1 %v9848_v0  ;;  %v9614_v4 = vld [vmem:[%s11256_s12 + $0x40] sm:$0xff]  }
 0x67c   :  { %v6545_v12 = vpack.c.bf16 %v6544_v5, %v6544_v5  ;;  %v7637_v5 = vld [vmem:[#allocation4 + $0x8] sm:$0xff] }
 0x67d   :  { %7754 = vmatpush1.bf16.msra.mxu1 %v9610_v32 }
 0x67e   :  { %9264 = vmatmul.mubr.msk.bf16.vlgmr.msra.gmra.mxu0 %vm5616_vm4, %v6545_v12  ;;  %7755 = vmatprep.subr.bf16.mxu1 %v9848_v0  ;;  %v7639_v12 = vld [vmem:[#allocation4 + $0x18] sm:$0xff] }
 0x67f   :  { %6750 = vmatpush1.bf16.msra.mxu0 %v10371_v6  ;;  %6767 = vmatprep.mubr.bf16.mxu0 %v9848_v0  ;;  %v9575_v6 = vld [vmem:[%s11252_s8 + $0x430] sm:$0xff]  }
 0x680   :  { %9130 = vmatprep.subr.bf16.mxu0 %v9572_v3  ;;  %v7641_v3 = vpack.c.bf16 %v7639_v12, %v7637_v5 }
 0x681   :  { %7756 = vmatpush1.bf16.msra.mxu1 %v9611_v59 }
 0x682   :  { %7767 = vmatprep.subr.bf16.mxu1 %v9848_v0  ;;  %8934 = vmatprep.mubr.msk.bf16.mxu1 %vm7737_vm5, %v7641_v3 }
 0x685   :  { %7768 = vmatpush2.bf16.msra.mxu1 %v9612_v63 }
 0x686   :  { %8713 = vmatmul.mubr.msk.bf16.vlgmr.msra.gmra.mxu0 %vm4652_vm2, %v10875_v24  ;;  %v9578_v24 = vld [vmem:[%s11252_s8 + $0x460] sm:$0xff]   ;;  %7769 = vmatprep.subr.bf16.mxu1 %v9848_v0 }
 0x687   :  { %9131 = vmatpush3.bf16.msra.mxu0 %v9573_v60  ;;  %7386 = vmatprep.mubr.bf16.mxu0 %v6826_v23  ;;  %v7638_v60 = vld [vmem:[#allocation4 + $0x10] sm:$0xff] }
 0x688   :  { %9132 = vmatprep.subr.bf16.mxu0 %v9574_v13  ;;  %v7640_v13 = vpack.c.bf16 %v7638_v60, %v7636_v14 }
 0x689   :  { %7770 = vmatpush2.bf16.msra.mxu1 %v9613_v11 }
 0x68a   :  { %7771 = vmatprep.subr.bf16.mxu1 %v9848_v0 }
 0x68b   :  { %9133 = vmatpush3.bf16.msra.mxu0 %v9575_v6 }
 0x68c   :  { %9134 = vmatprep.subr.bf16.mxu0 %v9576_v36 }
 0x68d   :  { %7772 = vmatpush2.bf16.msra.mxu1 %v9614_v4 }
 0x68f   :  { %9135 = vmatpush3.bf16.msra.mxu0 %v9577_v19 }
 0x690   :  { %9136 = vmatprep.subr.bf16.mxu0 %v9578_v24  ;;  %7774 = vmatmul.mubr.bf16.vlgmr.msra.gmra.mxu1 %v7640_v13 }
 0x693   :  { %9137 = vmatpush3.bf16.msra.mxu0 %v9579_v21 }
 0x694   :  { %9138 = vmatprep.subr.bf16.mxu0 %v9580_v27 }
 0x697   :  { %9139 = vmatpush3.bf16.msra.mxu0 %v9581_v37 }
 0x698   :  { %9140 = vmatprep.subr.bf16.mxu0 %v9582_v38 }
 0x69b   :  { %9141 = vmatpush3.bf16.msra.mxu0 %v9583_v57 }
 0x69c   :  { %9142 = vmatprep.subr.bf16.mxu0 %v9584_v58  ;;  %v9615_v58 = vld [vmem:[%s11254_s10 + $0x58] sm:$0xff]  }
 0x69f   :  { %9143 = vmatpush3.bf16.msra.mxu0 %v9585_v17 }
 0x6a0   :  { %9144 = vmatprep.subr.bf16.mxu0 %v9586_v18 }
 0x6a3   :  { %9145 = vmatpush3.bf16.msra.mxu0 %v9587_v7  ;;  %v8843_v7 = vld [vmem:[#allocation12 + $0x2] ss:$0 sm:$0xff] }
 0x6a4   :  { %9174 = vmatprep.subr.bf16.mxu0 %v9588_v20 }
 0x6a6   :  { %7387 = vmatmul.mubr.bf16.vlgmr.msra.gmra.mxu0 %v6825_v26  ;;  %v9168_v28 = vpop.f32.mrf.mxu1 }
 0x6a7   :  { %9175 = vmatpush3.bf16.msra.mxu0 %v9589_v22 }
 0x6a8   :  { %v9169_v16 = vpop.f32.mrf.mxu1  ;;  %9176 = vmatprep.subr.bf16.mxu0 %v9590_v31 }
 0x6a9   :  { %v11118_v1 = vadd.f32 %v9169_v16, %v9168_v28  ;;  %v9616_v28 = vld [vmem:[%s11254_s10 + $0x50] sm:$0xff]   ;;  %v7600_v16 = vld [vmem:[%s11245_s1] sm:$0xff] }
 0x6aa   :  { %v9171_v39 = vpop.f32.mrf.mxu1  ;;  %vm7603_vm6 = vcmp.eq.s32.totalorder %v7600_v16, 3  ;;  %vm7602_vm7 = vcmp.eq.s32.totalorder %v7600_v16, 2  ;;  %vm7601_vm8 = vcmp.eq.s32.totalorder %v7600_v16, 1 }
 0x6ab   :  { %9177 = vmatpush3.bf16.msra.mxu0 %v9591_v62  ;;  %v9617_v62 = vld [vmem:[%s11254_s10 + $0x48] sm:$0xff]   ;;  %v7610_v39 = vsel %vm7602_vm7, 1, %v9848_v0 }
 0x6ac   :  { %v9172_v42 = vpop.f32.mrf.mxu1  ;;  %9178 = vmatprep.subr.bf16.mxu0 %v9592_v61  ;;  %v7604_v61 = vsel %vm7603_vm6, 1, %v9848_v0  ;;  %7612 = vperm.xlu1 %9299, %v7610_v39  }
 0x6ad   :  { %7606 = vperm.xlu0 %9298, %v7604_v61   ;;  %v8922_v42 = vld [vmem:[#allocation15] ss:$0 sm:$0xff] }
 0x6af   :  { %9179 = vmatpush3.bf16.msra.mxu0 %v9593_v41  ;;  %v7616_v41 = vsel %vm7601_vm8, 1, %v9848_v0 }
 0x6b0   :  { %9180 = vmatprep.subr.bf16.mxu0 %v9594_v43  ;;  %7618 = vperm.xlu1 %9299, %v7616_v41  }
 0x6b3   :  { %9181 = vmatpush3.bf16.msra.mxu0 %v9595_v34 }
 0x6b4   :  { %9182 = vmatprep.subr.bf16.mxu0 %v9596_v48 }
 0x6b7   :  { %9183 = vmatpush3.bf16.msra.mxu0 %v9597_v51 }
 0x6b8   :  { %9184 = vmatprep.subr.bf16.mxu0 %v9598_v30 }
 0x6bb   :  { %9185 = vmatpush3.bf16.msra.mxu0 %v9599_v52 }
 0x6bc   :  { %9186 = vmatprep.subr.bf16.mxu0 %v9601_v45 }
 0x6bf   :  { %9187 = vmatpush3.bf16.msra.mxu0 %v9602_v47 }
 0x6c0   :  { %9188 = vmatprep.subr.bf16.mxu0 %v9604_v53 }
 0x6c3   :  { %9189 = vmatpush3.bf16.msra.mxu0 %v9605_v54 }
 0x6c4   :  { %9267 = vmatprep.subr.bf16.mxu0 %v9849_v10 }
 0x6c6   :  { %v9212_v44 = vpop.f32.mrf.mxu1 }
 0x6c8   :  { %v9213_v29 = vpop.f32.mrf.mxu1 }
 0x6c9   :  { %v11154_v33 = vadd.f32 %v9213_v29, %v9212_v44 }
 0x6ca   :  { %v9215_v35 = vpop.f32.mrf.mxu1 }
 0x6cc   :  { %v9216_v55 = vpop.f32.mrf.mxu1 }
 0x6cd   :  { %v8916_v55 = vld [vmem:[#allocation13 + $0x2] ss:$0 sm:$0xff] }
 0x727   :  { %v7613_v54 = vpop.permute.xlu1 %7612 }
 0x728   :  { %v7607_v56 = vpop.permute.xlu0 %7606  ;;  %vm7614_vm10 = vcmp.eq.s32.totalorder %v7613_v54, 1 }
 0x729   :  { %vm7608_vm9 = vcmp.eq.s32.totalorder %v7607_v56, 1 }
 0x72b   :  { %v7619_v63 = vpop.permute.xlu1 %7618 }
 0x72c   :  { %vm7620_vm11 = vcmp.eq.s32.totalorder %v7619_v63, 1 }
 0x73e   :  { %v11199_v23 = vpop.f32.mrf.mxu0 }
 0x73f   :  { %v6625_v4 = vadd.f32 %v8705_v40, %v11199_v23 }
 0x740   :  { %v9265_v6 = vpop.f32.mrf.mxu0 }
 0x742   :  { %v6627_v36 = vpop.f32.mrf.mxu0 }
 0x744   :  { %v9266_v19 = vpop.f32.mrf.mxu0 }
 0x746   :  { %v6769_v24 = vpop.f32.mrf.mxu0 }
 0x747   :  { %v6821_v21 = vmul.f32 %v6769_v24, %v10465_v8 }
 0x748   :  { %v6771_v27 = vpop.f32.mrf.mxu0 }
 0x749   :  { %v6822_v37 = vmul.f32 %v6771_v27, %v10480_v49  ;;  %v6829_v17 = vpack.c.bf16 %v6821_v21, %v6821_v21 }
 0x74a   :  { %v6773_v38 = vpop.f32.mrf.mxu0 }
 0x74b   :  { %v6830_v57 = vpack.c.bf16 %v6822_v37, %v6822_v37 }
 0x74c   :  { %v6774_v18 = vpop.f32.mrf.mxu0 }
 0x74d   :  { %7466 = vmatprep.mubr.bf16.mxu0 %v6830_v57 }
 0x74e   :  { %7467 = vmatmul.mubr.bf16.vlgmr.msra.gmra.mxu0 %v6829_v17 }
 0x74f   :  { %9268 = vmatpush3.bf16.msra.mxu0 %v9615_v58  ;;  %9275 = vmatprep.mubr.msk.bf16.mxu0 %vm9850_vm0, %v9849_v10 }
 0x750   :  { %9269 = vmatprep.subr.bf16.mxu0 %v9849_v10  ;;  %v7775_v43 = vpop.f32.mrf.mxu1 }
 0x751   :  { %v7776_v34 = vadd.f32 %v8922_v42, %v7775_v43 }
 0x752   :  { %v7777_v48 = vpop.f32.mrf.mxu1 }
 0x753   :  { %9270 = vmatpush3.bf16.msra.mxu0 %v9616_v28  ;;  %v11227_v51 = vmax.f32 %v7776_v34, 0.0 }
 0x754   :  { %9271 = vmatprep.subr.bf16.mxu0 %v9849_v10  ;;  %v7778_v53 = vpop.f32.mrf.mxu1 }
 0x755   :  { %v7779_v59 = vadd.f32 %v8922_v42, %v7778_v53 }
 0x756   :  { %v7780_v9 = vpop.f32.mrf.mxu1 }
 0x757   :  { %9272 = vmatpush3.bf16.msra.mxu0 %v9617_v62  ;;  %v7783_v14 = vmax.f32 %v7779_v59, 0.0 }
 0x758   :  { %9273 = vmatprep.subr.bf16.mxu0 %v9849_v10  ;;  %v7784_v10 = vmul.f32 %v11227_v51, %v11227_v51 }
 0x759   :  { %v7785_v24 = vmul.f32 %v7783_v14, %v7783_v14 }
 0x75a   :  { %v7786_v30 = vsel %vm4652_vm2, %v7784_v10, 0.0 }
 0x75b   :  { %7787 = vadd.xlane.f32.xlu0 %v7786_v30  ;;  %v7789_v21 = vsel %vm4652_vm2, %v7785_v24, 0.0 }
 0x766   :  { %v9146_v8 = vpop.f32.mrf.mxu0 }
 0x768   :  { %v9147_v15 = vpop.f32.mrf.mxu0 }
 0x769   :  { %v9148_v49 = vadd.f32 %v9147_v15, %v9146_v8 }
 0x76a   :  { %v9149_v20 = vpop.f32.mrf.mxu0 }
 0x76b   :  { %v7389_v22 = vadd.f32 %v9148_v49, %v8843_v7 }
 0x76c   :  { %v9150_v26 = vpop.f32.mrf.mxu0 }
 0x76d   :  { %v7429_v31 = vadd.f32 %v11118_v1, %v7389_v22  ;;  %v9618_v1 = vld [vmem:[%s11254_s10 + $0x40] sm:$0xff]  }
 0x76e   :  { %9274 = vmatpush3.bf16.msra.mxu0 %v9618_v1 }
 0x7e4   :  { %v7788_v23 = vpop.xlane.xlu0 %7787 }
 0x7e5   :  { %9631 = vrsqrt.f32 %v7788_v23  ;;  %vm7794_vm12 = vcmp.eq.f32.partialorder %v7788_v23, inf  ;;  %v7797_v57 = vand.u32 2147483648, %v7788_v23  ;;  %vm7796_vm13 = vcmp.eq.f32.partialorder %v7788_v23, 0.0 }
 0x80e   :  { %v9190_v52 = vpop.f32.mrf.mxu0 }
 0x810   :  { %v9191_v2 = vpop.f32.mrf.mxu0 }
 0x811   :  { %v9192_v44 = vadd.f32 %v9191_v2, %v9190_v52 }
 0x812   :  { %v9193_v45 = vpop.f32.mrf.mxu0 }
 0x813   :  { %v7469_v46 = vadd.f32 %v9192_v44, %v7429_v31 }
 0x814   :  { %v9194_v47 = vpop.f32.mrf.mxu0 }
 0x815   :  { %v7509_v0 = vadd.f32 %v11154_v33, %v7469_v46  ;;  %v5655_v33 = vadd.f32 %v8494_v25, %v10964_v50  ;;  %v9632_v50 = vpop.eup %9631 }
 0x816   :  { %v7793_v38 = vmul.f32 %v9632_v50, %v7788_v23 }
 0x817   :  { %v7514_v29 = vmax.f32 %v7509_v0, 0.0 }
 0x818   :  { %v7795_v58 = vsel %vm7794_vm12, %v7788_v23, %v7793_v38 }
 0x819   :  { %v7515_v35 = vpack.c.bf16 %v7514_v29, %v7514_v29  ;;  %v7798_v17 = vsel %vm7796_vm13, %v7797_v57, %v7795_v58 }
 0x81a   :  { %v7806_v8 = vmax.f32 %v7798_v17, 1e-12 }
 0x81b   :  { %9276 = vmatmul.mubr.msk.bf16.vlgmr.msra.gmra.mxu0 %vm5616_vm4, %v7515_v35  ;;  %vm7822_vm4 = vcmask 15360  }
 0x8db   :  { %v7594_v32 = vpop.f32.mrf.mxu0 }
 0x8dc   :  { %v7595_v11 = vadd.f32 %v8916_v55, %v7594_v32 }
 0x8dd   :  { %v9277_v5 = vpop.f32.mrf.mxu0 }
 0x8de   :  { %v7609_v12 = vsel %vm7608_vm9, %v7595_v11, 0.0 }
 0x8df   :  { %v7615_v3 = vsel %vm7614_vm10, %v6625_v4, %v7609_v12  ;;  %v7597_v60 = vpop.f32.mrf.mxu0 }
 0x8e0   :  { %v7621_v13 = vsel %vm7620_vm11, %v5655_v33, %v7615_v3 }
 0x8e1   :  { %v9278_v6 = vpop.f32.mrf.mxu0  ;;  %v7622_v36 = vmul.f32 %v7621_v13, %v7621_v13 }
 0x8e3   :  { %v7623_v19 = vsel %vm4652_vm2, %v7622_v36, 0.0 }
 0x8e4   :  { %7624 = vadd.xlane.f32.xlu1 %v7623_v19 }
 0x8e8   :  { %7790 = vadd.xlane.f32.xlu1 %v7789_v21 }
 0x96d   :  { %v7625_v27 = vpop.xlane.xlu1 %7624 }
 0x96e   :  { %9633 = vrsqrt.f32 %v7625_v27  ;;  %vm7628_vm14 = vcmp.eq.f32.partialorder %v7625_v27, inf  ;;  %v7631_v15 = vand.u32 2147483648, %v7625_v27  ;;  %vm7630_vm15 = vcmp.eq.f32.partialorder %v7625_v27, 0.0 }
 0x971   :  { %v7791_v37 = vpop.xlane.xlu1 %7790 }
 0x972   :  { %9635 = vrsqrt.f32 %v7791_v37  ;;  %vm7801_vm0 = vcmp.eq.f32.partialorder %v7791_v37, inf  ;;  %v7804_v28 = vand.u32 2147483648, %v7791_v37  ;;  %vm7803_vm1 = vcmp.eq.f32.partialorder %v7791_v37, 0.0 }
 0x973   :  { %9637 = vrcp.f32 %v7806_v8 }
 0x97b   :  { %v9634_v18 = vpop.eup %9633 }
 0x97c   :  { %v7627_v7 = vmul.f32 %v9634_v18, %v7625_v27 }
 0x97e   :  { %v7629_v49 = vsel %vm7628_vm14, %v7625_v27, %v7627_v7 }
 0x97f   :  { %v9636_v20 = vpop.eup %9635  ;;  %v7632_v22 = vsel %vm7630_vm15, %v7631_v15, %v7629_v49 }
 0x980   :  { %v7633_v26 = vmax.f32 %v7632_v22, 1e-12  ;;  %v7800_v31 = vmul.f32 %v9636_v20, %v7791_v37  ;;  %v9638_v1 = vpop.eup %9637 }
 0x981   :  { %v7809_v42 = vmul.f32 %v9638_v1, %v11227_v51 }
 0x982   :  { %9639 = vrcp.f32 %v7633_v26  ;;  %v7802_v62 = vsel %vm7801_vm0, %v7791_v37, %v7800_v31 }
 0x983   :  { %v7805_v16 = vsel %vm7803_vm1, %v7804_v28, %v7802_v62 }
 0x984   :  { %v7807_v61 = vmax.f32 %v7805_v16, 1e-12 }
 0x986   :  { %9641 = vrcp.f32 %v7807_v61 }
 0x98f   :  { %v9640_v39 = vpop.eup %9639 }
 0x990   :  { %v7635_v41 = vmul.f32 %v9640_v39, %v7621_v13 }
 0x992   :  { %v7812_v43 = vmul.f32 %v7809_v42, %v7635_v41 }
 0x993   :  { %v9642_v34 = vpop.eup %9641 }
 0x994   :  { %v7813_v48 = vsel %vm4652_vm2, %v7812_v43, 0.0  ;;  %v7811_v10 = vmul.f32 %v9642_v34, %v7783_v14 }
 0x995   :  { %7814 = vadd.xlane.f32.xlu1 %v7813_v48 }
 0x996   :  { %v7816_v30 = vmul.f32 %v7811_v10, %v7635_v41 }
 0x998   :  { %v7817_v52 = vsel %vm4652_vm2, %v7816_v30, 0.0 }
 0x999   :  { %7818 = vadd.xlane.f32.xlu1 %v7817_v52 }
 0xa1e   :  { %v7815_v2 = vpop.xlane.xlu1 %7814 }
 0xa22   :  { %v7819_v44 = vpop.xlane.xlu1 %7818 }
 0xa23   :  { %v7821_v45 = vsel %vm7820_vm3, %v7815_v2, %v7819_v44 }
 0xa24   :  { %7823 = vst.msk [vmem:[%s11258_s14] sm:$0xff] %vm7822_vm4, %v7821_v45 }
 0xa25   :  { %7828 = vsyncpa [#allocation3], 1 }
 0xa26   :  { %7829 = vsyncpa [#allocation5], 1 }
 0xa27   :  { %7830 = vsyncpa [#allocation8], 1 }
 0xa28   :  { %7831 = vsyncpa [#allocation11], 1 }
 0xa29   :  { %7832 = vsyncpa [#allocation14], 1 }

</bundles_post_ra>
